<compile_context>
chip_gen: v6e
topology: v6e:2x2x1
jax: 0.10.0
libtpu: 0.0.40
codegen_flags: <defaults>
</compile_context>

<pallas_src>
import functools

import jax
import jax.numpy as jnp
from jax.experimental import pallas as pl
from jax.experimental.pallas import tpu as pltpu


# ----------------------------- Pallas kernels ------------------------------


def _upconv_poly_kernel(x_ref, w_ref, y_ref, s1_ref, s2_ref):
    """Fused nearest-x2-upsample + 3x3 conv (polyphase) + BN partial statistics.

    x_ref : (1, H+2, W+2, C_in)      bf16   zero-padded original-res input (resident per n)
    w_ref : (16, C_in, C_out)        bf16   4 output phases x 4 taps of combined 2x2 weights
    y_ref : (1, h_t, 2, W, 2*C_out)  bf16   conv output tile; element [0, i, a, j, b*C_out+c]
                                            is the conv at upsampled pixel (2i+a, 2j+b)
    s1_ref, s2_ref : (1, 1, C_out)   f32    per-batch partial sum / sum-of-squares,
                                            accumulated across the row-tile grid axis
    """
    h_idx = pl.program_id(1)
    h_t = y_ref.shape[1]
    W = y_ref.shape[3]
    C_in = x_ref.shape[3]
    C_out = s1_ref.shape[2]

    @pl.when(h_idx == 0)
    def _init():
        s1_ref[...] = jnp.zeros_like(s1_ref)
        s2_ref[...] = jnp.zeros_like(s2_ref)

    row0 = pl.multiple_of(h_idx * h_t, h_t)  # first original-res row of this tile

    s1 = jnp.zeros((1, C_out), jnp.float32)
    s2 = jnp.zeros((1, C_out), jnp.float32)

    for a in range(2):          # output row phase (upsampled row = 2*i + a)
        col_phases = []
        for b in range(2):      # output col phase (upsampled col = 2*j + b)
            acc = jnp.zeros((h_t * W, C_out), jnp.float32)
            for di in range(2):
                for dj in range(2):
                    ph = ((a * 2 + b) * 2 + di) * 2 + dj
                    # shifted slab of the padded original-res input (lanes = C_in)
                    xs = x_ref[0, pl.ds(row0 + a + di, h_t), pl.ds(b + dj, W), :]
                    xs = xs.reshape(h_t * W, C_in)
                    acc = acc + jnp.dot(xs, w_ref[ph],
                                        preferred_element_type=jnp.float32)
            # BN partial statistics from the f32 accumulator (no extra HBM pass later).
            s1 = s1 + jnp.sum(acc, axis=0, keepdims=True)
            s2 = s2 + jnp.sum(acc * acc, axis=0, keepdims=True)
            col_phases.append(acc.reshape(h_t, W, C_out).astype(y_ref.dtype))
        # Interleave the two column phases along the packed (2*C_out) last dim and
        # store the whole row-phase slab contiguously (lanes = channels, no masked vst).
        y_ref[0, :, a, :, :] = jnp.concatenate(col_phases, axis=-1)

    s1_ref[0] = s1_ref[0] + s1
    s2_ref[0] = s2_ref[0] + s2


def _bn_relu_nchw_kernel(y_ref, scale_ref, shift_ref, o_ref):
    """BN affine + ReLU, writing a channels-first, lane-dense (C_out, spatial) block.

    y_ref     : (1, hw_t, C_out) bf16   conv output (NHWC, spatially flattened)
    scale_ref : (1, C_out)       f32
    shift_ref : (1, C_out)       f32
    o_ref     : (1, C_out, hw_t) f32    final output block (spatial on lanes)
    """
    y = y_ref[0].astype(jnp.float32)                       # (hw_t, C_out)
    z = jnp.maximum(y * scale_ref[...] + shift_ref[...], 0.0)
    o_ref[0] = jnp.transpose(z, (1, 0)).astype(o_ref.dtype)  # (C_out, hw_t)


# ------------------------------ up_conv forward -----------------------------


@functools.partial(jax.jit, static_argnames=("h_tile", "hw_tile", "compute_dtype"))
def up_conv_forward(x_nchw, conv_w, conv_b, bn_gamma, bn_beta, *,
                    h_tile=None, hw_tile=None, compute_dtype=jnp.bfloat16):
    """Matches torch up_conv(ch_in, ch_out).forward(x) in training mode.

    x_nchw:  (N, C_in, H, W) float32
    conv_w:  (C_out, C_in, 3, 3) float32 (torch OIHW layout)
    conv_b:  (C_out,)  -- unused: train-mode BN subtracts the batch mean, so a constant
                          per-channel bias cancels exactly.
    bn_gamma, bn_beta: (C_out,)
    returns: (N, C_out, 2H, 2W) float32
    """
    del conv_b  # mathematically cancelled by training-mode BatchNorm
    N, C_in, H, W = x_nchw.shape
    C_out = conv_w.shape[0]
    H2, W2 = 2 * H, 2 * W
    eps = 1e-5

    if h_tile is None:
        h_tile = H
    assert H % h_tile == 0
    n_h = H // h_tile

    # --- cheap prep in XLA: channels-last + 1-pixel halo pad of the ORIGINAL-res input
    # (no upsampled image and no im2col matrix are ever materialized in HBM).
    x_nhwc = jnp.transpose(x_nchw, (0, 2, 3, 1))
    x_pad = jnp.pad(x_nhwc, ((0, 0), (1, 1), (1, 1), (0, 0))).astype(compute_dtype)

    # --- polyphase weights: 3x3 conv after nearest-x2 upsample == 4 phase-specific
    # 2x2 convs on the original-res input.  R[a, d, k] folds the 3 kernel rows onto the
    # 2 original rows touched by output-row phase a (same matrix reused for columns).
    R = jnp.array([[[1., 0., 0.], [0., 1., 1.]],
                   [[1., 1., 0.], [0., 0., 1.]]], dtype=jnp.float32)
    w_ph = jnp.einsum("adh,bew,oihw->abdeio", R, R, conv_w.astype(jnp.float32))
    w_ph = w_ph.reshape(16, C_in, C_out).astype(compute_dtype)

    # --- kernel 1: fused upsample+conv (16 small MXU matmuls / block) + BN partial sums
    # TODO(synk): for large C_out (>=128) add a C_out grid axis (tile in multiples of 128)
    # and shrink h_tile so double-buffered blocks fit v7x's 64 MiB VMEM.
    bytes1 = int(N * (H + 2) * (W + 2) * C_in * 2 + 16 * C_in * C_out * 2
                 + N * H2 * W2 * C_out * 2 + 2 * N * C_out * 4)
    flops1 = int(2 * 16 * N * H * W * C_in * C_out)
    y1, s1, s2 = pl.pallas_call(
        _upconv_poly_kernel,
        out_shape=(
            jax.ShapeDtypeStruct((N, H, 2, W, 2 * C_out), compute_dtype),
            jax.ShapeDtypeStruct((N, 1, C_out), jnp.float32),
            jax.ShapeDtypeStruct((N, 1, C_out), jnp.float32),
        ),
        grid_spec=pltpu.PrefetchScalarGridSpec(
            num_scalar_prefetch=0,
            grid=(N, n_h),
            in_specs=[
                pl.BlockSpec((1, H + 2, W + 2, C_in), lambda n, h: (n, 0, 0, 0)),
                pl.BlockSpec((16, C_in, C_out), lambda n, h: (0, 0, 0)),
            ],
            out_specs=(
                pl.BlockSpec((1, h_tile, 2, W, 2 * C_out), lambda n, h: (n, h, 0, 0, 0)),
                pl.BlockSpec((1, 1, C_out), lambda n, h: (n, 0, 0)),
                pl.BlockSpec((1, 1, C_out), lambda n, h: (n, 0, 0)),
            ),
        ),
        compiler_params=pltpu.CompilerParams(
            dimension_semantics=("parallel", "arbitrary")),
        cost_estimate=pl.CostEstimate(
            flops=flops1, transcendentals=0, bytes_accessed=bytes1),
    )(x_pad, w_ph)

    # --- BatchNorm2d training-mode statistics from the in-kernel partial sums
    # (biased variance, eps=1e-5); tiny per-channel math in XLA.
    cnt = float(N * H2 * W2)
    mean = jnp.sum(s1, axis=0).reshape(C_out) / cnt
    ex2 = jnp.sum(s2, axis=0).reshape(C_out) / cnt
    var = jnp.maximum(ex2 - mean * mean, 0.0)
    inv_std = jax.lax.rsqrt(var + eps)
    scale_v = bn_gamma.astype(jnp.float32) * inv_std
    shift_v = bn_beta.astype(jnp.float32) - mean * scale_v
    scale = scale_v.reshape(1, C_out)
    shift = shift_v.reshape(1, C_out)

    # --- kernel 2: BN affine + ReLU, written channels-first with spatial on lanes.
    # y1 in memory is exactly NHWC of the upsampled image -> this reshape is free.
    y2d = y1.reshape(N, H2 * W2, C_out)
    if hw_tile is None:
        hw_tile = H2 * W2
    assert (H2 * W2) % hw_tile == 0
    assert hw_tile % 128 == 0 or hw_tile == H2 * W2
    n_s = (H2 * W2) // hw_tile
    co_tile = C_out  # TODO(synk): tile C_out (multiple of 128) for large channel counts
    n_co = C_out // co_tile

    bytes2 = int(N * H2 * W2 * C_out * 2 + N * C_out * H2 * W2 * 4 + 2 * C_out * 4)
    flops2 = int(3 * N * H2 * W2 * C_out)
    out3 = pl.pallas_call(
        _bn_relu_nchw_kernel,
        out_shape=jax.ShapeDtypeStruct((N, C_out, H2 * W2), jnp.float32),
        grid_spec=pltpu.PrefetchScalarGridSpec(
            num_scalar_prefetch=0,
            grid=(N, n_co, n_s),
            in_specs=[
                pl.BlockSpec((1, hw_tile, co_tile), lambda n, c, s: (n, s, c)),
                pl.BlockSpec((1, co_tile), lambda n, c, s: (0, c)),
                pl.BlockSpec((1, co_tile), lambda n, c, s: (0, c)),
            ],
            out_specs=pl.BlockSpec((1, co_tile, hw_tile), lambda n, c, s: (n, c, s)),
        ),
        compiler_params=pltpu.CompilerParams(
            dimension_semantics=("parallel", "parallel", "parallel")),
        cost_estimate=pl.CostEstimate(
            flops=flops2, transcendentals=0, bytes_accessed=bytes2),
    )(y2d, scale, shift)

    # free reshape: (N, C_out, H2*W2) -> (N, C_out, H2, W2) NCHW
    return out3.reshape(N, C_out, H2, W2)


# -------------------------------- reference ---------------------------------


def up_conv_reference(x_nchw, conv_w, conv_b, bn_gamma, bn_beta):
    eps = 1e-5
    x_up = jnp.repeat(jnp.repeat(x_nchw, 2, axis=2), 2, axis=3)
    y = jax.lax.conv_general_dilated(
        x_up, conv_w, window_strides=(1, 1), padding=((1, 1), (1, 1)),
        dimension_numbers=("NCHW", "OIHW", "NCHW"))
    y = y + conv_b.reshape(1, -1, 1, 1)
    mean = jnp.mean(y, axis=(0, 2, 3), keepdims=True)
    var = jnp.mean(jnp.square(y - mean), axis=(0, 2, 3), keepdims=True)
    y = (y - mean) / jnp.sqrt(var + eps)
    y = y * bn_gamma.reshape(1, -1, 1, 1) + bn_beta.reshape(1, -1, 1, 1)
    return jnp.maximum(y, 0.0)


# ---------------------------------- main -------------------------------------


if __name__ == "__main__":
    key = jax.random.PRNGKey(0)
    k_x, k_w, k_b, k_g, k_be = jax.random.split(key, 5)

    N, C_in, H, W = 2, 4, 16, 16
    C_out = 8

    x = jax.random.normal(k_x, (N, C_in, H, W), dtype=jnp.float32)
    conv_w = 0.1 * jax.random.normal(k_w, (C_out, C_in, 3, 3), dtype=jnp.float32)
    conv_b = 0.1 * jax.random.normal(k_b, (C_out,), dtype=jnp.float32)
    bn_gamma = 1.0 + 0.1 * jax.random.normal(k_g, (C_out,), dtype=jnp.float32)
    bn_beta = 0.1 * jax.random.normal(k_be, (C_out,), dtype=jnp.float32)

    # h_tile / hw_tile chosen to exercise both grid axes at this toy size.
    out = up_conv_forward(x, conv_w, conv_b, bn_gamma, bn_beta,
                          h_tile=8, hw_tile=512)
    out = jax.block_until_ready(out)

    ref = jax.block_until_ready(up_conv_reference(x, conv_w, conv_b, bn_gamma, bn_beta))
    assert out.shape == (N, C_out, 2 * H, 2 * W), out.shape
    # bf16 conv operands (f32 accumulation) -> slightly looser tolerance vs f32 reference.
    assert jnp.allclose(out, ref, rtol=5e-2, atol=5e-2), \
        float(jnp.max(jnp.abs(out - ref)))

    print("KERNEL_OK")
</pallas_src>

<mosaic_0001>
module attributes {stable_mosaic.version = 11 : i64} {
  func.func @_upconv_poly_kernel(%arg0: i32, %arg1: i32, %arg2: memref<1x18x18x4xbf16, #tpu.memory_space<vmem>>, %arg3: memref<16x4x8xbf16, #tpu.memory_space<vmem>>, %arg4: memref<1x8x2x16x16xbf16, #tpu.memory_space<vmem>>, %arg5: memref<1x1x8xf32, #tpu.memory_space<vmem>>, %arg6: memref<1x1x8xf32, #tpu.memory_space<vmem>>) attributes {dimension_semantics = [#tpu.dimension_semantics<parallel>, #tpu.dimension_semantics<arbitrary>], iteration_bounds = array<i64: 2, 2>, scalar_prefetch = 0 : i64, scratch_operands = 0 : i64, tpu.core_type = #tpu.core_type<tc>, window_params = [{transform_indices = @transform_0, window_bounds = array<i64: 1, 18, 18, 4>}, {pipeline_mode = #tpu.pipeline_mode<synchronous>, transform_indices = @transform_1, window_bounds = array<i64: 16, 4, 8>}, {transform_indices = @transform_2, window_bounds = array<i64: 1, 8, 2, 16, 16>}, {transform_indices = @transform_3, window_bounds = array<i64: 1, 1, 8>}, {transform_indices = @transform_4, window_bounds = array<i64: 1, 1, 8>}]} {
    %c0_i32 = arith.constant 0 : i32
    %0 = arith.cmpi eq, %arg1, %c0_i32 : i32
    %1 = arith.extui %0 : i1 to i32
    %c0_i32_0 = arith.constant 0 : i32
    %2 = arith.cmpi ne, %1, %c0_i32_0 : i32
    scf.if %2 {
      %cst_163 = arith.constant 0.000000e+00 : f32
      %227 = vector.broadcast %cst_163 : f32 to vector<1x1x8xf32>
      %c0_164 = arith.constant 0 : index
      %c0_165 = arith.constant 0 : index
      %c0_166 = arith.constant 0 : index
      %228 = vector.load %arg5[%c0_164, %c0_165, %c0_166] : memref<1x1x8xf32, #tpu.memory_space<vmem>>, vector<1x1x8xf32>
      tpu.vector_store %arg5[%c0_164, %c0_165, %c0_166], %227 {strides = array<i32>} : memref<1x1x8xf32, #tpu.memory_space<vmem>>, vector<1x1x8xf32>,
      %cst_167 = arith.constant 0.000000e+00 : f32
      %229 = vector.broadcast %cst_167 : f32 to vector<1x1x8xf32>
      %c0_168 = arith.constant 0 : index
      %c0_169 = arith.constant 0 : index
      %c0_170 = arith.constant 0 : index
      %230 = vector.load %arg6[%c0_168, %c0_169, %c0_170] : memref<1x1x8xf32, #tpu.memory_space<vmem>>, vector<1x1x8xf32>
      tpu.vector_store %arg6[%c0_168, %c0_169, %c0_170], %229 {strides = array<i32>} : memref<1x1x8xf32, #tpu.memory_space<vmem>>, vector<1x1x8xf32>,
    } else {
    }
    %c8_i32 = arith.constant 8 : i32
    %3 = arith.muli %arg1, %c8_i32 : i32
    %4 = tpu.assume_multiple %3, 8 : i32
    %cst = arith.constant 0.000000e+00 : f32
    %5 = vector.broadcast %cst : f32 to vector<1x8xf32>
    %cst_1 = arith.constant 0.000000e+00 : f32
    %6 = vector.broadcast %cst_1 : f32 to vector<1x8xf32>
    %cst_2 = arith.constant 0.000000e+00 : f32
    %7 = vector.broadcast %cst_2 : f32 to vector<128x8xf32>
    %c0_i32_3 = arith.constant 0 : i32
    %8 = arith.addi %4, %c0_i32_3 : i32
    %c0_i32_4 = arith.constant 0 : i32
    %9 = arith.addi %8, %c0_i32_4 : i32
    %c0 = arith.constant 0 : index
    %10 = arith.index_cast %9 : i32 to index
    %c0_5 = arith.constant 0 : index
    %c0_6 = arith.constant 0 : index
    %11 = vector.load %arg2[%c0, %10, %c0_5, %c0_6] : memref<1x18x18x4xbf16, #tpu.memory_space<vmem>>, vector<1x8x16x4xbf16>
    %12 = vector.shape_cast %11 : vector<1x8x16x4xbf16> to vector<8x16x4xbf16>
    %13 = vector.shape_cast %12 : vector<8x16x4xbf16> to vector<128x4xbf16>
    %c0_7 = arith.constant 0 : index
    %c0_8 = arith.constant 0 : index
    %c0_9 = arith.constant 0 : index
    %14 = vector.load %arg3[%c0_7, %c0_8, %c0_9] : memref<16x4x8xbf16, #tpu.memory_space<vmem>>, vector<1x4x8xbf16>
    %15 = vector.shape_cast %14 : vector<1x4x8xbf16> to vector<4x8xbf16>
    %cst_10 = arith.constant dense<0.000000e+00> : vector<128x8xf32>
    %16 = tpu.matmul %13, %15, %cst_10 {dimension_numbers = #tpu.dot_dimension_numbers<[1], [0], [0], [1], [0, 0, 1, 1], [], []>} : vector<128x4xbf16>, vector<4x8xbf16>, vector<128x8xf32> -> vector<128x8xf32>
    %17 = arith.addf %7, %16 : vector<128x8xf32>
    %c0_i32_11 = arith.constant 0 : i32
    %18 = arith.addi %4, %c0_i32_11 : i32
    %c0_i32_12 = arith.constant 0 : i32
    %19 = arith.addi %18, %c0_i32_12 : i32
    %c0_13 = arith.constant 0 : index
    %20 = arith.index_cast %19 : i32 to index
    %c1 = arith.constant 1 : index
    %c0_14 = arith.constant 0 : index
    %21 = vector.load %arg2[%c0_13, %20, %c1, %c0_14] : memref<1x18x18x4xbf16, #tpu.memory_space<vmem>>, vector<1x8x16x4xbf16>
    %22 = vector.shape_cast %21 : vector<1x8x16x4xbf16> to vector<8x16x4xbf16>
    %23 = vector.shape_cast %22 : vector<8x16x4xbf16> to vector<128x4xbf16>
    %c1_15 = arith.constant 1 : index
    %c0_16 = arith.constant 0 : index
    %c0_17 = arith.constant 0 : index
    %24 = vector.load %arg3[%c1_15, %c0_16, %c0_17] : memref<16x4x8xbf16, #tpu.memory_space<vmem>>, vector<1x4x8xbf16>
    %25 = vector.shape_cast %24 : vector<1x4x8xbf16> to vector<4x8xbf16>
    %cst_18 = arith.constant dense<0.000000e+00> : vector<128x8xf32>
    %26 = tpu.matmul %23, %25, %cst_18 {dimension_numbers = #tpu.dot_dimension_numbers<[1], [0], [0], [1], [0, 0, 1, 1], [], []>} : vector<128x4xbf16>, vector<4x8xbf16>, vector<128x8xf32> -> vector<128x8xf32>
    %27 = arith.addf %17, %26 : vector<128x8xf32>
    %c0_i32_19 = arith.constant 0 : i32
    %28 = arith.addi %4, %c0_i32_19 : i32
    %c1_i32 = arith.constant 1 : i32
    %29 = arith.addi %28, %c1_i32 : i32
    %c0_20 = arith.constant 0 : index
    %30 = arith.index_cast %29 : i32 to index
    %c0_21 = arith.constant 0 : index
    %c0_22 = arith.constant 0 : index
    %31 = vector.load %arg2[%c0_20, %30, %c0_21, %c0_22] : memref<1x18x18x4xbf16, #tpu.memory_space<vmem>>, vector<1x8x16x4xbf16>
    %32 = vector.shape_cast %31 : vector<1x8x16x4xbf16> to vector<8x16x4xbf16>
    %33 = vector.shape_cast %32 : vector<8x16x4xbf16> to vector<128x4xbf16>
    %c2 = arith.constant 2 : index
    %c0_23 = arith.constant 0 : index
    %c0_24 = arith.constant 0 : index
    %34 = vector.load %arg3[%c2, %c0_23, %c0_24] : memref<16x4x8xbf16, #tpu.memory_space<vmem>>, vector<1x4x8xbf16>
    %35 = vector.shape_cast %34 : vector<1x4x8xbf16> to vector<4x8xbf16>
    %cst_25 = arith.constant dense<0.000000e+00> : vector<128x8xf32>
    %36 = tpu.matmul %33, %35, %cst_25 {dimension_numbers = #tpu.dot_dimension_numbers<[1], [0], [0], [1], [0, 0, 1, 1], [], []>} : vector<128x4xbf16>, vector<4x8xbf16>, vector<128x8xf32> -> vector<128x8xf32>
    %37 = arith.addf %27, %36 : vector<128x8xf32>
    %c0_i32_26 = arith.constant 0 : i32
    %38 = arith.addi %4, %c0_i32_26 : i32
    %c1_i32_27 = arith.constant 1 : i32
    %39 = arith.addi %38, %c1_i32_27 : i32
    %c0_28 = arith.constant 0 : index
    %40 = arith.index_cast %39 : i32 to index
    %c1_29 = arith.constant 1 : index
    %c0_30 = arith.constant 0 : index
    %41 = vector.load %arg2[%c0_28, %40, %c1_29, %c0_30] : memref<1x18x18x4xbf16, #tpu.memory_space<vmem>>, vector<1x8x16x4xbf16>
    %42 = vector.shape_cast %41 : vector<1x8x16x4xbf16> to vector<8x16x4xbf16>
    %43 = vector.shape_cast %42 : vector<8x16x4xbf16> to vector<128x4xbf16>
    %c3 = arith.constant 3 : index
    %c0_31 = arith.constant 0 : index
    %c0_32 = arith.constant 0 : index
    %44 = vector.load %arg3[%c3, %c0_31, %c0_32] : memref<16x4x8xbf16, #tpu.memory_space<vmem>>, vector<1x4x8xbf16>
    %45 = vector.shape_cast %44 : vector<1x4x8xbf16> to vector<4x8xbf16>
    %cst_33 = arith.constant dense<0.000000e+00> : vector<128x8xf32>
    %46 = tpu.matmul %43, %45, %cst_33 {dimension_numbers = #tpu.dot_dimension_numbers<[1], [0], [0], [1], [0, 0, 1, 1], [], []>} : vector<128x4xbf16>, vector<4x8xbf16>, vector<128x8xf32> -> vector<128x8xf32>
    %47 = arith.addf %37, %46 : vector<128x8xf32>
    %cst_34 = arith.constant dense<0.000000e+00> : vector<8xf32>
    %48 = vector.multi_reduction <add>, %47, %cst_34 [0] : vector<128x8xf32> to vector<8xf32>
    %49 = vector.shape_cast %48 : vector<8xf32> to vector<1x8xf32>
    %50 = arith.addf %5, %49 : vector<1x8xf32>
    %51 = arith.mulf %47, %47 : vector<128x8xf32>
    %cst_35 = arith.constant dense<0.000000e+00> : vector<8xf32>
    %52 = vector.multi_reduction <add>, %51, %cst_35 [0] : vector<128x8xf32> to vector<8xf32>
    %53 = vector.shape_cast %52 : vector<8xf32> to vector<1x8xf32>
    %54 = arith.addf %6, %53 : vector<1x8xf32>
    %55 = vector.shape_cast %47 : vector<128x8xf32> to vector<8x16x8xf32>
    %56 = arith.truncf %55 : vector<8x16x8xf32> to vector<8x16x8xbf16>
    %cst_36 = arith.constant 0.000000e+00 : f32
    %57 = vector.broadcast %cst_36 : f32 to vector<128x8xf32>
    %c0_i32_37 = arith.constant 0 : i32
    %58 = arith.addi %4, %c0_i32_37 : i32
    %c0_i32_38 = arith.constant 0 : i32
    %59 = arith.addi %58, %c0_i32_38 : i32
    %c0_39 = arith.constant 0 : index
    %60 = arith.index_cast %59 : i32 to index
    %c1_40 = arith.constant 1 : index
    %c0_41 = arith.constant 0 : index
    %61 = vector.load %arg2[%c0_39, %60, %c1_40, %c0_41] : memref<1x18x18x4xbf16, #tpu.memory_space<vmem>>, vector<1x8x16x4xbf16>
    %62 = vector.shape_cast %61 : vector<1x8x16x4xbf16> to vector<8x16x4xbf16>
    %63 = vector.shape_cast %62 : vector<8x16x4xbf16> to vector<128x4xbf16>
    %c4 = arith.constant 4 : index
    %c0_42 = arith.constant 0 : index
    %c0_43 = arith.constant 0 : index
    %64 = vector.load %arg3[%c4, %c0_42, %c0_43] : memref<16x4x8xbf16, #tpu.memory_space<vmem>>, vector<1x4x8xbf16>
    %65 = vector.shape_cast %64 : vector<1x4x8xbf16> to vector<4x8xbf16>
    %cst_44 = arith.constant dense<0.000000e+00> : vector<128x8xf32>
    %66 = tpu.matmul %63, %65, %cst_44 {dimension_numbers = #tpu.dot_dimension_numbers<[1], [0], [0], [1], [0, 0, 1, 1], [], []>} : vector<128x4xbf16>, vector<4x8xbf16>, vector<128x8xf32> -> vector<128x8xf32>
    %67 = arith.addf %57, %66 : vector<128x8xf32>
    %c0_i32_45 = arith.constant 0 : i32
    %68 = arith.addi %4, %c0_i32_45 : i32
    %c0_i32_46 = arith.constant 0 : i32
    %69 = arith.addi %68, %c0_i32_46 : i32
    %c0_47 = arith.constant 0 : index
    %70 = arith.index_cast %69 : i32 to index
    %c2_48 = arith.constant 2 : index
    %c0_49 = arith.constant 0 : index
    %71 = vector.load %arg2[%c0_47, %70, %c2_48, %c0_49] : memref<1x18x18x4xbf16, #tpu.memory_space<vmem>>, vector<1x8x16x4xbf16>
    %72 = vector.shape_cast %71 : vector<1x8x16x4xbf16> to vector<8x16x4xbf16>
    %73 = vector.shape_cast %72 : vector<8x16x4xbf16> to vector<128x4xbf16>
    %c5 = arith.constant 5 : index
    %c0_50 = arith.constant 0 : index
    %c0_51 = arith.constant 0 : index
    %74 = vector.load %arg3[%c5, %c0_50, %c0_51] : memref<16x4x8xbf16, #tpu.memory_space<vmem>>, vector<1x4x8xbf16>
    %75 = vector.shape_cast %74 : vector<1x4x8xbf16> to vector<4x8xbf16>
    %cst_52 = arith.constant dense<0.000000e+00> : vector<128x8xf32>
    %76 = tpu.matmul %73, %75, %cst_52 {dimension_numbers = #tpu.dot_dimension_numbers<[1], [0], [0], [1], [0, 0, 1, 1], [], []>} : vector<128x4xbf16>, vector<4x8xbf16>, vector<128x8xf32> -> vector<128x8xf32>
    %77 = arith.addf %67, %76 : vector<128x8xf32>
    %c0_i32_53 = arith.constant 0 : i32
    %78 = arith.addi %4, %c0_i32_53 : i32
    %c1_i32_54 = arith.constant 1 : i32
    %79 = arith.addi %78, %c1_i32_54 : i32
    %c0_55 = arith.constant 0 : index
    %80 = arith.index_cast %79 : i32 to index
    %c1_56 = arith.constant 1 : index
    %c0_57 = arith.constant 0 : index
    %81 = vector.load %arg2[%c0_55, %80, %c1_56, %c0_57] : memref<1x18x18x4xbf16, #tpu.memory_space<vmem>>, vector<1x8x16x4xbf16>
    %82 = vector.shape_cast %81 : vector<1x8x16x4xbf16> to vector<8x16x4xbf16>
    %83 = vector.shape_cast %82 : vector<8x16x4xbf16> to vector<128x4xbf16>
    %c6 = arith.constant 6 : index
    %c0_58 = arith.constant 0 : index
    %c0_59 = arith.constant 0 : index
    %84 = vector.load %arg3[%c6, %c0_58, %c0_59] : memref<16x4x8xbf16, #tpu.memory_space<vmem>>, vector<1x4x8xbf16>
    %85 = vector.shape_cast %84 : vector<1x4x8xbf16> to vector<4x8xbf16>
    %cst_60 = arith.constant dense<0.000000e+00> : vector<128x8xf32>
    %86 = tpu.matmul %83, %85, %cst_60 {dimension_numbers = #tpu.dot_dimension_numbers<[1], [0], [0], [1], [0, 0, 1, 1], [], []>} : vector<128x4xbf16>, vector<4x8xbf16>, vector<128x8xf32> -> vector<128x8xf32>
    %87 = arith.addf %77, %86 : vector<128x8xf32>
    %c0_i32_61 = arith.constant 0 : i32
    %88 = arith.addi %4, %c0_i32_61 : i32
    %c1_i32_62 = arith.constant 1 : i32
    %89 = arith.addi %88, %c1_i32_62 : i32
    %c0_63 = arith.constant 0 : index
    %90 = arith.index_cast %89 : i32 to index
    %c2_64 = arith.constant 2 : index
    %c0_65 = arith.constant 0 : index
    %91 = vector.load %arg2[%c0_63, %90, %c2_64, %c0_65] : memref<1x18x18x4xbf16, #tpu.memory_space<vmem>>, vector<1x8x16x4xbf16>
    %92 = vector.shape_cast %91 : vector<1x8x16x4xbf16> to vector<8x16x4xbf16>
    %93 = vector.shape_cast %92 : vector<8x16x4xbf16> to vector<128x4xbf16>
    %c7 = arith.constant 7 : index
    %c0_66 = arith.constant 0 : index
    %c0_67 = arith.constant 0 : index
    %94 = vector.load %arg3[%c7, %c0_66, %c0_67] : memref<16x4x8xbf16, #tpu.memory_space<vmem>>, vector<1x4x8xbf16>
    %95 = vector.shape_cast %94 : vector<1x4x8xbf16> to vector<4x8xbf16>
    %cst_68 = arith.constant dense<0.000000e+00> : vector<128x8xf32>
    %96 = tpu.matmul %93, %95, %cst_68 {dimension_numbers = #tpu.dot_dimension_numbers<[1], [0], [0], [1], [0, 0, 1, 1], [], []>} : vector<128x4xbf16>, vector<4x8xbf16>, vector<128x8xf32> -> vector<128x8xf32>
    %97 = arith.addf %87, %96 : vector<128x8xf32>
    %cst_69 = arith.constant dense<0.000000e+00> : vector<8xf32>
    %98 = vector.multi_reduction <add>, %97, %cst_69 [0] : vector<128x8xf32> to vector<8xf32>
    %99 = vector.shape_cast %98 : vector<8xf32> to vector<1x8xf32>
    %100 = arith.addf %50, %99 : vector<1x8xf32>
    %101 = arith.mulf %97, %97 : vector<128x8xf32>
    %cst_70 = arith.constant dense<0.000000e+00> : vector<8xf32>
    %102 = vector.multi_reduction <add>, %101, %cst_70 [0] : vector<128x8xf32> to vector<8xf32>
    %103 = vector.shape_cast %102 : vector<8xf32> to vector<1x8xf32>
    %104 = arith.addf %54, %103 : vector<1x8xf32>
    %105 = vector.shape_cast %97 : vector<128x8xf32> to vector<8x16x8xf32>
    %106 = arith.truncf %105 : vector<8x16x8xf32> to vector<8x16x8xbf16>
    %107 = tpu.concatenate %56, %106 in 2 : vector<8x16x8xbf16>, vector<8x16x8xbf16> -> vector<8x16x16xbf16>
    %c0_71 = arith.constant 0 : index
    %c0_72 = arith.constant 0 : index
    %c0_73 = arith.constant 0 : index
    %c0_74 = arith.constant 0 : index
    %c0_75 = arith.constant 0 : index
    %108 = vector.load %arg4[%c0_71, %c0_72, %c0_73, %c0_74, %c0_75] : memref<1x8x2x16x16xbf16, #tpu.memory_space<vmem>>, vector<1x8x1x16x16xbf16>
    %109 = vector.shape_cast %108 : vector<1x8x1x16x16xbf16> to vector<8x16x16xbf16>
    %110 = vector.shape_cast %107 : vector<8x16x16xbf16> to vector<1x8x1x16x16xbf16>
    tpu.vector_store %arg4[%c0_71, %c0_72, %c0_73, %c0_74, %c0_75], %110 {strides = array<i32>} : memref<1x8x2x16x16xbf16, #tpu.memory_space<vmem>>, vector<1x8x1x16x16xbf16>,
    %cst_76 = arith.constant 0.000000e+00 : f32
    %111 = vector.broadcast %cst_76 : f32 to vector<128x8xf32>
    %c1_i32_77 = arith.constant 1 : i32
    %112 = arith.addi %4, %c1_i32_77 : i32
    %c0_i32_78 = arith.constant 0 : i32
    %113 = arith.addi %112, %c0_i32_78 : i32
    %c0_79 = arith.constant 0 : index
    %114 = arith.index_cast %113 : i32 to index
    %c0_80 = arith.constant 0 : index
    %c0_81 = arith.constant 0 : index
    %115 = vector.load %arg2[%c0_79, %114, %c0_80, %c0_81] : memref<1x18x18x4xbf16, #tpu.memory_space<vmem>>, vector<1x8x16x4xbf16>
    %116 = vector.shape_cast %115 : vector<1x8x16x4xbf16> to vector<8x16x4xbf16>
    %117 = vector.shape_cast %116 : vector<8x16x4xbf16> to vector<128x4xbf16>
    %c8 = arith.constant 8 : index
    %c0_82 = arith.constant 0 : index
    %c0_83 = arith.constant 0 : index
    %118 = vector.load %arg3[%c8, %c0_82, %c0_83] : memref<16x4x8xbf16, #tpu.memory_space<vmem>>, vector<1x4x8xbf16>
    %119 = vector.shape_cast %118 : vector<1x4x8xbf16> to vector<4x8xbf16>
    %cst_84 = arith.constant dense<0.000000e+00> : vector<128x8xf32>
    %120 = tpu.matmul %117, %119, %cst_84 {dimension_numbers = #tpu.dot_dimension_numbers<[1], [0], [0], [1], [0, 0, 1, 1], [], []>} : vector<128x4xbf16>, vector<4x8xbf16>, vector<128x8xf32> -> vector<128x8xf32>
    %121 = arith.addf %111, %120 : vector<128x8xf32>
    %c1_i32_85 = arith.constant 1 : i32
    %122 = arith.addi %4, %c1_i32_85 : i32
    %c0_i32_86 = arith.constant 0 : i32
    %123 = arith.addi %122, %c0_i32_86 : i32
    %c0_87 = arith.constant 0 : index
    %124 = arith.index_cast %123 : i32 to index
    %c1_88 = arith.constant 1 : index
    %c0_89 = arith.constant 0 : index
    %125 = vector.load %arg2[%c0_87, %124, %c1_88, %c0_89] : memref<1x18x18x4xbf16, #tpu.memory_space<vmem>>, vector<1x8x16x4xbf16>
    %126 = vector.shape_cast %125 : vector<1x8x16x4xbf16> to vector<8x16x4xbf16>
    %127 = vector.shape_cast %126 : vector<8x16x4xbf16> to vector<128x4xbf16>
    %c9 = arith.constant 9 : index
    %c0_90 = arith.constant 0 : index
    %c0_91 = arith.constant 0 : index
    %128 = vector.load %arg3[%c9, %c0_90, %c0_91] : memref<16x4x8xbf16, #tpu.memory_space<vmem>>, vector<1x4x8xbf16>
    %129 = vector.shape_cast %128 : vector<1x4x8xbf16> to vector<4x8xbf16>
    %cst_92 = arith.constant dense<0.000000e+00> : vector<128x8xf32>
    %130 = tpu.matmul %127, %129, %cst_92 {dimension_numbers = #tpu.dot_dimension_numbers<[1], [0], [0], [1], [0, 0, 1, 1], [], []>} : vector<128x4xbf16>, vector<4x8xbf16>, vector<128x8xf32> -> vector<128x8xf32>
    %131 = arith.addf %121, %130 : vector<128x8xf32>
    %c1_i32_93 = arith.constant 1 : i32
    %132 = arith.addi %4, %c1_i32_93 : i32
    %c1_i32_94 = arith.constant 1 : i32
    %133 = arith.addi %132, %c1_i32_94 : i32
    %c0_95 = arith.constant 0 : index
    %134 = arith.index_cast %133 : i32 to index
    %c0_96 = arith.constant 0 : index
    %c0_97 = arith.constant 0 : index
    %135 = vector.load %arg2[%c0_95, %134, %c0_96, %c0_97] : memref<1x18x18x4xbf16, #tpu.memory_space<vmem>>, vector<1x8x16x4xbf16>
    %136 = vector.shape_cast %135 : vector<1x8x16x4xbf16> to vector<8x16x4xbf16>
    %137 = vector.shape_cast %136 : vector<8x16x4xbf16> to vector<128x4xbf16>
    %c10 = arith.constant 10 : index
    %c0_98 = arith.constant 0 : index
    %c0_99 = arith.constant 0 : index
    %138 = vector.load %arg3[%c10, %c0_98, %c0_99] : memref<16x4x8xbf16, #tpu.memory_space<vmem>>, vector<1x4x8xbf16>
    %139 = vector.shape_cast %138 : vector<1x4x8xbf16> to vector<4x8xbf16>
    %cst_100 = arith.constant dense<0.000000e+00> : vector<128x8xf32>
    %140 = tpu.matmul %137, %139, %cst_100 {dimension_numbers = #tpu.dot_dimension_numbers<[1], [0], [0], [1], [0, 0, 1, 1], [], []>} : vector<128x4xbf16>, vector<4x8xbf16>, vector<128x8xf32> -> vector<128x8xf32>
    %141 = arith.addf %131, %140 : vector<128x8xf32>
    %c1_i32_101 = arith.constant 1 : i32
    %142 = arith.addi %4, %c1_i32_101 : i32
    %c1_i32_102 = arith.constant 1 : i32
    %143 = arith.addi %142, %c1_i32_102 : i32
    %c0_103 = arith.constant 0 : index
    %144 = arith.index_cast %143 : i32 to index
    %c1_104 = arith.constant 1 : index
    %c0_105 = arith.constant 0 : index
    %145 = vector.load %arg2[%c0_103, %144, %c1_104, %c0_105] : memref<1x18x18x4xbf16, #tpu.memory_space<vmem>>, vector<1x8x16x4xbf16>
    %146 = vector.shape_cast %145 : vector<1x8x16x4xbf16> to vector<8x16x4xbf16>
    %147 = vector.shape_cast %146 : vector<8x16x4xbf16> to vector<128x4xbf16>
    %c11 = arith.constant 11 : index
    %c0_106 = arith.constant 0 : index
    %c0_107 = arith.constant 0 : index
    %148 = vector.load %arg3[%c11, %c0_106, %c0_107] : memref<16x4x8xbf16, #tpu.memory_space<vmem>>, vector<1x4x8xbf16>
    %149 = vector.shape_cast %148 : vector<1x4x8xbf16> to vector<4x8xbf16>
    %cst_108 = arith.constant dense<0.000000e+00> : vector<128x8xf32>
    %150 = tpu.matmul %147, %149, %cst_108 {dimension_numbers = #tpu.dot_dimension_numbers<[1], [0], [0], [1], [0, 0, 1, 1], [], []>} : vector<128x4xbf16>, vector<4x8xbf16>, vector<128x8xf32> -> vector<128x8xf32>
    %151 = arith.addf %141, %150 : vector<128x8xf32>
    %cst_109 = arith.constant dense<0.000000e+00> : vector<8xf32>
    %152 = vector.multi_reduction <add>, %151, %cst_109 [0] : vector<128x8xf32> to vector<8xf32>
    %153 = vector.shape_cast %152 : vector<8xf32> to vector<1x8xf32>
    %154 = arith.addf %100, %153 : vector<1x8xf32>
    %155 = arith.mulf %151, %151 : vector<128x8xf32>
    %cst_110 = arith.constant dense<0.000000e+00> : vector<8xf32>
    %156 = vector.multi_reduction <add>, %155, %cst_110 [0] : vector<128x8xf32> to vector<8xf32>
    %157 = vector.shape_cast %156 : vector<8xf32> to vector<1x8xf32>
    %158 = arith.addf %104, %157 : vector<1x8xf32>
    %159 = vector.shape_cast %151 : vector<128x8xf32> to vector<8x16x8xf32>
    %160 = arith.truncf %159 : vector<8x16x8xf32> to vector<8x16x8xbf16>
    %cst_111 = arith.constant 0.000000e+00 : f32
    %161 = vector.broadcast %cst_111 : f32 to vector<128x8xf32>
    %c1_i32_112 = arith.constant 1 : i32
    %162 = arith.addi %4, %c1_i32_112 : i32
    %c0_i32_113 = arith.constant 0 : i32
    %163 = arith.addi %162, %c0_i32_113 : i32
    %c0_114 = arith.constant 0 : index
    %164 = arith.index_cast %163 : i32 to index
    %c1_115 = arith.constant 1 : index
    %c0_116 = arith.constant 0 : index
    %165 = vector.load %arg2[%c0_114, %164, %c1_115, %c0_116] : memref<1x18x18x4xbf16, #tpu.memory_space<vmem>>, vector<1x8x16x4xbf16>
    %166 = vector.shape_cast %165 : vector<1x8x16x4xbf16> to vector<8x16x4xbf16>
    %167 = vector.shape_cast %166 : vector<8x16x4xbf16> to vector<128x4xbf16>
    %c12 = arith.constant 12 : index
    %c0_117 = arith.constant 0 : index
    %c0_118 = arith.constant 0 : index
    %168 = vector.load %arg3[%c12, %c0_117, %c0_118] : memref<16x4x8xbf16, #tpu.memory_space<vmem>>, vector<1x4x8xbf16>
    %169 = vector.shape_cast %168 : vector<1x4x8xbf16> to vector<4x8xbf16>
    %cst_119 = arith.constant dense<0.000000e+00> : vector<128x8xf32>
    %170 = tpu.matmul %167, %169, %cst_119 {dimension_numbers = #tpu.dot_dimension_numbers<[1], [0], [0], [1], [0, 0, 1, 1], [], []>} : vector<128x4xbf16>, vector<4x8xbf16>, vector<128x8xf32> -> vector<128x8xf32>
    %171 = arith.addf %161, %170 : vector<128x8xf32>
    %c1_i32_120 = arith.constant 1 : i32
    %172 = arith.addi %4, %c1_i32_120 : i32
    %c0_i32_121 = arith.constant 0 : i32
    %173 = arith.addi %172, %c0_i32_121 : i32
    %c0_122 = arith.constant 0 : index
    %174 = arith.index_cast %173 : i32 to index
    %c2_123 = arith.constant 2 : index
    %c0_124 = arith.constant 0 : index
    %175 = vector.load %arg2[%c0_122, %174, %c2_123, %c0_124] : memref<1x18x18x4xbf16, #tpu.memory_space<vmem>>, vector<1x8x16x4xbf16>
    %176 = vector.shape_cast %175 : vector<1x8x16x4xbf16> to vector<8x16x4xbf16>
    %177 = vector.shape_cast %176 : vector<8x16x4xbf16> to vector<128x4xbf16>
    %c13 = arith.constant 13 : index
    %c0_125 = arith.constant 0 : index
    %c0_126 = arith.constant 0 : index
    %178 = vector.load %arg3[%c13, %c0_125, %c0_126] : memref<16x4x8xbf16, #tpu.memory_space<vmem>>, vector<1x4x8xbf16>
    %179 = vector.shape_cast %178 : vector<1x4x8xbf16> to vector<4x8xbf16>
    %cst_127 = arith.constant dense<0.000000e+00> : vector<128x8xf32>
    %180 = tpu.matmul %177, %179, %cst_127 {dimension_numbers = #tpu.dot_dimension_numbers<[1], [0], [0], [1], [0, 0, 1, 1], [], []>} : vector<128x4xbf16>, vector<4x8xbf16>, vector<128x8xf32> -> vector<128x8xf32>
    %181 = arith.addf %171, %180 : vector<128x8xf32>
    %c1_i32_128 = arith.constant 1 : i32
    %182 = arith.addi %4, %c1_i32_128 : i32
    %c1_i32_129 = arith.constant 1 : i32
    %183 = arith.addi %182, %c1_i32_129 : i32
    %c0_130 = arith.constant 0 : index
    %184 = arith.index_cast %183 : i32 to index
    %c1_131 = arith.constant 1 : index
    %c0_132 = arith.constant 0 : index
    %185 = vector.load %arg2[%c0_130, %184, %c1_131, %c0_132] : memref<1x18x18x4xbf16, #tpu.memory_space<vmem>>, vector<1x8x16x4xbf16>
    %186 = vector.shape_cast %185 : vector<1x8x16x4xbf16> to vector<8x16x4xbf16>
    %187 = vector.shape_cast %186 : vector<8x16x4xbf16> to vector<128x4xbf16>
    %c14 = arith.constant 14 : index
    %c0_133 = arith.constant 0 : index
    %c0_134 = arith.constant 0 : index
    %188 = vector.load %arg3[%c14, %c0_133, %c0_134] : memref<16x4x8xbf16, #tpu.memory_space<vmem>>, vector<1x4x8xbf16>
    %189 = vector.shape_cast %188 : vector<1x4x8xbf16> to vector<4x8xbf16>
    %cst_135 = arith.constant dense<0.000000e+00> : vector<128x8xf32>
    %190 = tpu.matmul %187, %189, %cst_135 {dimension_numbers = #tpu.dot_dimension_numbers<[1], [0], [0], [1], [0, 0, 1, 1], [], []>} : vector<128x4xbf16>, vector<4x8xbf16>, vector<128x8xf32> -> vector<128x8xf32>
    %191 = arith.addf %181, %190 : vector<128x8xf32>
    %c1_i32_136 = arith.constant 1 : i32
    %192 = arith.addi %4, %c1_i32_136 : i32
    %c1_i32_137 = arith.constant 1 : i32
    %193 = arith.addi %192, %c1_i32_137 : i32
    %c0_138 = arith.constant 0 : index
    %194 = arith.index_cast %193 : i32 to index
    %c2_139 = arith.constant 2 : index
    %c0_140 = arith.constant 0 : index
    %195 = vector.load %arg2[%c0_138, %194, %c2_139, %c0_140] : memref<1x18x18x4xbf16, #tpu.memory_space<vmem>>, vector<1x8x16x4xbf16>
    %196 = vector.shape_cast %195 : vector<1x8x16x4xbf16> to vector<8x16x4xbf16>
    %197 = vector.shape_cast %196 : vector<8x16x4xbf16> to vector<128x4xbf16>
    %c15 = arith.constant 15 : index
    %c0_141 = arith.constant 0 : index
    %c0_142 = arith.constant 0 : index
    %198 = vector.load %arg3[%c15, %c0_141, %c0_142] : memref<16x4x8xbf16, #tpu.memory_space<vmem>>, vector<1x4x8xbf16>
    %199 = vector.shape_cast %198 : vector<1x4x8xbf16> to vector<4x8xbf16>
    %cst_143 = arith.constant dense<0.000000e+00> : vector<128x8xf32>
    %200 = tpu.matmul %197, %199, %cst_143 {dimension_numbers = #tpu.dot_dimension_numbers<[1], [0], [0], [1], [0, 0, 1, 1], [], []>} : vector<128x4xbf16>, vector<4x8xbf16>, vector<128x8xf32> -> vector<128x8xf32>
    %201 = arith.addf %191, %200 : vector<128x8xf32>
    %cst_144 = arith.constant dense<0.000000e+00> : vector<8xf32>
    %202 = vector.multi_reduction <add>, %201, %cst_144 [0] : vector<128x8xf32> to vector<8xf32>
    %203 = vector.shape_cast %202 : vector<8xf32> to vector<1x8xf32>
    %204 = arith.addf %154, %203 : vector<1x8xf32>
    %205 = arith.mulf %201, %201 : vector<128x8xf32>
    %cst_145 = arith.constant dense<0.000000e+00> : vector<8xf32>
    %206 = vector.multi_reduction <add>, %205, %cst_145 [0] : vector<128x8xf32> to vector<8xf32>
    %207 = vector.shape_cast %206 : vector<8xf32> to vector<1x8xf32>
    %208 = arith.addf %158, %207 : vector<1x8xf32>
    %209 = vector.shape_cast %201 : vector<128x8xf32> to vector<8x16x8xf32>
    %210 = arith.truncf %209 : vector<8x16x8xf32> to vector<8x16x8xbf16>
    %211 = tpu.concatenate %160, %210 in 2 : vector<8x16x8xbf16>, vector<8x16x8xbf16> -> vector<8x16x16xbf16>
    %c0_146 = arith.constant 0 : index
    %c0_147 = arith.constant 0 : index
    %c1_148 = arith.constant 1 : index
    %c0_149 = arith.constant 0 : index
    %c0_150 = arith.constant 0 : index
    %212 = vector.load %arg4[%c0_146, %c0_147, %c1_148, %c0_149, %c0_150] : memref<1x8x2x16x16xbf16, #tpu.memory_space<vmem>>, vector<1x8x1x16x16xbf16>
    %213 = vector.shape_cast %212 : vector<1x8x1x16x16xbf16> to vector<8x16x16xbf16>
    %214 = vector.shape_cast %211 : vector<8x16x16xbf16> to vector<1x8x1x16x16xbf16>
    tpu.vector_store %arg4[%c0_146, %c0_147, %c1_148, %c0_149, %c0_150], %214 {strides = array<i32>} : memref<1x8x2x16x16xbf16, #tpu.memory_space<vmem>>, vector<1x8x1x16x16xbf16>,
    %c0_151 = arith.constant 0 : index
    %c0_152 = arith.constant 0 : index
    %c0_153 = arith.constant 0 : index
    %215 = vector.load %arg5[%c0_151, %c0_152, %c0_153] : memref<1x1x8xf32, #tpu.memory_space<vmem>>, vector<1x1x8xf32>
    %216 = vector.shape_cast %215 : vector<1x1x8xf32> to vector<1x8xf32>
    %217 = arith.addf %216, %204 : vector<1x8xf32>
    %c0_154 = arith.constant 0 : index
    %c0_155 = arith.constant 0 : index
    %c0_156 = arith.constant 0 : index
    %218 = vector.load %arg5[%c0_154, %c0_155, %c0_156] : memref<1x1x8xf32, #tpu.memory_space<vmem>>, vector<1x1x8xf32>
    %219 = vector.shape_cast %218 : vector<1x1x8xf32> to vector<1x8xf32>
    %220 = vector.shape_cast %217 : vector<1x8xf32> to vector<1x1x8xf32>
    tpu.vector_store %arg5[%c0_154, %c0_155, %c0_156], %220 {strides = array<i32>} : memref<1x1x8xf32, #tpu.memory_space<vmem>>, vector<1x1x8xf32>,
    %c0_157 = arith.constant 0 : index
    %c0_158 = arith.constant 0 : index
    %c0_159 = arith.constant 0 : index
    %221 = vector.load %arg6[%c0_157, %c0_158, %c0_159] : memref<1x1x8xf32, #tpu.memory_space<vmem>>, vector<1x1x8xf32>
    %222 = vector.shape_cast %221 : vector<1x1x8xf32> to vector<1x8xf32>
    %223 = arith.addf %222, %208 : vector<1x8xf32>
    %c0_160 = arith.constant 0 : index
    %c0_161 = arith.constant 0 : index
    %c0_162 = arith.constant 0 : index
    %224 = vector.load %arg6[%c0_160, %c0_161, %c0_162] : memref<1x1x8xf32, #tpu.memory_space<vmem>>, vector<1x1x8xf32>
    %225 = vector.shape_cast %224 : vector<1x1x8xf32> to vector<1x8xf32>
    %226 = vector.shape_cast %223 : vector<1x8xf32> to vector<1x1x8xf32>
    tpu.vector_store %arg6[%c0_160, %c0_161, %c0_162], %226 {strides = array<i32>} : memref<1x1x8xf32, #tpu.memory_space<vmem>>, vector<1x1x8xf32>,
    return
  }
  func.func @transform_0(%arg0: i32, %arg1: i32) -> (i32, i32, i32, i32) {
    %c0_i32 = arith.constant 0 : i32
    %c0_i32_0 = arith.constant 0 : i32
    %c0_i32_1 = arith.constant 0 : i32
    %c0_i32_2 = arith.constant 0 : i32
    return %arg0, %c0_i32, %c0_i32_0, %c0_i32_1 : i32, i32, i32, i32
  }
  func.func @transform_1(%arg0: i32, %arg1: i32) -> (i32, i32, i32) {
    %c0_i32 = arith.constant 0 : i32
    %c0_i32_0 = arith.constant 0 : i32
    %c0_i32_1 = arith.constant 0 : i32
    %c0_i32_2 = arith.constant 0 : i32
    return %c0_i32, %c0_i32_0, %c0_i32_1 : i32, i32, i32
  }
  func.func @transform_2(%arg0: i32, %arg1: i32) -> (i32, i32, i32, i32, i32) {
    %c0_i32 = arith.constant 0 : i32
    %c0_i32_0 = arith.constant 0 : i32
    %c0_i32_1 = arith.constant 0 : i32
    %c0_i32_2 = arith.constant 0 : i32
    return %arg0, %arg1, %c0_i32, %c0_i32_0, %c0_i32_1 : i32, i32, i32, i32, i32
  }
  func.func @transform_3(%arg0: i32, %arg1: i32) -> (i32, i32, i32) {
    %c0_i32 = arith.constant 0 : i32
    %c0_i32_0 = arith.constant 0 : i32
    %c0_i32_1 = arith.constant 0 : i32
    return %arg0, %c0_i32, %c0_i32_0 : i32, i32, i32
  }
  func.func @transform_4(%arg0: i32, %arg1: i32) -> (i32, i32, i32) {
    %c0_i32 = arith.constant 0 : i32
    %c0_i32_0 = arith.constant 0 : i32
    %c0_i32_1 = arith.constant 0 : i32
    return %arg0, %c0_i32, %c0_i32_0 : i32, i32, i32
  }
}

module attributes {stable_mosaic.version = 11 : i64} {
  func.func @_bn_relu_nchw_kernel(%arg0: i32, %arg1: i32, %arg2: i32, %arg3: memref<1x512x8xbf16, #tpu.memory_space<vmem>>, %arg4: memref<1x8xf32, #tpu.memory_space<vmem>>, %arg5: memref<1x8xf32, #tpu.memory_space<vmem>>, %arg6: memref<1x8x512xf32, #tpu.memory_space<vmem>>) attributes {dimension_semantics = [#tpu.dimension_semantics<parallel>, #tpu.dimension_semantics<parallel>, #tpu.dimension_semantics<parallel>], iteration_bounds = array<i64: 2, 1, 2>, scalar_prefetch = 0 : i64, scratch_operands = 0 : i64, tpu.core_type = #tpu.core_type<tc>, window_params = [{transform_indices = @transform_0, window_bounds = array<i64: 1, 512, 8>}, {transform_indices = @transform_1, window_bounds = array<i64: 1, 8>}, {transform_indices = @transform_2, window_bounds = array<i64: 1, 8>}, {transform_indices = @transform_3, window_bounds = array<i64: 1, 8, 512>}]} {
    %c0 = arith.constant 0 : index
    %c0_0 = arith.constant 0 : index
    %c0_1 = arith.constant 0 : index
    %0 = vector.load %arg3[%c0, %c0_0, %c0_1] : memref<1x512x8xbf16, #tpu.memory_space<vmem>>, vector<1x512x8xbf16>
    %1 = vector.shape_cast %0 : vector<1x512x8xbf16> to vector<512x8xbf16>
    %2 = arith.extf %1 : vector<512x8xbf16> to vector<512x8xf32>
    %c0_2 = arith.constant 0 : index
    %c0_3 = arith.constant 0 : index
    %3 = vector.load %arg4[%c0_2, %c0_3] : memref<1x8xf32, #tpu.memory_space<vmem>>, vector<1x8xf32>
    %4 = vector.broadcast %3 : vector<1x8xf32> to vector<512x8xf32>
    %5 = arith.mulf %2, %4 : vector<512x8xf32>
    %c0_4 = arith.constant 0 : index
    %c0_5 = arith.constant 0 : index
    %6 = vector.load %arg5[%c0_4, %c0_5] : memref<1x8xf32, #tpu.memory_space<vmem>>, vector<1x8xf32>
    %7 = vector.broadcast %6 : vector<1x8xf32> to vector<512x8xf32>
    %8 = arith.addf %5, %7 : vector<512x8xf32>
    %cst = arith.constant 0.000000e+00 : f32
    %9 = vector.broadcast %cst : f32 to vector<512x8xf32>
    %10 = arith.maximumf %8, %9 : vector<512x8xf32>
    %11 = tpu.transpose %10, [1, 0] : vector<512x8xf32> -> vector<8x512xf32>
    %c0_6 = arith.constant 0 : index
    %c0_7 = arith.constant 0 : index
    %c0_8 = arith.constant 0 : index
    %12 = vector.load %arg6[%c0_6, %c0_7, %c0_8] : memref<1x8x512xf32, #tpu.memory_space<vmem>>, vector<1x8x512xf32>
    %13 = vector.shape_cast %12 : vector<1x8x512xf32> to vector<8x512xf32>
    %14 = vector.shape_cast %11 : vector<8x512xf32> to vector<1x8x512xf32>
    tpu.vector_store %arg6[%c0_6, %c0_7, %c0_8], %14 {strides = array<i32>} : memref<1x8x512xf32, #tpu.memory_space<vmem>>, vector<1x8x512xf32>,
    return
  }
  func.func @transform_0(%arg0: i32, %arg1: i32, %arg2: i32) -> (i32, i32, i32) {
    %c0_i32 = arith.constant 0 : i32
    return %arg0, %arg2, %arg1 : i32, i32, i32
  }
  func.func @transform_1(%arg0: i32, %arg1: i32, %arg2: i32) -> (i32, i32) {
    %c0_i32 = arith.constant 0 : i32
    %c0_i32_0 = arith.constant 0 : i32
    return %c0_i32, %arg1 : i32, i32
  }
  func.func @transform_2(%arg0: i32, %arg1: i32, %arg2: i32) -> (i32, i32) {
    %c0_i32 = arith.constant 0 : i32
    %c0_i32_0 = arith.constant 0 : i32
    return %c0_i32, %arg1 : i32, i32
  }
  func.func @transform_3(%arg0: i32, %arg1: i32, %arg2: i32) -> (i32, i32, i32) {
    %c0_i32 = arith.constant 0 : i32
    return %arg0, %arg1, %arg2 : i32, i32, i32
  }
}

</mosaic_0001>

<bundles_post_ra>
// kernel: up_conv_forward.3
= control target key start
LH: loop header
LB: loop body
LE: loop exit
PB: predicated region body
PF: predicated region fallthrough
CT: control target
= control target key end

     0   :  { %s1144_s12 = smov 0   ;;  %s1146_s13 = smov 0   ;;  %s1530_s0 = inlined_call_operand.vmem [shape: bf16[2,1024,8], index: 0, kind: input, shape index: {}]   ;;  %s1531_s1 = inlined_call_operand.vmem [shape: f32[1,8], index: 1, kind: input, shape index: {}]   ;;  %s1532_s2 = inlined_call_operand.vmem [shape: f32[1,8], index: 2, kind: input, shape index: {}]   ;;  %s1533_s3 = inlined_call_operand.vmem [shape: f32[2,8,1024], index: 3, kind: output, shape index: {}]  }
   0x1   :  { %s1148_s14 = smov 0   ;;  %s1150_s15 = smov 0  }
   0x2   :  { %s1152_s16 = smov 0  }
   0x3 LB: > { %s25_s17 = sadd.s32 1, %s1114_s14  ;;  %s32_s18 = sadd.s32 1, %s1118_s15  ;;  %s1122_s16 = sphi %s1152_s16, %s13_s16   ;;  %s1118_s15 = sphi %s1150_s15, %s1537_s15   ;;  %s1114_s14 = sphi %s1148_s14, %s1536_s14   ;;  %s1110_s13 = sphi %s1146_s13, %s1535_s13   ;;  %s1106_s12 = sphi %s1144_s12, %s1534_s12  }
   0x4   : > { %p26_p0 = scmp.ge.s32.totalorder %s25_s17, 2  ;;  %p874_p1 = scmp.ge.s32.totalorder %s1122_s16, 1 }
   0x5   : > { %p188_p2 = scmp.lt.s32.totalorder %s1122_s16, 5 }
   0x6   : > { %s1539_s17 = smov (%p26_p0, %s25_s17), 0  ;;  %s1541_s18 = smov (!%p26_p0, %s32_s18), %s1118_s15 }
   0x7   : > { %p189_p3 = pnand %p874_p1, %p188_p2  ;;  %p34_p4 = scmp.ge.s32.totalorder %s1541_s18, 2 }
   0x8   : > { %s875_s19 = sshll.u32 (!%p189_p3), %s1106_s12, 6  ;;  %p234_p5 = scmp.lt.s32.totalorder (!%p189_p3), %s1110_s13, 1 }
   0x9   : > { %s1543_s18 = smov (%p34_p4, %s1541_s18), 0  ;;  %192 = sbr.rel (%p189_p3) target bundleno = 219 (0xdb), region = 32 }
   0xa   : > { %p236_p6 = scmp.lt.s32.totalorder (!%p189_p3), %s875_s19, 127  ;;  %s878_s30 = sshll.u32 (!%p189_p3), %s1106_s12, 2 }
   0xb   : > { %p257_p7 = scmp.lt.s32.totalorder (!%p189_p3), %s878_s30, 7 }
   0xe   : > { %s1545_s13 = smov (!%p234_p5, %s1110_s13), 1  ;;  %s1547_s19 = smov (!%p236_p6, %s875_s19), 127  ;;  %v1188_v0 = vld [vmem:[%s1531_s1] ss:$0 sm:$0xff] }
   0xf   : > { %s876_s20 = sshll.u32 %s1545_s13, 7  ;;  %v1197_v9 = vld [vmem:[%s1532_s2] ss:$0 sm:$0xff]  ;;  %s1549_s30 = smov (!%p257_p7, %s878_s30), 7 }
  0x10   : > { %s242_s21 = sadd.s32 %s876_s20, %s1547_s19  ;;  %s879_s4 = sshll.u32 %s1545_s13, 3 }
  0x11   : > { %s877_s22 = sshll.u32 %s242_s21, 2  ;;  %s262_s5 = sadd.s32 %s879_s4, %s1549_s30 }
  0x12   : > { %s1183_s25 = scalar_lea.vmem %s1530_s0, %s877_s22  ;;  %s880_s6 = sshll.u32 %s262_s5, 3 }
  0x13   : > { %v1020_v1 = vld [vmem:[%s1183_s25 + $0x40] sm:$0xff]   ;;  %v1021_v3 = vld [vmem:[%s1183_s25 + $0x48] sm:$0xff]   ;;  %v1022_v24 = vld [vmem:[%s1183_s25 + $0x50] sm:$0xff]   ;;  %s264_s9 = scalar_lea.vmem %s1533_s3, %s880_s6 }
  0x14   : > { %v886_v2 = vld [vmem:[%s1183_s25] sm:$0xff]   ;;  %v919_v4 = vunpack.c.l.bf16 %v1020_v1  ;;  %v920_v6 = vunpack.c.h.bf16 %v1020_v1  ;;  %v1013_v8 = vld [vmem:[%s1183_s25 + $0x8] sm:$0xff]   ;;  %v923_v10 = vunpack.c.l.bf16 %v1021_v3  ;;  %v924_v12 = vunpack.c.h.bf16 %v1021_v3  ;;  %v1014_v25 = vld [vmem:[%s1183_s25 + $0x10] sm:$0xff]  }
  0x15   : > { %v887_v5 = vunpack.c.l.bf16 %v886_v2  ;;  %v888_v7 = vunpack.c.h.bf16 %v886_v2  ;;  %v891_v11 = vunpack.c.l.bf16 %v1013_v8  ;;  %v892_v13 = vunpack.c.h.bf16 %v1013_v8  ;;  %v1023_v40 = vld [vmem:[%s1183_s25 + $0x58] sm:$0xff]   ;;  %v1024_v46 = vld [vmem:[%s1183_s25 + $0x60] sm:$0xff]   ;;  %v1025_v52 = vld [vmem:[%s1183_s25 + $0x68] sm:$0xff]  }
  0x16   : > { %v417_v14 = vmul.f32 %v919_v4, %v1188_v0  ;;  %v418_v16 = vmul.f32 %v920_v6, %v1188_v0  ;;  %v419_v18 = vmul.f32 %v923_v10, %v1188_v0  ;;  %v420_v28 = vmul.f32 %v924_v12, %v1188_v0  ;;  %v1015_v41 = vld [vmem:[%s1183_s25 + $0x18] sm:$0xff]   ;;  %v1016_v47 = vld [vmem:[%s1183_s25 + $0x20] sm:$0xff]   ;;  %v1017_v57 = vld [vmem:[%s1183_s25 + $0x28] sm:$0xff]  }
  0x17   : > { %v401_v15 = vmul.f32 %v887_v5, %v1188_v0  ;;  %v402_v17 = vmul.f32 %v888_v7, %v1188_v0  ;;  %v403_v19 = vmul.f32 %v891_v11, %v1188_v0  ;;  %v404_v29 = vmul.f32 %v892_v13, %v1188_v0 }
  0x18   : > { %v488_v20 = vadd.f32 %v1197_v9, %v417_v14  ;;  %v489_v22 = vadd.f32 %v1197_v9, %v418_v16  ;;  %v490_v30 = vadd.f32 %v1197_v9, %v419_v18  ;;  %v927_v34 = vunpack.c.l.bf16 %v1022_v24 }
  0x19   : > { %v472_v21 = vadd.f32 %v1197_v9, %v401_v15  ;;  %v473_v23 = vadd.f32 %v1197_v9, %v402_v17  ;;  %v474_v31 = vadd.f32 %v1197_v9, %v403_v19  ;;  %v895_v35 = vunpack.c.l.bf16 %v1014_v25 }
  0x1a   : > { %v552_v26 = vmax.f32 %v488_v20, 0.0  ;;  %v553_v32 = vmax.f32 %v489_v22, 0.0  ;;  %v491_v36 = vadd.f32 %v1197_v9, %v420_v28  ;;  %v475_v37 = vadd.f32 %v1197_v9, %v404_v29 }
  0x1b   : > { %v536_v27 = vmax.f32 %v472_v21, 0.0  ;;  %v537_v33 = vmax.f32 %v473_v23, 0.0  ;;  %v928_v38 = vunpack.c.h.bf16 %v1022_v24  ;;  %v896_v39 = vunpack.c.h.bf16 %v1014_v25  ;;  %v1246_v25 = vld [vmem:[%s1183_s25 + $0x70] sm:$0xff]  }
  0x1c   : > { %632 = vxpose.xlu1.b32.start [1/16] (narrow) %v552_v26, 8  ;;  %v554_v42 = vmax.f32 %v490_v30, 0.0  ;;  %v538_v43 = vmax.f32 %v474_v31, 0.0  ;;  %v421_v44 = vmul.f32 %v927_v34, %v1188_v0  ;;  %v405_v45 = vmul.f32 %v895_v35, %v1188_v0 }
  0x1d   : > { %600 = vxpose.xlu0.b32.start [1/16] (narrow) %v536_v27, 8  ;;  %v555_v48 = vmax.f32 %v491_v36, 0.0  ;;  %v539_v49 = vmax.f32 %v475_v37, 0.0  ;;  %v931_v50 = vunpack.c.l.bf16 %v1023_v40  ;;  %v899_v51 = vunpack.c.l.bf16 %v1015_v41 }
  0x1e   : > { %v422_v53 = vmul.f32 %v928_v38, %v1188_v0  ;;  %v406_v54 = vmul.f32 %v896_v39, %v1188_v0  ;;  %v932_v55 = vunpack.c.h.bf16 %v1023_v40  ;;  %v900_v56 = vunpack.c.h.bf16 %v1015_v41  ;;  %v1273_v39 = vld [vmem:[%s1183_s25 + $0x30] sm:$0xff]   ;;  %v1276_v40 = vld [vmem:[%s1183_s25 + $0x78] sm:$0xff]   ;;  %v1036_v41 = vld [vmem:[%s1183_s25 + $0xc0] sm:$0xff]  }
  0x1f   : > { %v492_v58 = vadd.f32 %v1197_v9, %v421_v44  ;;  %v476_v59 = vadd.f32 %v1197_v9, %v405_v45  ;;  %v935_v60 = vunpack.c.l.bf16 %v1024_v46  ;;  %v903_v61 = vunpack.c.l.bf16 %v1016_v47 }
  0x20   : > { %633 = vxpose.xlu1.b32.cont [2/16] (narrow) %v553_v32, 8  ;;  %v936_v62 = vunpack.c.h.bf16 %v1024_v46  ;;  %v904_v63 = vunpack.c.h.bf16 %v1016_v47  ;;  %v939_v1 = vunpack.c.l.bf16 %v1025_v52  ;;  %v423_v2 = vmul.f32 %v931_v50, %v1188_v0  ;;  %v1288_v50 = vld [vmem:[%s1183_s25 + $0x38] sm:$0xff]  }
  0x21   : > { %601 = vxpose.xlu0.b32.cont [2/16] (narrow) %v537_v33, 8  ;;  %v407_v3 = vmul.f32 %v899_v51, %v1188_v0  ;;  %v907_v4 = vunpack.c.l.bf16 %v1017_v57  ;;  %v940_v5 = vunpack.c.h.bf16 %v1025_v52  ;;  %v493_v6 = vadd.f32 %v1197_v9, %v422_v53  ;;  %v1028_v51 = vld [vmem:[%s1183_s25 + $0x80] sm:$0xff]  }
  0x22   : > { %v477_v7 = vadd.f32 %v1197_v9, %v406_v54  ;;  %v424_v8 = vmul.f32 %v932_v55, %v1188_v0  ;;  %v408_v10 = vmul.f32 %v900_v56, %v1188_v0  ;;  %v556_v11 = vmax.f32 %v492_v58, 0.0  ;;  %v1037_v56 = vld [vmem:[%s1183_s25 + $0xc8] sm:$0xff]  }
  0x23   : > { %v540_v12 = vmax.f32 %v476_v59, 0.0  ;;  %v425_v13 = vmul.f32 %v935_v60, %v1188_v0  ;;  %v409_v14 = vmul.f32 %v903_v61, %v1188_v0  ;;  %v426_v15 = vmul.f32 %v936_v62, %v1188_v0 }
  0x24   : > { %634 = vxpose.xlu1.b32.cont [3/16] (narrow) %v554_v42, 8  ;;  %v410_v16 = vmul.f32 %v904_v63, %v1188_v0  ;;  %v427_v17 = vmul.f32 %v939_v1, %v1188_v0  ;;  %v908_v18 = vunpack.c.h.bf16 %v1017_v57  ;;  %v411_v19 = vmul.f32 %v907_v4, %v1188_v0  ;;  %v1029_v57 = vld [vmem:[%s1183_s25 + $0x88] sm:$0xff]  }
  0x25   : > { %602 = vxpose.xlu0.b32.cont [3/16] (narrow) %v538_v43, 8  ;;  %v428_v20 = vmul.f32 %v940_v5, %v1188_v0  ;;  %v557_v21 = vmax.f32 %v493_v6, 0.0  ;;  %v494_v22 = vadd.f32 %v1197_v9, %v423_v2  ;;  %v478_v23 = vadd.f32 %v1197_v9, %v407_v3 }
  0x26   : > { %v495_v24 = vadd.f32 %v1197_v9, %v424_v8  ;;  %v541_v26 = vmax.f32 %v477_v7, 0.0  ;;  %v479_v27 = vadd.f32 %v1197_v9, %v408_v10  ;;  %v1250_v28 = vadd.f32 %v1197_v9, %v425_v13 }
  0x27   : > { %v1253_v29 = vadd.f32 %v1197_v9, %v409_v14  ;;  %v1256_v30 = vadd.f32 %v1197_v9, %v426_v15  ;;  %v1259_v31 = vadd.f32 %v1197_v9, %v410_v16  ;;  %v1262_v32 = vadd.f32 %v1197_v9, %v427_v17  ;;  %v1038_v16 = vld [vmem:[%s1183_s25 + $0xd0] sm:$0xff]  }
  0x28   : > { %635 = vxpose.xlu1.b32.cont [4/16] (narrow) %v555_v48, 8  ;;  %v412_v33 = vmul.f32 %v908_v18, %v1188_v0  ;;  %v1266_v34 = vadd.f32 %v1197_v9, %v411_v19  ;;  %v1269_v35 = vadd.f32 %v1197_v9, %v428_v20  ;;  %v943_v36 = vunpack.c.l.bf16 %v1246_v25 }
  0x29   : > { %603 = vxpose.xlu0.b32.cont [4/16] (narrow) %v539_v49, 8  ;;  %v558_v37 = vmax.f32 %v494_v22, 0.0  ;;  %v542_v38 = vmax.f32 %v478_v23, 0.0  ;;  %v559_v42 = vmax.f32 %v495_v24, 0.0  ;;  %v543_v43 = vmax.f32 %v479_v27, 0.0 }
  0x2a   : > { %v560_v44 = vmax.f32 %v1250_v28, 0.0  ;;  %v544_v45 = vmax.f32 %v1253_v29, 0.0  ;;  %v561_v46 = vmax.f32 %v1256_v30, 0.0  ;;  %v545_v47 = vmax.f32 %v1259_v31, 0.0 }
  0x2b   : > { %v562_v48 = vmax.f32 %v1262_v32, 0.0  ;;  %v1285_v49 = vadd.f32 %v1197_v9, %v412_v33  ;;  %v546_v52 = vmax.f32 %v1266_v34, 0.0  ;;  %v563_v53 = vmax.f32 %v1269_v35, 0.0  ;;  %v1039_v33 = vld [vmem:[%s1183_s25 + $0xd8] sm:$0xff]  }
  0x2c   : > { %636 = vxpose.xlu1.b32.cont [5/16] (narrow) %v556_v11, 8  ;;  %v429_v54 = vmul.f32 %v943_v36, %v1188_v0  ;;  %v983_v55 = vunpack.c.l.bf16 %v1036_v41  ;;  %v911_v58 = vunpack.c.l.bf16 %v1273_v39  ;;  %v944_v59 = vunpack.c.h.bf16 %v1246_v25  ;;  %v1030_v25 = vld [vmem:[%s1183_s25 + $0x90] sm:$0xff]   ;;  %v1031_v36 = vld [vmem:[%s1183_s25 + $0x98] sm:$0xff]  }
  0x2d   : > { %604 = vxpose.xlu0.b32.cont [5/16] (narrow) %v540_v12, 8  ;;  %v912_v60 = vunpack.c.h.bf16 %v1273_v39  ;;  %v947_v61 = vunpack.c.l.bf16 %v1276_v40  ;;  %v915_v62 = vunpack.c.l.bf16 %v1288_v50  ;;  %v984_v63 = vunpack.c.h.bf16 %v1036_v41 }
  0x2e   : > { %v449_v1 = vmul.f32 %v983_v55, %v1188_v0  ;;  %v951_v2 = vunpack.c.l.bf16 %v1028_v51  ;;  %v952_v3 = vunpack.c.h.bf16 %v1028_v51  ;;  %v987_v4 = vunpack.c.l.bf16 %v1037_v56 }
  0x2f   : > { %v955_v5 = vunpack.c.l.bf16 %v1029_v57  ;;  %v988_v6 = vunpack.c.h.bf16 %v1037_v56  ;;  %v450_v10 = vmul.f32 %v984_v63, %v1188_v0  ;;  %v956_v11 = vunpack.c.h.bf16 %v1029_v57  ;;  %v1040_v63 = vld [vmem:[%s1183_s25 + $0xe0] sm:$0xff]  }
  0x30   : > { %637 = vxpose.xlu1.b32.cont [6/16] (narrow) %v557_v21, 8  ;;  %v1303_v7 = vadd.f32 %v1197_v9, %v449_v1  ;;  %v433_v8 = vmul.f32 %v951_v2, %v1188_v0  ;;  %v434_v12 = vmul.f32 %v952_v3, %v1188_v0  ;;  %v451_v13 = vmul.f32 %v987_v4, %v1188_v0 }
  0x31   : > { %605 = vxpose.xlu0.b32.cont [6/16] (narrow) %v541_v26, 8  ;;  %v435_v14 = vmul.f32 %v955_v5, %v1188_v0  ;;  %v452_v15 = vmul.f32 %v988_v6, %v1188_v0  ;;  %v948_v17 = vunpack.c.h.bf16 %v1276_v40  ;;  %v1317_v19 = vadd.f32 %v1197_v9, %v450_v10 }
  0x32   : > { %v1314_v18 = vadd.f32 %v1197_v9, %v433_v8  ;;  %v436_v20 = vmul.f32 %v956_v11, %v1188_v0  ;;  %v1321_v21 = vadd.f32 %v1197_v9, %v434_v12  ;;  %v1324_v22 = vadd.f32 %v1197_v9, %v451_v13  ;;  %v1041_v11 = vld [vmem:[%s1183_s25 + $0xe8] sm:$0xff]  }
  0x33   : > { %v1327_v23 = vadd.f32 %v1197_v9, %v435_v14  ;;  %v1330_v24 = vadd.f32 %v1197_v9, %v452_v15  ;;  %v1334_v26 = vadd.f32 %v1197_v9, %v429_v54  ;;  %v413_v27 = vmul.f32 %v911_v58, %v1188_v0  ;;  %v1033_v12 = vld [vmem:[%s1183_s25 + $0xa8] sm:$0xff]  }
  0x34   : > { %638 = vxpose.xlu1.b32.cont [7/16] (narrow) %v558_v37, 8  ;;  %v1338_v28 = vadd.f32 %v1197_v9, %v436_v20  ;;  %v991_v29 = vunpack.c.l.bf16 %v1038_v16  ;;  %v430_v37 = vmul.f32 %v944_v59, %v1188_v0  ;;  %v431_v39 = vmul.f32 %v947_v61, %v1188_v0 }
  0x35   : > { %606 = vxpose.xlu0.b32.cont [7/16] (narrow) %v542_v38, 8  ;;  %v414_v38 = vmul.f32 %v912_v60, %v1188_v0  ;;  %v916_v40 = vunpack.c.h.bf16 %v1288_v50  ;;  %v1347_v41 = vmul.f32 %v915_v62, %v1188_v0  ;;  %v992_v51 = vunpack.c.h.bf16 %v1038_v16 }
  0x36   : > { %v960_v54 = vunpack.c.h.bf16 %v1030_v25  ;;  %v995_v55 = vunpack.c.l.bf16 %v1039_v33  ;;  %v963_v56 = vunpack.c.l.bf16 %v1031_v36  ;;  %v996_v57 = vunpack.c.h.bf16 %v1039_v33 }
  0x37   : > { %v547_v1 = vmax.f32 %v1285_v49, 0.0  ;;  %v564_v49 = vmax.f32 %v1334_v26, 0.0  ;;  %v432_v6 = vmul.f32 %v948_v17, %v1188_v0  ;;  %v999_v10 = vunpack.c.l.bf16 %v1040_v63 }
  0x38   : > { %639 = vxpose.xlu1.b32.cont [8/16] (narrow) %v559_v42, 8  ;;  %v453_v42 = vmul.f32 %v991_v29, %v1188_v0  ;;  %v438_v50 = vmul.f32 %v960_v54, %v1188_v0  ;;  %v455_v60 = vmul.f32 %v995_v55, %v1188_v0  ;;  %v439_v61 = vmul.f32 %v963_v56, %v1188_v0 }
  0x39   : > { %607 = vxpose.xlu0.b32.cont [8/16] (narrow) %v543_v43, 8  ;;  %v959_v43 = vunpack.c.l.bf16 %v1030_v25  ;;  %v456_v62 = vmul.f32 %v996_v57, %v1188_v0  ;;  %v484_v13 = vadd.f32 %v1197_v9, %v413_v27  ;;  %v501_v14 = vadd.f32 %v1197_v9, %v430_v37 }
  0x3a   : > { %v1351_v58 = vadd.f32 %v1197_v9, %v453_v42  ;;  %v1373_v5 = vadd.f32 %v1197_v9, %v438_v50  ;;  %v1376_v30 = vadd.f32 %v1197_v9, %v455_v60  ;;  %v1379_v31 = vadd.f32 %v1197_v9, %v439_v61  ;;  %v1042_v42 = vld [vmem:[%s1183_s25 + $0xf0] sm:$0xff]   ;;  %v1043_v60 = vld [vmem:[%s1183_s25 + $0xf8] sm:$0xff]  }
  0x3b   : > { %v437_v59 = vmul.f32 %v959_v43, %v1188_v0  ;;  %v485_v15 = vadd.f32 %v1197_v9, %v414_v38  ;;  %v416_v16 = vmul.f32 %v916_v40, %v1188_v0  ;;  %v1401_v17 = vadd.f32 %v1197_v9, %v431_v39  ;;  %v1035_v61 = vld [vmem:[%s1183_s25 + $0xb8] sm:$0xff]  }
  0x3c   : > { %640 = vxpose.xlu1.b32.cont [9/16] (narrow) %v560_v44, 8  ;;  %v454_v44 = vmul.f32 %v992_v51, %v1188_v0  ;;  %v457_v20 = vmul.f32 %v999_v10, %v1188_v0  ;;  %v1000_v26 = vunpack.c.h.bf16 %v1040_v63  ;;  %v1003_v29 = vunpack.c.l.bf16 %v1041_v11 }
  0x3d   : > { %608 = vxpose.xlu0.b32.cont [9/16] (narrow) %v544_v45, 8  ;;  %v964_v45 = vunpack.c.h.bf16 %v1031_v36  ;;  %v1366_v2 = vadd.f32 %v1197_v9, %v437_v59  ;;  %v971_v33 = vunpack.c.l.bf16 %v1033_v12  ;;  %v1004_v36 = vunpack.c.h.bf16 %v1041_v11  ;;  %v1034_v59 = vld [vmem:[%s1183_s25 + $0xb0] sm:$0xff]  }
  0x3e   : > { %v1369_v3 = vadd.f32 %v1197_v9, %v454_v44  ;;  %v1405_v37 = vadd.f32 %v1197_v9, %v457_v20  ;;  %v458_v34 = vmul.f32 %v1000_v26, %v1188_v0  ;;  %v459_v38 = vmul.f32 %v1003_v29, %v1188_v0 }
  0x3f   : > { %v440_v4 = vmul.f32 %v964_v45, %v1188_v0  ;;  %v443_v39 = vmul.f32 %v971_v33, %v1188_v0  ;;  %v460_v40 = vmul.f32 %v1004_v36, %v1188_v0  ;;  %v548_v43 = vmax.f32 %v484_v13, 0.0 }
  0x40   : > { %641 = vxpose.xlu1.b32.cont [10/16] (narrow) %v561_v46, 8  ;;  %v1382_v46 = vadd.f32 %v1197_v9, %v456_v62  ;;  %v1420_v54 = vadd.f32 %v1197_v9, %v458_v34  ;;  %v1427_v57 = vadd.f32 %v1197_v9, %v459_v38  ;;  %v486_v44 = vadd.f32 %v1197_v9, %v1347_v41 }
  0x41   : > { %609 = vxpose.xlu0.b32.cont [10/16] (narrow) %v545_v47, 8  ;;  %v1032_v47 = vld [vmem:[%s1183_s25 + $0xa0] sm:$0xff]   ;;  %v1388_v8 = vadd.f32 %v1197_v9, %v440_v4  ;;  %v1430_v35 = vadd.f32 %v1197_v9, %v443_v39  ;;  %v1007_v50 = vunpack.c.l.bf16 %v1042_v42  ;;  %v565_v62 = vmax.f32 %v501_v14, 0.0 }
  0x42   : > { %v967_v25 = vunpack.c.l.bf16 %v1032_v47  ;;  %v968_v27 = vunpack.c.h.bf16 %v1032_v47  ;;  %v549_v63 = vmax.f32 %v485_v15, 0.0  ;;  %v487_v4 = vadd.f32 %v1197_v9, %v416_v16 }
  0x43   : > { %v566_v47 = vmax.f32 %v1401_v17, 0.0  ;;  %v461_v10 = vmul.f32 %v1007_v50, %v1188_v0  ;;  %v975_v11 = vunpack.c.l.bf16 %v1034_v59  ;;  %v1008_v41 = vunpack.c.h.bf16 %v1042_v42 }
  0x44   : > { %642 = vxpose.xlu1.b32.cont [11/16] (narrow) %v562_v48, 8  ;;  %v441_v32 = vmul.f32 %v967_v25, %v1188_v0  ;;  %v972_v48 = vunpack.c.h.bf16 %v1033_v12  ;;  %v976_v12 = vunpack.c.h.bf16 %v1034_v59  ;;  %v1011_v13 = vunpack.c.l.bf16 %v1043_v60 }
  0x45   : > { %610 = vxpose.xlu0.b32.cont [11/16] (narrow) %v546_v52, 8  ;;  %v442_v52 = vmul.f32 %v968_v27, %v1188_v0  ;;  %v979_v20 = vunpack.c.l.bf16 %v1035_v61  ;;  %v1012_v25 = vunpack.c.h.bf16 %v1043_v60  ;;  %v1448_v26 = vadd.f32 %v1197_v9, %v461_v10 }
  0x46   : > { %v1417_v51 = vadd.f32 %v1197_v9, %v441_v32  ;;  %v444_v55 = vmul.f32 %v972_v48, %v1188_v0  ;;  %v445_v14 = vmul.f32 %v975_v11, %v1188_v0  ;;  %v980_v15 = vunpack.c.h.bf16 %v1035_v61 }
  0x47   : > { %v1424_v56 = vadd.f32 %v1197_v9, %v442_v52  ;;  %v463_v16 = vmul.f32 %v1011_v13, %v1188_v0  ;;  %v447_v17 = vmul.f32 %v979_v20, %v1188_v0  ;;  %v464_v27 = vmul.f32 %v1012_v25, %v1188_v0 }
  0x48   : > { %643 = vxpose.xlu1.b32.cont [12/16] (narrow) %v563_v53, 8  ;;  %v1433_v53 = vadd.f32 %v1197_v9, %v460_v40  ;;  %v1439_v45 = vadd.f32 %v1197_v9, %v444_v55  ;;  %v550_v29 = vmax.f32 %v486_v44, 0.0  ;;  %v1457_v33 = vadd.f32 %v1197_v9, %v445_v14 }
  0x49   : > { %611 = vxpose.xlu0.b32.cont [12/16] (narrow) %v547_v1, 8  ;;  %v503_v1 = vadd.f32 %v1197_v9, %v432_v6  ;;  %v462_v6 = vmul.f32 %v1008_v41, %v1188_v0  ;;  %v448_v32 = vmul.f32 %v980_v15, %v1188_v0  ;;  %v1467_v48 = vadd.f32 %v1197_v9, %v463_v16 }
  0x4a   : > { %v1470_v52 = vadd.f32 %v1197_v9, %v447_v17  ;;  %v1473_v38 = vadd.f32 %v1197_v9, %v464_v27  ;;  %v551_v42 = vmax.f32 %v487_v4, 0.0  ;;  %v585_v55 = vmax.f32 %v1317_v19, 0.0 }
  0x4b   : > { %v1460_v36 = vadd.f32 %v1197_v9, %v462_v6  ;;  %v1476_v39 = vadd.f32 %v1197_v9, %v448_v32  ;;  %v567_v40 = vmax.f32 %v503_v1, 0.0  ;;  %v569_v59 = vmax.f32 %v1321_v21, 0.0 }
  0x4c   : > { %644 = vxpose.xlu1.b32.cont [13/16] (narrow) %v564_v49, 8  ;;  %v446_v49 = vmul.f32 %v976_v12, %v1188_v0  ;;  %v584_v0 = vmax.f32 %v1303_v7, 0.0  ;;  %v570_v44 = vmax.f32 %v1327_v23, 0.0  ;;  %v587_v50 = vmax.f32 %v1330_v24, 0.0 }
  0x4d   : > { %612 = vxpose.xlu0.b32.cont [13/16] (narrow) %v548_v43, 8  ;;  %v568_v43 = vmax.f32 %v1314_v18, 0.0  ;;  %v571_v7 = vmax.f32 %v1338_v28, 0.0  ;;  %v588_v18 = vmax.f32 %v1351_v58, 0.0  ;;  %v572_v19 = vmax.f32 %v1366_v2, 0.0 }
  0x4e   : > { %v1464_v34 = vadd.f32 %v1197_v9, %v446_v49  ;;  %v586_v9 = vmax.f32 %v1324_v22, 0.0  ;;  %v589_v21 = vmax.f32 %v1369_v3, 0.0  ;;  %v573_v22 = vmax.f32 %v1373_v5, 0.0 }
  0x4f   : > { %v590_v23 = vmax.f32 %v1376_v30, 0.0  ;;  %v574_v24 = vmax.f32 %v1379_v31, 0.0  ;;  %v591_v28 = vmax.f32 %v1382_v46, 0.0  ;;  %v575_v58 = vmax.f32 %v1388_v8, 0.0 }
  0x50   : > { %645 = vxpose.xlu1.b32.cont [14/16] (narrow) %v565_v62, 8  ;;  %v592_v2 = vmax.f32 %v1405_v37, 0.0  ;;  %v576_v3 = vmax.f32 %v1417_v51, 0.0  ;;  %v593_v5 = vmax.f32 %v1420_v54, 0.0  ;;  %v577_v30 = vmax.f32 %v1424_v56, 0.0 }
  0x51   : > { %613 = vxpose.xlu0.b32.cont [14/16] (narrow) %v549_v63, 8  ;;  %v594_v31 = vmax.f32 %v1427_v57, 0.0  ;;  %v578_v46 = vmax.f32 %v1430_v35, 0.0  ;;  %v595_v8 = vmax.f32 %v1433_v53, 0.0  ;;  %v579_v37 = vmax.f32 %v1439_v45, 0.0 }
  0x52   : > { %v596_v51 = vmax.f32 %v1448_v26, 0.0  ;;  %v580_v54 = vmax.f32 %v1457_v33, 0.0  ;;  %v597_v56 = vmax.f32 %v1460_v36, 0.0  ;;  %v581_v57 = vmax.f32 %v1464_v34, 0.0 }
  0x53   : > { %v598_v35 = vmax.f32 %v1467_v48, 0.0  ;;  %v582_v53 = vmax.f32 %v1470_v52, 0.0  ;;  %v599_v45 = vmax.f32 %v1473_v38, 0.0  ;;  %v583_v60 = vmax.f32 %v1476_v39, 0.0 }
  0x54   : > { %646 = vxpose.xlu1.b32.cont [15/16] (narrow) %v566_v47, 8 }
  0x55   : > { %614 = vxpose.xlu0.b32.cont [15/16] (narrow) %v550_v29, 8 }
  0x58   : > { %647 = vxpose.xlu1.b32.end [16/16] (narrow) %v567_v40, 8 }
  0x59   : > { %615 = vxpose.xlu0.b32.end [16/16] (narrow) %v551_v42, 8 }
  0x5c   : > { %696 = vxpose.xlu1.b32.start [1/16] (narrow) %v584_v0, 8 }
  0x5d   : > { %664 = vxpose.xlu0.b32.start [1/16] (narrow) %v568_v43, 8 }
  0x60   : > { %697 = vxpose.xlu1.b32.cont [2/16] (narrow) %v585_v55, 8 }
  0x61   : > { %665 = vxpose.xlu0.b32.cont [2/16] (narrow) %v569_v59, 8 }
  0x64   : > { %698 = vxpose.xlu1.b32.cont [3/16] (narrow) %v586_v9, 8 }
  0x65   : > { %666 = vxpose.xlu0.b32.cont [3/16] (narrow) %v570_v44, 8 }
  0x68   : > { %699 = vxpose.xlu1.b32.cont [4/16] (narrow) %v587_v50, 8 }
  0x69   : > { %667 = vxpose.xlu0.b32.cont [4/16] (narrow) %v571_v7, 8 }
  0x6c   : > { %700 = vxpose.xlu1.b32.cont [5/16] (narrow) %v588_v18, 8 }
  0x6d   : > { %668 = vxpose.xlu0.b32.cont [5/16] (narrow) %v572_v19, 8 }
  0x70   : > { %701 = vxpose.xlu1.b32.cont [6/16] (narrow) %v589_v21, 8 }
  0x71   : > { %669 = vxpose.xlu0.b32.cont [6/16] (narrow) %v573_v22, 8 }
  0x74   : > { %702 = vxpose.xlu1.b32.cont [7/16] (narrow) %v590_v23, 8 }
  0x75   : > { %670 = vxpose.xlu0.b32.cont [7/16] (narrow) %v574_v24, 8 }
  0x78   : > { %703 = vxpose.xlu1.b32.cont [8/16] (narrow) %v591_v28, 8 }
  0x79   : > { %671 = vxpose.xlu0.b32.cont [8/16] (narrow) %v575_v58, 8 }
  0x7c   : > { %704 = vxpose.xlu1.b32.cont [9/16] (narrow) %v592_v2, 8 }
  0x7d   : > { %672 = vxpose.xlu0.b32.cont [9/16] (narrow) %v576_v3, 8 }
  0x80   : > { %705 = vxpose.xlu1.b32.cont [10/16] (narrow) %v593_v5, 8 }
  0x81   : > { %673 = vxpose.xlu0.b32.cont [10/16] (narrow) %v577_v30, 8 }
  0x84   : > { %706 = vxpose.xlu1.b32.cont [11/16] (narrow) %v594_v31, 8 }
  0x85   : > { %674 = vxpose.xlu0.b32.cont [11/16] (narrow) %v578_v46, 8 }
  0x88   : > { %707 = vxpose.xlu1.b32.cont [12/16] (narrow) %v595_v8, 8 }
  0x89   : > { %675 = vxpose.xlu0.b32.cont [12/16] (narrow) %v579_v37, 8 }
  0x8c   : > { %708 = vxpose.xlu1.b32.cont [13/16] (narrow) %v596_v51, 8 }
  0x8d   : > { %676 = vxpose.xlu0.b32.cont [13/16] (narrow) %v580_v54, 8 }
  0x90   : > { %709 = vxpose.xlu1.b32.cont [14/16] (narrow) %v597_v56, 8 }
  0x91   : > { %677 = vxpose.xlu0.b32.cont [14/16] (narrow) %v581_v57, 8 }
  0x94   : > { %710 = vxpose.xlu1.b32.cont [15/16] (narrow) %v598_v35, 8 }
  0x95   : > { %678 = vxpose.xlu0.b32.cont [15/16] (narrow) %v582_v53, 8 }
  0x98   : > { %711 = vxpose.xlu1.b32.end [16/16] (narrow) %v599_v45, 8  ;;  %v648_v61 = vpop.trf.xlu1 }
  0x99   : > { %679 = vxpose.xlu0.b32.end [16/16] (narrow) %v583_v60, 8  ;;  %v616_v62 = vpop.trf.xlu0  ;;  %729 = vst [vmem:[%s264_s9 + $0x8] sm:$0xff] %v648_v61 }
  0x9a   : > { %728 = vst [vmem:[%s264_s9] sm:$0xff] %v616_v62 }
  0xd8   : > { %v712_v63 = vpop.trf.xlu1 }
  0xd9   : > { %v680_v1 = vpop.trf.xlu0  ;;  %731 = vst [vmem:[%s264_s9 + $0x18] sm:$0xff] %v712_v63 }
  0xda   : > { %730 = vst [vmem:[%s264_s9 + $0x10] sm:$0xff] %v680_v1 }
  0xdb PF: > { %s13_s16 = sadd.s32 1, %s1122_s16   ;;  %s1534_s12 = smov %s1114_s14 }
  0xdc   : > { %p10_p8 = scmp.ge.s32.totalorder %s13_s16, 6   ;;  %s1535_s13 = smov %s1118_s15 }
  0xdd   : > { %s1536_s14 = smov %s1539_s17  ;;  %s1537_s15 = smov %s1543_s18 }
  0xde   :  { %12 = sbr.rel (!%p10_p8) target bundleno = 3 (0x3), region = 68 }

// kernel: up_conv_forward.2
= control target key start
LH: loop header
LB: loop body
LE: loop exit
PB: predicated region body
PF: predicated region fallthrough
CT: control target
= control target key end

     0   :  { %s5757_s15 = smov 0   ;;  %s5759_s16 = smov 0   ;;  %s8017_s0 = inlined_call_operand.vmem [shape: bf16[2,18,18,4], index: 0, kind: input, shape index: {}]   ;;  %s8018_s1 = inlined_call_operand.vmem [shape: bf16[16,4,8], index: 1, kind: input, shape index: {}]   ;;  %s8019_s2 = inlined_call_operand.vmem [shape: bf16[2,16,2,16,16], index: 2, kind: output, shape index: {0}]   ;;  %s8020_s3 = inlined_call_operand.vmem [shape: f32[2,1,8], index: 3, kind: output, shape index: {1}]   ;;  %s8021_s4 = inlined_call_operand.vmem [shape: f32[2,1,8], index: 4, kind: output, shape index: {2}]  }
   0x1   :  { %s5761_s17 = smov 0   ;;  %s5763_s18 = smov 0  }
   0x2   :  { %s5765_s19 = smov 0  }
   0x3 LB: > { %s24_s20 = sadd.s32 1, %s5720_s17  ;;  %s27_s21 = sadd.s32 1, %s5724_s18  ;;  %s5728_s19 = sphi %s5765_s19, %s15_s19   ;;  %s5724_s18 = sphi %s5763_s18, %s8219_s18   ;;  %s5720_s17 = sphi %s5761_s17, %s8218_s17   ;;  %s5716_s16 = sphi %s5759_s16, %s8217_s16   ;;  %s5712_s15 = sphi %s5757_s15, %s8216_s15  }
   0x4   : > { %p25_p0 = scmp.ge.s32.totalorder %s24_s20, 2  ;;  %p4703_p1 = scmp.ge.s32.totalorder %s5728_s19, 1 }
   0x5   : > { %p181_p2 = scmp.lt.s32.totalorder %s5728_s19, 5 }
   0x6   : > { %s8221_s20 = smov (%p25_p0, %s24_s20), 0  ;;  %s8223_s21 = smov (!%p25_p0, %s27_s21), %s5724_s18 }
   0x7   : > { %p182_p3 = pnand %p4703_p1, %p181_p2  ;;  %p29_p4 = scmp.ge.s32.totalorder %s8223_s21, 2 }
   0x9   : > { %s8225_s21 = smov (%p29_p4, %s8223_s21), 0  ;;  %185 = sbr.rel (%p182_p3) target bundleno = 625 (0x271), region = 28 }
   0xe   : > { %p218_p5 = scmp.lt.s32.totalorder %s5716_s16, 1  ;;  %s4705_s22 = sshll.u32 %s5712_s15, 3 }
   0xf   : > { %p226_p6 = scmp.lt.s32.totalorder %s4705_s22, 15  ;;  %p4709_p7 = scmp.ne.s32.totalorder %s5712_s15, 0 }
  0x10   : > { %s8227_s16 = smov (!%p218_p5, %s5716_s16), 1 }
  0x11   : > { %s8229_s22 = smov (!%p226_p6, %s4705_s22), 15  ;;  %s5615_s23 = smul.u32 216, %s8227_s16 }
  0x12   : > { %s4707_s24 = sshll.u32 %s8227_s16, 6  ;;  %s4706_s25 = sshll.u32 %s8229_s22, 2 }
  0x13   : > { %s5793_s28 = scalar_lea.vmem %s8020_s3, %s8227_s16  ;;  %s222_s5 = scalar_lea.vmem %s8017_s0, %s5615_s23 }
  0x14   : > { %s230_s6 = sadd.s32 %s4707_s24, %s4706_s25  ;;  %s5801_s10 = scalar_lea.vmem %s8021_s4, %s8227_s16 }
  0x15   : > { %s4708_s7 = sshll.u32 %s230_s6, 2  ;;  %244 = sbr.rel (%p4709_p7) target bundleno = 28 (0x1c), region = 32 }
  0x16   : > { %s5806_s13 = scalar_lea.vmem %s8019_s2, %s4708_s7 }
  0x1a   : > { %vm245_vm0 = vcmask 57344   ;;  %v5730_v0 = vmov 0.0  }
  0x1b   : > { %246 = vst.msk [vmem:[%s5793_s28] sm:$0x1] %vm245_vm0, %v5730_v0  ;;  %247 = vst.msk [vmem:[%s5801_s10] sm:$0x1] %vm245_vm0, %v5730_v0 }
  0x1c PF: > { %v268_v1 = vld [vmem:[%s8018_s1] sm:$0x3]  ;;  %vm523_vm1 = vcmask 1041408   ;;  %v4713_v2 = vld [vmem:[%s8018_s1 + $0x2] sm:$0x3]  ;;  %s5166_s24 = smul.u32 96, %s5712_s15 }
  0x1d   : > { %5600 = vmatprep.subr.msk.bf16.mxu1 %vm523_vm1, %v268_v1  ;;  %v689_v3 = vsel %vm523_vm1, %v268_v1, 0  ;;  %5599 = vmatprep.subr.msk.bf16.mxu0 %vm523_vm1, %v4713_v2  ;;  %vm498_vm2 = vcmask 31744   ;;  %v525_v4 = vsel %vm523_vm1, %v4713_v2, 0  ;;  %vm277_vm3 = vsmask.f32 3328 }
  0x1e   : > { %5330 = vmatpush3.bf16.msra.mxu1 %v689_v3  ;;  %s5822_s25 = scalar_lea.vmem %s222_s5, %s5166_s24  ;;  %5312 = vmatpush3.bf16.msra.mxu0 %v525_v4  ;;  %vm278_vm4 = vsmask.f32 7440  ;;  %v4764_v5 = vld [vmem:[%s8018_s1 + $0x4] sm:$0x3]  ;;  %v4805_v6 = vld [vmem:[%s8018_s1 + $0x6] sm:$0x3] }
  0x1f   : > { %v252_v7 = vld [vmem:[%s5822_s25] sm:$0xf]  ;;  %v5832_v8 = vld [vmem:[%s5822_s25 + $0x4] sm:$0xf]  ;;  %v254_v9 = vld [vmem:[%s5822_s25 + $0xc] sm:$0xf]  ;;  %5601 = vmatprep.subr.msk.bf16.mxu0 %vm523_vm1, %v4764_v5  ;;  %5602 = vmatprep.subr.msk.bf16.mxu1 %vm523_vm1, %v4805_v6 }
  0x20   : > { %v281_v10 = vshrl.u32 %v252_v7, 16  ;;  %v284_v11 = vshll.u32 %v252_v7, 16  ;;  %v294_v12 = vshrl.u32 %v5832_v8, 16  ;;  %v4730_v13 = vcombine.low %v252_v7, %v5832_v8  ;;  %v5840_v14 = vld [vmem:[%s5822_s25 + $0x10] sm:$0xf]  ;;  %vm5866_vm5 = vmor %vm277_vm3, %vm278_vm4 }
  0x21   : > { %v8023_v15 = vrot.slane %v5832_v8, 5  ;;  %v305_v16 = vshrl.u32 %v254_v9, 16  ;;  %v308_v17 = vshll.u32 %v254_v9, 16  ;;  %v318_v18 = vshrl.u32 %v5840_v14, 16  ;;  %v5845_v19 = vld [vmem:[%s5822_s25 + $0x8] sm:$0x1] }
  0x22   : > { %v283_v20 = vrot.slane %v281_v10, 4  ;;  %v286_v21 = vrot.slane %v284_v11, 5  ;;  %5331 = vmatprep.mubr.msk.bf16.mxu1 %vm498_vm2, %v4730_v13  ;;  %v4731_v22 = vcombine.low %v254_v9, %v5840_v14  ;;  %v8022_v23 = vrot.slane %v5840_v14, 5  ;;  %v5856_v28 = vld [vmem:[%s5822_s25 + $0x14] sm:$0x1] }
  0x23   : > { %v5852_v24 = vrot.slane %v8023_v15, 4  ;;  %v307_v25 = vrot.slane %v305_v16, 4  ;;  %v310_v26 = vrot.slane %v308_v17, 5  ;;  %v290_v27 = vshll.u32 %v5832_v8, 16  ;;  %v256_v38 = vld [vmem:[%s5822_s25 + $0x18] sm:$0xf] }
  0x24   : > { %5332 = vmatmul.mubr.msk.bf16.vlgmr.msra.gmra.mxu1 %vm498_vm2, %v4731_v22  ;;  %v5861_v29 = vrot.slane %v8022_v23, 4  ;;  %v287_v30 = vor.u32 %v286_v21, %v283_v20  ;;  %v296_v31 = vrot.slane %v294_v12, 4  ;;  %v300_v32 = vshll.u32 %v5845_v19, 16  ;;  %v5875_v43 = vld [vmem:[%s5822_s25 + $0x1c] sm:$0xf] }
  0x25   : > { %v292_v34 = vrot.slane %v290_v27, 5  ;;  %v311_v36 = vor.u32 %v310_v26, %v307_v25  ;;  %v314_v37 = vshll.u32 %v5840_v14, 16  ;;  %v320_v41 = vrot.slane %v318_v18, 4  ;;  %v258_v48 = vld [vmem:[%s5822_s25 + $0x24] sm:$0xf] }
  0x26   : > { %v288_v39 = vrot.slane %v287_v30, 4  ;;  %v302_v40 = vrot.slane %v300_v32, 5  ;;  %v324_v42 = vshll.u32 %v5856_v28, 16  ;;  %v875_v51 = vsel %vm523_vm1, %v4764_v5, 0  ;;  %v5886_v57 = vld [vmem:[%s5822_s25 + $0x28] sm:$0xf] }
  0x27   : > { %v297_v44 = vor.u32 %v296_v31, %v292_v34  ;;  %v312_v45 = vrot.slane %v311_v36, 4  ;;  %v316_v46 = vrot.slane %v314_v37, 5  ;;  %v1257_v52 = vsel %vm523_vm1, %v4805_v6, 0  ;;  %v5893_v2 = vld [vmem:[%s5822_s25 + $0x20] sm:$0x1] }
  0x28   : > { %v293_v49 = vsel %vm5866_vm5, %v288_v39, %v292_v34  ;;  %v326_v50 = vrot.slane %v324_v42, 5  ;;  %5366 = vmatpush3.bf16.msra.mxu1 %v1257_v52  ;;  %v329_v56 = vshrl.u32 %v256_v38, 16  ;;  %v332_v58 = vshll.u32 %v256_v38, 16  ;;  %v5904_v12 = vld [vmem:[%s5822_s25 + $0x2c] sm:$0x1] }
  0x29   : > { %v298_v53 = vrot.slane %v297_v44, 4  ;;  %v317_v54 = vsel %vm5866_vm5, %v312_v45, %v316_v46  ;;  %v321_v55 = vor.u32 %v320_v41, %v316_v46  ;;  %v342_v59 = vshrl.u32 %v5875_v43, 16  ;;  %v260_v13 = vld [vmem:[%s5822_s25 + $0x30] sm:$0xf]  ;;  %v5915_v27 = vld [vmem:[%s5822_s25 + $0x34] sm:$0xf] }
  0x2a   : > { %v4732_v60 = vcombine.low %v256_v38, %v5875_v43  ;;  %v353_v61 = vshrl.u32 %v258_v48, 16  ;;  %v331_v0 = vrot.slane %v329_v56, 4  ;;  %v356_v1 = vshll.u32 %v258_v48, 16  ;;  %v262_v36 = vld [vmem:[%s5822_s25 + $0x3c] sm:$0xf] }
  0x2b   : > { %v303_v62 = vsel %vm5866_vm5, %v298_v53, %v302_v40  ;;  %v322_v63 = vrot.slane %v321_v55, 4  ;;  %v334_v4 = vrot.slane %v332_v58, 5  ;;  %v366_v6 = vshrl.u32 %v5886_v57, 16  ;;  %v5922_v41 = vld [vmem:[%s5822_s25 + $0x40] sm:$0xf] }
  0x2c   : > { %v5895_v3 = vcombine.low %v293_v49, %v303_v62  ;;  %5335 = vmatprep.mubr.msk.bf16.mxu1 %vm498_vm2, %v4732_v60  ;;  %v355_v5 = vrot.slane %v353_v61, 4  ;;  %v358_v9 = vrot.slane %v356_v1, 5  ;;  %v4733_v10 = vcombine.low %v258_v48, %v5886_v57  ;;  %v5932_v56 = vld [vmem:[%s5822_s25 + $0x38] sm:$0x1]  ;;  %v5938_v62 = vld [vmem:[%s5822_s25 + $0x44] sm:$0x1] }
  0x2d   : > { %v327_v7 = vsel %vm5866_vm5, %v322_v63, %v326_v50  ;;  %v338_v11 = vshll.u32 %v5875_v43, 16  ;;  %v335_v17 = vor.u32 %v334_v4, %v331_v0  ;;  %v344_v18 = vrot.slane %v342_v59, 4  ;;  %v264_v63 = vld [vmem:[%s5822_s25 + $0x48] sm:$0xf]  ;;  %v6091_v23 = vld [vmem:[%s5822_s25 + $0x44] sm:$0x1] }
  0x2e   : > { %5313 = vmatprep.mubr.msk.bf16.mxu0 %vm498_vm2, %v5895_v3  ;;  %v5909_v16 = vcombine.low %v317_v54, %v327_v7  ;;  %v348_v20 = vshll.u32 %v5893_v2, 16  ;;  %5336 = vmatmul.mubr.msk.bf16.gmra.mxu1 %vm498_vm2, %v4733_v10  ;;  %v359_v22 = vor.u32 %v358_v9, %v355_v5  ;;  %v362_v25 = vshll.u32 %v5886_v57, 16  ;;  %8080 = vst [vmem:[#allocation8_spill] sm:$0xff] %v6091_v23 }
  0x2f   : > { %v340_v21 = vrot.slane %v338_v11, 5  ;;  %v368_v26 = vrot.slane %v366_v6, 4  ;;  %v336_v30 = vrot.slane %v335_v17, 4  ;;  %v372_v32 = vshll.u32 %v5904_v12, 16  ;;  %v5946_v6 = vld [vmem:[%s5822_s25 + $0x4c] sm:$0xf] }
  0x30   : > { %5314 = vmatmul.mubr.msk.bf16.vlgmr.msra.gmra.mxu0 %vm498_vm2, %v5909_v16  ;;  %v350_v31 = vrot.slane %v348_v20, 5  ;;  %v377_v34 = vshrl.u32 %v260_v13, 16  ;;  %v360_v38 = vrot.slane %v359_v22, 4  ;;  %v364_v39 = vrot.slane %v362_v25, 5  ;;  %v5961_v22 = vld [vmem:[%s8018_s1 + $0xa] sm:$0x3] }
  0x31   : > { %5348 = vmatpush3.bf16.msra.mxu0 %v875_v51  ;;  %v345_v37 = vor.u32 %v344_v18, %v340_v21  ;;  %v380_v40 = vshll.u32 %v260_v13, 16  ;;  %v341_v42 = vsel %vm5866_vm5, %v336_v30, %v340_v21  ;;  %v374_v44 = vrot.slane %v372_v32, 5  ;;  %v266_v21 = vld [vmem:[%s5822_s25 + $0x54] sm:$0xf] }
  0x32   : > { %v379_v45 = vrot.slane %v377_v34, 4  ;;  %v390_v46 = vshrl.u32 %v5915_v27, 16  ;;  %v365_v49 = vsel %vm5866_vm5, %v360_v38, %v364_v39  ;;  %v369_v50 = vor.u32 %v368_v26, %v364_v39  ;;  %5603 = vmatprep.subr.msk.bf16.mxu0 %vm523_vm1, %v5961_v22  ;;  %v5971_v38 = vld [vmem:[%s5822_s25 + $0x58] sm:$0xf]  ;;  %v5976_v39 = vld [vmem:[%s8018_s1 + $0x8] sm:$0x3] }
  0x33   : > { %v346_v48 = vrot.slane %v345_v37, 4  ;;  %v382_v51 = vrot.slane %v380_v40, 5  ;;  %v4734_v52 = vcombine.low %v260_v13, %v5915_v27  ;;  %v401_v53 = vshrl.u32 %v262_v36, 16  ;;  %5604 = vmatprep.subr.msk.bf16.mxu1 %vm523_vm1, %v5976_v39 }
  0x34   : > { %v404_v54 = vshll.u32 %v262_v36, 16  ;;  %v414_v55 = vshrl.u32 %v5922_v41, 16  ;;  %v370_v59 = vrot.slane %v369_v50, 4  ;;  %v4735_v60 = vcombine.low %v262_v36, %v5922_v41 }
  0x35   : > { %v351_v58 = vsel %vm5866_vm5, %v346_v48, %v350_v31  ;;  %v383_v61 = vor.u32 %v382_v51, %v379_v45  ;;  %5339 = vmatprep.mubr.msk.bf16.mxu1 %vm498_vm2, %v4734_v52  ;;  %v403_v1 = vrot.slane %v401_v53, 4  ;;  %v386_v5 = vshll.u32 %v5915_v27, 16  ;;  %v5985_v51 = vld [vmem:[%s5822_s25 + $0x50] sm:$0x1] }
  0x36   : > { %v5941_v0 = vcombine.low %v341_v42, %v351_v58  ;;  %v406_v4 = vrot.slane %v404_v54, 5  ;;  %v375_v7 = vsel %vm5866_vm5, %v370_v59, %v374_v44  ;;  %5340 = vmatmul.mubr.msk.bf16.gmra.mxu1 %vm498_vm2, %v4735_v60  ;;  %v392_v10 = vrot.slane %v390_v46, 4  ;;  %v5989_v58 = vld [vmem:[%s5822_s25 + $0x5c] sm:$0x1] }
  0x37   : > { %v384_v9 = vrot.slane %v383_v61, 4  ;;  %v396_v11 = vshll.u32 %v5932_v56, 16  ;;  %v5954_v13 = vcombine.low %v365_v49, %v375_v7  ;;  %v388_v17 = vrot.slane %v386_v5, 5 }
  0x38   : > { %5317 = vmatprep.mubr.msk.bf16.mxu0 %vm498_vm2, %v5941_v0  ;;  %v407_v18 = vor.u32 %v406_v4, %v403_v1  ;;  %v410_v20 = vshll.u32 %v5922_v41, 16  ;;  %v416_v26 = vrot.slane %v414_v55, 4  ;;  %v420_v30 = vshll.u32 %v5938_v62, 16 }
  0x39   : > { %v398_v25 = vrot.slane %v396_v11, 5  ;;  %v425_v31 = vshrl.u32 %v264_v63, 16  ;;  %5318 = vmatmul.mubr.msk.bf16.gmra.mxu0 %vm498_vm2, %v5954_v13  ;;  %v389_v32 = vsel %vm5866_vm5, %v384_v9, %v388_v17  ;;  %v393_v34 = vor.u32 %v392_v10, %v388_v17 }
  0x3a   : > { %v408_v36 = vrot.slane %v407_v18, 4  ;;  %v412_v37 = vrot.slane %v410_v20, 5  ;;  %v422_v40 = vrot.slane %v420_v30, 5  ;;  %v428_v44 = vshll.u32 %v264_v63, 16  ;;  %v6009_v30 = vld [vmem:[%s5822_s25 + $0x10] sm:$0xf] }
  0x3b   : > { %v427_v42 = vrot.slane %v425_v31, 4  ;;  %v438_v45 = vshrl.u32 %v5946_v6, 16  ;;  %v394_v46 = vrot.slane %v393_v34, 4  ;;  %v4736_v50 = vcombine.low %v264_v63, %v5946_v6  ;;  %v4781_v63 = vld [vmem:[%s5822_s25 + $0xc] sm:$0xf] }
  0x3c   : > { %v413_v48 = vsel %vm5866_vm5, %v408_v36, %v412_v37  ;;  %v417_v49 = vor.u32 %v416_v26, %v412_v37  ;;  %v430_v52 = vrot.slane %v428_v44, 5  ;;  %v449_v53 = vshrl.u32 %v266_v21, 16  ;;  %v6017_v44 = vld [vmem:[%s5822_s25 + $0x14] sm:$0x1] }
  0x3d   : > { %v452_v54 = vshll.u32 %v266_v21, 16  ;;  %v462_v55 = vshrl.u32 %v5971_v38, 16  ;;  %v399_v59 = vsel %vm5866_vm5, %v394_v46, %v398_v25  ;;  %5343 = vmatprep.mubr.msk.bf16.mxu1 %vm498_vm2, %v4736_v50  ;;  %v4737_v61 = vcombine.low %v266_v21, %v5971_v38 }
  0x3e   : > { %v418_v60 = vrot.slane %v417_v49, 4  ;;  %v434_v1 = vshll.u32 %v5946_v6, 16  ;;  %v5997_v4 = vcombine.low %v389_v32, %v399_v59  ;;  %v451_v5 = vrot.slane %v449_v53, 4 }
  0x3f   : > { %v454_v7 = vrot.slane %v452_v54, 5  ;;  %v431_v9 = vor.u32 %v430_v52, %v427_v42  ;;  %5344 = vmatmul.mubr.msk.bf16.gmra.mxu1 %vm498_vm2, %v4737_v61  ;;  %v440_v17 = vrot.slane %v438_v45, 4  ;;  %v444_v18 = vshll.u32 %v5985_v51, 16  ;;  %v4784_v52 = vld [vmem:[%s5822_s25 + $0x18] sm:$0xf] }
  0x40   : > { %v423_v10 = vsel %vm5866_vm5, %v418_v60, %v422_v40  ;;  %v436_v11 = vrot.slane %v434_v1, 5  ;;  %5321 = vmatprep.mubr.msk.bf16.mxu0 %vm498_vm2, %v5997_v4  ;;  %v458_v26 = vshll.u32 %v5971_v38, 16  ;;  %v464_v34 = vrot.slane %v462_v55, 4  ;;  %v6025_v60 = vld [vmem:[%s5822_s25 + $0x1c] sm:$0xf] }
  0x41   : > { %v6005_v20 = vcombine.low %v413_v48, %v423_v10  ;;  %v432_v21 = vrot.slane %v431_v9, 4  ;;  %v455_v25 = vor.u32 %v454_v7, %v451_v5  ;;  %v446_v32 = vrot.slane %v444_v18, 5  ;;  %v6031_v7 = vld [vmem:[%s5822_s25 + $0x20] sm:$0x1] }
  0x42   : > { %v441_v31 = vor.u32 %v440_v17, %v436_v11  ;;  %v468_v36 = vshll.u32 %v5989_v58, 16  ;;  %v460_v42 = vrot.slane %v458_v26, 5  ;;  %v1015_v45 = vshrl.u32 %v4781_v63, 16 }
  0x43   : > { %8074 = vst [vmem:[#allocation2_spill] sm:$0xff] %v6005_v20  ;;  %5322 = vmatmul.mubr.msk.bf16.gmra.mxu0 %vm498_vm2, %v6005_v20  ;;  %v437_v37 = vsel %vm5866_vm5, %v432_v21, %v436_v11  ;;  %v456_v40 = vrot.slane %v455_v25, 4  ;;  %v1018_v49 = vshll.u32 %v4781_v63, 16  ;;  %v1024_v50 = vshll.u32 %v6009_v30, 16 }
  0x44   : > { %v442_v46 = vrot.slane %v441_v31, 4  ;;  %v470_v48 = vrot.slane %v468_v36, 5  ;;  %v465_v54 = vor.u32 %v464_v34, %v460_v42  ;;  %v1017_v55 = vrot.slane %v1015_v45, 4 }
  0x45   : > { %v461_v53 = vsel %vm5866_vm5, %v456_v40, %v460_v42  ;;  %v1028_v59 = vshrl.u32 %v6009_v30, 16  ;;  %v1020_v1 = vrot.slane %v1018_v49, 5  ;;  %v1026_v5 = vrot.slane %v1024_v50, 5  ;;  %v4787_v40 = vld [vmem:[%s5822_s25 + $0x24] sm:$0xf] }
  0x46   : > { %v447_v61 = vsel %vm5866_vm5, %v442_v46, %v446_v32  ;;  %v1034_v63 = vshll.u32 %v6017_v44, 16  ;;  %v466_v10 = vrot.slane %v465_v54, 4  ;;  %v1039_v17 = vshrl.u32 %v4784_v52, 16 }
  0x47   : > { %v6033_v9 = vcombine.low %v437_v37, %v447_v61  ;;  %v1030_v11 = vrot.slane %v1028_v59, 4  ;;  %v1021_v18 = vor.u32 %v1020_v1, %v1017_v55  ;;  %v1042_v25 = vshll.u32 %v4784_v52, 16  ;;  %v5666_v37 = vld [vmem:[%s5822_s25 + $0xc] sm:$0xff]   ;;  %v6049_v55 = vld [vmem:[%s5822_s25 + $0x28] sm:$0xf] }
  0x48   : > { %v1036_v21 = vrot.slane %v1034_v63, 5  ;;  %v1048_v26 = vshll.u32 %v6025_v60, 16  ;;  %v471_v31 = vsel %vm5866_vm5, %v466_v10, %v470_v48  ;;  %v1041_v34 = vrot.slane %v1039_v17, 4  ;;  %v6058_v1 = vld [vmem:[%s5822_s25 + $0x2c] sm:$0x1] }
  0x49   : > { %8075 = vst [vmem:[#allocation3_spill] sm:$0xff] %v6033_v9  ;;  %5325 = vmatprep.mubr.msk.bf16.mxu0 %vm498_vm2, %v6033_v9  ;;  %v1031_v32 = vor.u32 %v1030_v11, %v1026_v5  ;;  %v1052_v36 = vshrl.u32 %v6025_v60, 16  ;;  %v6043_v42 = vcombine.low %v461_v53, %v471_v31  ;;  %v1022_v45 = vrot.slane %v1021_v18, 4  ;;  %8077 = vst [vmem:[#allocation5_spill] sm:$0xff] %v6058_v1  ;;  %v4790_v10 = vld [vmem:[%s5822_s25 + $0x30] sm:$0xf] }
  0x4a   : > { %v1044_v46 = vrot.slane %v1042_v25, 5  ;;  %v1050_v49 = vrot.slane %v1048_v26, 5  ;;  %v1058_v54 = vshll.u32 %v6031_v7, 16  ;;  %v1609_v48 = vsel %vm523_vm1, %v5961_v22, 0  ;;  %v6065_v25 = vld [vmem:[%s5822_s25 + $0x34] sm:$0xf] }
  0x4b   : > { %8076 = vst [vmem:[#allocation4_spill] sm:$0xff] %v6043_v42  ;;  %v1032_v50 = vrot.slane %v1031_v32, 4  ;;  %v1054_v52 = vrot.slane %v1052_v36, 4  ;;  %5326 = vmatmul.mubr.msk.bf16.gmra.mxu0 %vm498_vm2, %v6043_v42  ;;  %v1027_v53 = vsel %vm5866_vm5, %v1022_v45, %v1026_v5  ;;  %v1709_v61 = vsel %vm523_vm1, %v5976_v39, 0 }
  0x4c   : > { %v1045_v59 = vor.u32 %v1044_v46, %v1041_v34  ;;  %v1063_v63 = vshrl.u32 %v4787_v40, 16  ;;  %v1060_v17 = vrot.slane %v1058_v54, 5  ;;  %5349 = vmatprep.mubr.msk.bf16.mxu0 %vm498_vm2, %v5666_v37  ;;  %v1066_v18 = vshll.u32 %v4787_v40, 16  ;;  %v5667_v40 = vld [vmem:[%s5822_s25 + $0x18] sm:$0xff]  }
  0x4d   : > { %v1037_v11 = vsel %vm5866_vm5, %v1032_v50, %v1036_v21  ;;  %v1055_v22 = vor.u32 %v1054_v52, %v1050_v49  ;;  %v1072_v31 = vshll.u32 %v6049_v55, 16  ;;  %v1076_v21 = vshrl.u32 %v6049_v55, 16  ;;  %v6078_v46 = vld [vmem:[%s5822_s25 + $0x38] sm:$0x1] }
  0x4e   : > { %v6067_v5 = vcombine.low %v1027_v53, %v1037_v11  ;;  %v1046_v26 = vrot.slane %v1045_v59, 4  ;;  %v1065_v39 = vrot.slane %v1063_v63, 4  ;;  %v1068_v34 = vrot.slane %v1066_v18, 5  ;;  %v4793_v11 = vld [vmem:[%s5822_s25 + $0x3c] sm:$0xf] }
  0x4f   : > { %v1056_v32 = vrot.slane %v1055_v22, 4  ;;  %v1082_v36 = vshll.u32 %v6058_v1, 16  ;;  %v1074_v45 = vrot.slane %v1072_v31, 5  ;;  %v1087_v50 = vshrl.u32 %v4790_v10, 16  ;;  %v6084_v22 = vld [vmem:[%s5822_s25 + $0x40] sm:$0xf] }
  0x50   : > { %8078 = vst [vmem:[#allocation6_spill] sm:$0xff] %v6067_v5  ;;  %5367 = vmatprep.mubr.msk.bf16.mxu1 %vm498_vm2, %v6067_v5  ;;  %v1051_v37 = vsel %vm5866_vm5, %v1046_v26, %v1050_v49  ;;  %v1090_v52 = vshll.u32 %v4790_v10, 16  ;;  %v1069_v53 = vor.u32 %v1068_v34, %v1065_v39  ;;  %v1078_v59 = vrot.slane %v1076_v21, 4  ;;  %v5668_v31 = vld [vmem:[%s5822_s25 + $0x24] sm:$0xff]   ;;  %v6098_v39 = vld [vmem:[%s8018_s1 + $0xc] sm:$0x3] }
  0x51   : > { %v1061_v54 = vsel %vm5866_vm5, %v1056_v32, %v1060_v17  ;;  %v1084_v63 = vrot.slane %v1082_v36, 5  ;;  %v1089_v49 = vrot.slane %v1087_v50, 4  ;;  %v1096_v47 = vshll.u32 %v6065_v25, 16  ;;  %v6150_v5 = vld [vmem:[%s5822_s25 + $0x5c] sm:$0x1]  ;;  %v5672_v1 = vld [vmem:[%s5822_s25 + $0x54] sm:$0xff]  }
  0x52   : > { %v6086_v18 = vcombine.low %v1051_v37, %v1061_v54  ;;  %v1092_v26 = vrot.slane %v1090_v52, 5  ;;  %v1070_v35 = vrot.slane %v1069_v53, 4  ;;  %v1079_v10 = vor.u32 %v1078_v59, %v1074_v45  ;;  %v6106_v37 = vld [vmem:[%s8018_s1 + $0xe] sm:$0x3] }
  0x53   : > { %v1100_v15 = vshrl.u32 %v6065_v25, 16  ;;  %v1106_v17 = vshll.u32 %v6078_v46, 16  ;;  %5350 = vmatmul.mubr.msk.bf16.vlgmr.msra.gmra.mxu0 %vm498_vm2, %v5667_v40  ;;  %v1098_v34 = vrot.slane %v1096_v47, 5  ;;  %v1111_v21 = vshrl.u32 %v4793_v11, 16 }
  0x54   : > { %8079 = vst [vmem:[#allocation7_spill] sm:$0xff] %v6086_v18  ;;  %5368 = vmatmul.mubr.msk.bf16.vlgmr.msra.gmra.mxu1 %vm498_vm2, %v6086_v18  ;;  %v1093_v32 = vor.u32 %v1092_v26, %v1089_v49  ;;  %v1114_v36 = vshll.u32 %v4793_v11, 16  ;;  %5384 = vmatpush3.bf16.msra.mxu0 %v1609_v48  ;;  %v1075_v50 = vsel %vm5866_vm5, %v1070_v35, %v1074_v45  ;;  %v1080_v52 = vrot.slane %v1079_v10, 4  ;;  %v4796_v49 = vld [vmem:[%s5822_s25 + $0x48] sm:$0xf]  ;;  %v5669_v10 = vld [vmem:[%s5822_s25 + $0x30] sm:$0xff]  }
  0x55   : > { %5402 = vmatpush3.bf16.msra.mxu1 %v1709_v61  ;;  %v1102_v54 = vrot.slane %v1100_v15, 4  ;;  %v1108_v53 = vrot.slane %v1106_v17, 5  ;;  %5353 = vmatprep.mubr.msk.bf16.mxu0 %vm498_vm2, %v5668_v31  ;;  %v1113_v47 = vrot.slane %v1111_v21, 4  ;;  %v1120_v11 = vshll.u32 %v6084_v22, 16  ;;  %v6120_v45 = vld [vmem:[%s5822_s25 + $0x4c] sm:$0xf] }
  0x56   : > { %v1094_v40 = vrot.slane %v1093_v32, 4  ;;  %v1116_v59 = vrot.slane %v1114_v36, 5  ;;  %5605 = vmatprep.subr.msk.bf16.mxu0 %vm523_vm1, %v6098_v39  ;;  %v1085_v48 = vsel %vm5866_vm5, %v1080_v52, %v1084_v63  ;;  %v1124_v15 = vshrl.u32 %v6084_v22, 16  ;;  %5606 = vmatprep.subr.msk.bf16.mxu1 %vm523_vm1, %v6106_v37  ;;  %v6130_v32 = vld [vmem:[%s5822_s25 + $0x50] sm:$0x1]  ;;  %v5670_v18 = vld [vmem:[%s5822_s25 + $0x3c] sm:$0xff]  }
  0x57   : > { %v1103_v35 = vor.u32 %v1102_v54, %v1098_v34  ;;  %v1130_v61 = vshll.u32 %v6091_v23, 16  ;;  %v6124_v26 = vcombine.low %v1075_v50, %v1085_v48  ;;  %v1122_v63 = vrot.slane %v1120_v11, 5 }
  0x58   : > { %v1099_v31 = vsel %vm5866_vm5, %v1094_v40, %v1098_v34  ;;  %v1117_v17 = vor.u32 %v1116_v59, %v1113_v47  ;;  %v1126_v36 = vrot.slane %v1124_v15, 4  ;;  %v1135_v54 = vshrl.u32 %v4796_v49, 16  ;;  %v4799_v40 = vld [vmem:[%s5822_s25 + $0x54] sm:$0xf]  ;;  %v6142_v15 = vld [vmem:[%s5822_s25 + $0x58] sm:$0xf] }
  0x59   : > { %8081 = vst [vmem:[#allocation9_spill] sm:$0xff] %v6124_v26  ;;  %v1104_v21 = vrot.slane %v1103_v35, 4  ;;  %v1132_v52 = vrot.slane %v1130_v61, 5  ;;  %5371 = vmatprep.mubr.msk.bf16.mxu1 %vm498_vm2, %v6124_v26  ;;  %v1138_v48 = vshll.u32 %v4796_v49, 16  ;;  %v1144_v42 = vshll.u32 %v6120_v45, 16  ;;  %8082 = vst [vmem:[#allocation10_spill] sm:$0xff] %v6142_v15 }
  0x5a   : > { %v1118_v50 = vrot.slane %v1117_v17, 4  ;;  %v1148_v34 = vshrl.u32 %v6120_v45, 16  ;;  %v1127_v59 = vor.u32 %v1126_v36, %v1122_v63  ;;  %v1137_v11 = vrot.slane %v1135_v54, 4 }
  0x5b   : > { %v1109_v47 = vsel %vm5866_vm5, %v1104_v21, %v1108_v53  ;;  %v1154_v35 = vshll.u32 %v6130_v32, 16  ;;  %5354 = vmatmul.mubr.msk.bf16.gmra.mxu0 %vm498_vm2, %v5669_v10  ;;  %v1140_v17 = vrot.slane %v1138_v48, 5  ;;  %v1146_v26 = vrot.slane %v1144_v42, 5  ;;  %v4802_v42 = vld [vmem:[%s5822_s25 + $0x60] sm:$0xf] }
  0x5c   : > { %v6144_v61 = vcombine.low %v1099_v31, %v1109_v47  ;;  %v1123_v49 = vsel %vm5866_vm5, %v1118_v50, %v1122_v63  ;;  %v1128_v53 = vrot.slane %v1127_v59, 4  ;;  %v1150_v21 = vrot.slane %v1148_v34, 4  ;;  %5357 = vmatprep.mubr.msk.bf16.mxu0 %vm498_vm2, %v5670_v18  ;;  %v6162_v59 = vld [vmem:[%s5822_s25 + $0x64] sm:$0xf] }
  0x5d   : > { %v1156_v36 = vrot.slane %v1154_v35, 5  ;;  %v1159_v54 = vshrl.u32 %v4799_v40, 16  ;;  %v1141_v31 = vor.u32 %v1140_v17, %v1137_v11  ;;  %v1162_v10 = vshll.u32 %v4799_v40, 16  ;;  %v5671_v40 = vld [vmem:[%s5822_s25 + $0x48] sm:$0xff]  }
  0x5e   : > { %8083 = vst [vmem:[#allocation11_spill] sm:$0xff] %v6144_v61  ;;  %5372 = vmatmul.mubr.msk.bf16.gmra.mxu1 %vm498_vm2, %v6144_v61  ;;  %v1168_v47 = vshll.u32 %v6142_v15, 16  ;;  %v1172_v63 = vshrl.u32 %v6142_v15, 16  ;;  %v1133_v50 = vsel %vm5866_vm5, %v1128_v53, %v1132_v52  ;;  %v1151_v48 = vor.u32 %v1150_v21, %v1146_v26 }
  0x5f   : > { %v1161_v34 = vrot.slane %v1159_v54, 4  ;;  %v1178_v18 = vshll.u32 %v6150_v5, 16  ;;  %v6164_v35 = vcombine.low %v1123_v49, %v1133_v50  ;;  %v1142_v11 = vrot.slane %v1141_v31, 4  ;;  %v6173_v49 = vld [vmem:[%s5822_s25 + $0x68] sm:$0x1] }
  0x60   : > { %v1164_v17 = vrot.slane %v1162_v10, 5  ;;  %v1170_v61 = vrot.slane %v1168_v47, 5  ;;  %v1152_v9 = vrot.slane %v1151_v48, 4  ;;  %v1174_v15 = vrot.slane %v1172_v63, 4  ;;  %v1475_v50 = vld [vmem:[%s5822_s25] sm:$0xe] }
  0x61   : > { %8084 = vst [vmem:[#allocation12_spill] sm:$0xff] %v6164_v35  ;;  %v1180_v20 = vrot.slane %v1178_v18, 5  ;;  %v1183_v23 = vshrl.u32 %v4802_v42, 16  ;;  %5375 = vmatprep.mubr.msk.bf16.mxu1 %vm498_vm2, %v6164_v35  ;;  %v1147_v52 = vsel %vm5866_vm5, %v1142_v11, %v1146_v26  ;;  %v1186_v21 = vshll.u32 %v4802_v42, 16  ;;  %v1476_v11 = vld [vmem:[%s5822_s25 + $0xc] sm:$0xe] }
  0x62   : > { %v1165_v53 = vor.u32 %v1164_v17, %v1161_v34  ;;  %v1192_v54 = vshll.u32 %v6162_v59, 16  ;;  %v1157_v31 = vsel %vm5866_vm5, %v1152_v9, %v1156_v36  ;;  %v1175_v10 = vor.u32 %v1174_v15, %v1170_v61 }
  0x63   : > { %v1185_v47 = vrot.slane %v1183_v23, 4  ;;  %v1196_v63 = vshrl.u32 %v6162_v59, 16  ;;  %v6180_v48 = vcombine.low %v1147_v52, %v1157_v31  ;;  %5358 = vmatmul.mubr.msk.bf16.gmra.mxu0 %vm498_vm2, %v5671_v40  ;;  %v1188_v26 = vrot.slane %v1186_v21, 5  ;;  %v5673_v31 = vld [vmem:[%s5822_s25 + $0x60] sm:$0xff]  }
  0x64   : > { %v1166_v18 = vrot.slane %v1165_v53, 4  ;;  %v1194_v34 = vrot.slane %v1192_v54, 5  ;;  %v1176_v17 = vrot.slane %v1175_v10, 4  ;;  %v1202_v35 = vshll.u32 %v6173_v49, 16  ;;  %5361 = vmatprep.mubr.msk.bf16.mxu0 %vm498_vm2, %v5672_v1 }
  0x65   : > { %v1198_v42 = vrot.slane %v1196_v63, 4  ;;  %vm1499_vm6 = vcmask 1042432   ;;  %v1189_v9 = vor.u32 %v1188_v26, %v1185_v47  ;;  %vm1500_vm7 = vcmask 1046532  }
  0x66   : > { %5376 = vmatmul.mubr.msk.bf16.gmra.mxu1 %vm498_vm2, %v6180_v48  ;;  %v1171_v23 = vsel %vm5866_vm5, %v1166_v18, %v1170_v61  ;;  %v4823_v15 = vrot.slane %v1475_v50, 9  ;;  %v1181_v36 = vsel %vm5866_vm5, %v1176_v17, %v1180_v20  ;;  %v1204_v52 = vrot.slane %v1202_v35, 5  ;;  %vm6192_vm8 = vmor %vm1499_vm6, %vm1500_vm7  ;;  %v1477_v35 = vld [vmem:[%s5822_s25 + $0x18] sm:$0xe]  ;;  %v1478_v17 = vld [vmem:[%s5822_s25 + $0x24] sm:$0xe] }
  0x67   : > { %v1199_v40 = vor.u32 %v1198_v42, %v1194_v34  ;;  %v8085_v53 = vmov 0  ;;  %v4824_v1 = vrot.slane %v1476_v11, 9  ;;  %v6196_v21 = vcombine.low %v1171_v23, %v1181_v36 }
  0x68   : > { %v8086_v53 = vsel %vm6192_vm8, 4294967295, %v8085_v53  ;;  %v1190_v54 = vrot.slane %v1189_v9, 4  ;;  %v8088_v61 = vrot.slane %v5832_v8, 5  ;;  %v8089_v47 = vrot.slane %v5845_v19, 5  ;;  %v1480_v9 = vld [vmem:[%s5822_s25 + $0x3c] sm:$0xe] }
  0x69   : > { %8087 = vst [vmem:[#allocation13_spill] sm:$0xff] %v8086_v53  ;;  %v1200_v63 = vrot.slane %v1199_v40, 4  ;;  %v8090_v18 = vrot.slane %v5840_v14, 5  ;;  %v8091_v8 = vrot.slane %v5856_v28, 5  ;;  %5379 = vmatprep.mubr.msk.bf16.mxu1 %vm498_vm2, %v6196_v21  ;;  %v4825_v42 = vrot.slane %v1477_v35, 9 }
  0x6a   : > { %v1505_v10 = vsel %vm6192_vm8, %v4823_v15, %v8088_v61  ;;  %v1508_v20 = vsel %vm6192_vm8, %v5852_v24, %v8089_v47  ;;  %v1195_v19 = vsel %vm5866_vm5, %v1190_v54, %v1194_v34  ;;  %v1518_v23 = vrot.slane %v5875_v43, 5  ;;  %v1482_v61 = vld [vmem:[%s5822_s25 + $0x54] sm:$0xe]  ;;  %v4865_v35 = vld [vmem:[%s5822_s25 + $0xc] sm:$0xe] }
  0x6b   : > { %v4832_v50 = vcombine.low %v1505_v10, %v1508_v20  ;;  %v1512_v26 = vsel %vm6192_vm8, %v4824_v1, %v8090_v18  ;;  %v1515_v11 = vsel %vm6192_vm8, %v5861_v29, %v8091_v8  ;;  %v1205_v14 = vsel %vm5866_vm5, %v1200_v63, %v1204_v52  ;;  %5362 = vmatmul.mubr.msk.bf16.gmra.mxu0 %vm498_vm2, %v5673_v31  ;;  %v1479_v52 = vld [vmem:[%s5822_s25 + $0x30] sm:$0xe]  ;;  %v1481_v8 = vld [vmem:[%s5822_s25 + $0x48] sm:$0xe] }
  0x6c   : > { %v4833_v24 = vcombine.low %v1512_v26, %v1515_v11  ;;  %v1521_v28 = vrot.slane %v5893_v2, 5  ;;  %v6228_v15 = vcombine.low %v1195_v19, %v1205_v14  ;;  %v4826_v29 = vrot.slane %v1478_v17, 9  ;;  %v4866_v17 = vld [vmem:[%s5822_s25 + $0x18] sm:$0xe] }
  0x6d   : > { %v1525_v36 = vrot.slane %v5886_v57, 5  ;;  %v1528_v34 = vrot.slane %v5904_v12, 5  ;;  %5385 = vmatprep.mubr.msk.bf16.mxu0 %vm498_vm2, %v4832_v50  ;;  %v1519_v40 = vsel %vm6192_vm8, %v4825_v42, %v1518_v23  ;;  %v1520_v43 = vrot.slane %v1518_v23, 4  ;;  %v6275_v23 = vld [vmem:[%s8018_s1 + $0x12] sm:$0x3] }
  0x6e   : > { %5380 = vmatmul.mubr.msk.bf16.gmra.mxu1 %vm498_vm2, %v6228_v15  ;;  %v1532_v57 = vrot.slane %v5915_v27, 5  ;;  %v4828_v54 = vrot.slane %v1480_v9, 9  ;;  %v1539_v31 = vrot.slane %v5922_v41, 5  ;;  %v1811_v10 = vsel %vm523_vm1, %v6098_v39, 0 }
  0x6f   : > { %v6241_v2 = vsel %vm6192_vm8, %v4826_v29, %v1525_v36  ;;  %v1527_v1 = vrot.slane %v1525_v36, 4  ;;  %5403 = vmatprep.mubr.msk.bf16.mxu1 %vm498_vm2, %v5895_v3  ;;  %v1522_v12 = vsel %vm6192_vm8, %v1520_v43, %v1521_v28  ;;  %v4827_v20 = vrot.slane %v1479_v52, 9  ;;  %v6293_v36 = vld [vmem:[%s8018_s1 + $0x10] sm:$0x3] }
  0x70   : > { %v1542_v27 = vrot.slane %v5938_v62, 5  ;;  %v4834_v63 = vcombine.low %v1519_v40, %v1522_v12  ;;  %v6259_v50 = vsel %vm6192_vm8, %v4828_v54, %v1539_v31  ;;  %v1541_v41 = vrot.slane %v1539_v31, 4  ;;  %v4868_v52 = vld [vmem:[%s5822_s25 + $0x30] sm:$0xe] }
  0x71   : > { %v1529_v47 = vsel %vm6192_vm8, %v1527_v1, %v1528_v34  ;;  %v2065_v18 = vsel %vm523_vm1, %v6106_v37, 0  ;;  %v1534_v26 = vrot.slane %v1532_v57, 4  ;;  %v1535_v39 = vrot.slane %v5932_v56, 5 }
  0x72   : > { %v4835_v3 = vcombine.low %v6241_v2, %v1529_v47  ;;  %v4830_v11 = vrot.slane %v1482_v61, 9  ;;  %v6268_v62 = vsel %vm6192_vm8, %v1541_v41, %v1542_v27  ;;  %v1553_v19 = vrot.slane %v5971_v38, 5  ;;  %v4870_v47 = vld [vmem:[%s5822_s25 + $0x48] sm:$0xe]  ;;  %v4867_v41 = vld [vmem:[%s5822_s25 + $0x24] sm:$0xe] }
  0x73   : > { %v1556_v14 = vrot.slane %v5989_v58, 5  ;;  %v4873_v42 = vrot.slane %v4865_v35, 9  ;;  %5386 = vmatmul.mubr.msk.bf16.vlgmr.msra.gmra.mxu0 %vm498_vm2, %v4833_v24  ;;  %v1533_v56 = vsel %vm6192_vm8, %v4827_v20, %v1532_v57  ;;  %v4837_v37 = vcombine.low %v6259_v50, %v6268_v62 }
  0x74   : > { %v1546_v28 = vrot.slane %v5946_v6, 5  ;;  %v1960_v38 = vrot.slane %v6009_v30, 5  ;;  %5420 = vmatpush3.bf16.msra.mxu0 %v1811_v10  ;;  %5389 = vmatprep.mubr.msk.bf16.mxu0 %vm498_vm2, %v4834_v63  ;;  %v6287_v58 = vsel %vm6192_vm8, %v4830_v11, %v1553_v19  ;;  %v1555_v9 = vrot.slane %v1553_v19, 4 }
  0x75   : > { %v1963_v24 = vrot.slane %v6017_v44, 5  ;;  %v4874_v29 = vrot.slane %v4866_v17, 9  ;;  %v1536_v6 = vsel %vm6192_vm8, %v1534_v26, %v1535_v39  ;;  %v1967_v40 = vrot.slane %v6025_v60, 5  ;;  %5607 = vmatprep.subr.msk.bf16.mxu0 %vm523_vm1, %v6275_v23  ;;  %v4872_v39 = vld [vmem:[%s5822_s25 + $0x60] sm:$0xe] }
  0x76   : > { %5404 = vmatmul.mubr.msk.bf16.vlgmr.msra.gmra.mxu1 %vm498_vm2, %v5909_v16  ;;  %v6301_v30 = vsel %vm6192_vm8, %v4873_v42, %v1960_v38  ;;  %v1962_v34 = vrot.slane %v1960_v38, 4  ;;  %v4829_v44 = vrot.slane %v1481_v8, 9  ;;  %v6310_v16 = vsel %vm6192_vm8, %v1555_v9, %v1556_v14 }
  0x77   : > { %5438 = vmatpush3.bf16.msra.mxu1 %v2065_v18  ;;  %5407 = vmatprep.mubr.msk.bf16.mxu1 %vm498_vm2, %v5941_v0  ;;  %v1970_v43 = vrot.slane %v6031_v7, 5  ;;  %v4839_v2 = vcombine.low %v6287_v58, %v6310_v16  ;;  %v6322_v1 = vsel %vm6192_vm8, %v4874_v29, %v1967_v40  ;;  %v1969_v0 = vrot.slane %v1967_v40, 4 }
  0x78   : > { %v6318_v60 = vsel %vm6192_vm8, %v1962_v34, %v1963_v24  ;;  %5608 = vmatprep.subr.msk.bf16.mxu1 %vm523_vm1, %v6293_v36  ;;  %v4836_v57 = vcombine.low %v1533_v56, %v1536_v6  ;;  %v1548_v54 = vrot.slane %v1546_v28, 4  ;;  %v1549_v7 = vrot.slane %v5985_v51, 5  ;;  %v8093_v34 = vld [vmem:[#allocation8_spill] sm:$0xff] }
  0x79   : > { %v4882_v12 = vcombine.low %v6301_v30, %v6318_v60  ;;  %v6331_v31 = vsel %vm6192_vm8, %v1969_v0, %v1970_v43  ;;  %v4876_v61 = vrot.slane %v4868_v52, 9  ;;  %v1981_v10 = vrot.slane %v6065_v25, 5  ;;  %v6394_v43 = vld [vmem:[%s5822_s25 + $0xc] sm:$0xf]  ;;  %v8094_v52 = vld [vmem:[#allocation2_spill] sm:$0xff] }
  0x7a   : > { %v4883_v20 = vcombine.low %v6322_v1, %v6331_v31  ;;  %v1984_v27 = vrot.slane %v6078_v46, 5  ;;  %v1547_v25 = vsel %vm6192_vm8, %v4829_v44, %v1546_v28  ;;  %v1550_v63 = vsel %vm6192_vm8, %v1548_v54, %v1549_v7  ;;  %v8092_v28 = vld [vmem:[#allocation5_spill] sm:$0xff]  ;;  %v8095_v0 = vld [vmem:[#allocation10_spill] sm:$0xff]  ;;  %v8096_v54 = vld [vmem:[#allocation3_spill] sm:$0xff] }
  0x7b   : > { %5390 = vmatmul.mubr.msk.bf16.gmra.mxu0 %vm498_vm2, %v4835_v3  ;;  %v6341_v51 = vsel %vm6192_vm8, %v4876_v61, %v1981_v10  ;;  %v1983_v35 = vrot.slane %v1981_v10, 4  ;;  %v4878_v18 = vrot.slane %v4870_v47, 9  ;;  %v1995_v46 = vrot.slane %v6120_v45, 5  ;;  %v6422_v47 = vld [vmem:[%s5822_s25 + $0x1c] sm:$0xf] }
  0x7c   : > { %5393 = vmatprep.mubr.msk.bf16.mxu0 %vm498_vm2, %v4836_v57  ;;  %v1974_v3 = vrot.slane %v6049_v55, 5  ;;  %v4838_v17 = vcombine.low %v1547_v25, %v1550_v63  ;;  %v4869_v55 = vld [vmem:[%s5822_s25 + $0x3c] sm:$0xe]  ;;  %v1988_v19 = vrot.slane %v6084_v22, 5  ;;  %v4875_v14 = vrot.slane %v4867_v41, 9 }
  0x7d   : > { %v6355_v26 = vsel %vm6192_vm8, %v1983_v35, %v1984_v27  ;;  %v6364_v11 = vsel %vm6192_vm8, %v4878_v18, %v1995_v46  ;;  %v1997_v45 = vrot.slane %v1995_v46, 4  ;;  %v2009_v56 = vrot.slane %v6162_v59, 5  ;;  %v6405_v57 = vld [vmem:[%s5822_s25 + $0x18] sm:$0xf] }
  0x7e   : > { %5408 = vmatmul.mubr.msk.bf16.gmra.mxu1 %vm498_vm2, %v5954_v13  ;;  %v4885_v8 = vcombine.low %v6341_v51, %v6355_v26  ;;  %v1998_v13 = vrot.slane %v6130_v32, 5  ;;  %v1977_v38 = vrot.slane %v8092_v28, 5  ;;  %v2012_v32 = vrot.slane %v6173_v49, 5  ;;  %v4871_v49 = vld [vmem:[%s5822_s25 + $0x54] sm:$0xe] }
  0x7f   : > { %5411 = vmatprep.mubr.msk.bf16.mxu1 %vm498_vm2, %v5997_v4  ;;  %v4880_v4 = vrot.slane %v4872_v39, 9  ;;  %v1976_v22 = vrot.slane %v1974_v3, 4  ;;  %v4877_v24 = vrot.slane %v4869_v55, 9  ;;  %v2011_v6 = vrot.slane %v2009_v56, 4  ;;  %v6435_v39 = vld [vmem:[%s5822_s25 + $0x24] sm:$0xf] }
  0x80   : > { %v6371_v42 = vsel %vm6192_vm8, %v1997_v45, %v1998_v13  ;;  %v1990_v59 = vrot.slane %v1988_v19, 4  ;;  %v1991_v40 = vrot.slane %v8093_v34, 5  ;;  %v2002_v50 = vrot.slane %v8095_v0, 5  ;;  %v6438_v45 = vld [vmem:[%s5822_s25 + $0x28] sm:$0xf] }
  0x81   : > { %v6380_v29 = vsel %vm6192_vm8, %v4880_v4, %v2009_v56  ;;  %v6391_v44 = vsel %vm6192_vm8, %v2011_v6, %v2012_v32  ;;  %v6411_v7 = vsel %vm6192_vm8, %v4875_v14, %v1974_v3  ;;  %v6415_v61 = vsel %vm6192_vm8, %v1976_v22, %v1977_v38  ;;  %8097 = vst [vmem:[#allocation5_spill] sm:$0xff] %v6438_v45  ;;  %v6462_v38 = vld [vmem:[%s5822_s25 + $0x14] sm:$0x1]  ;;  %v6465_v32 = vld [vmem:[%s5822_s25 + $0x30] sm:$0xf]  ;;  %v8099_v22 = vld [vmem:[#allocation6_spill] sm:$0xff] }
  0x82   : > { %v6419_v10 = vsel %vm6192_vm8, %v4877_v24, %v1988_v19  ;;  %v6426_v27 = vsel %vm6192_vm8, %v1990_v59, %v1991_v40  ;;  %v4879_v35 = vrot.slane %v4871_v49, 9  ;;  %v2428_v25 = vshrl.u32 %v6394_v43, 16  ;;  %8098 = vst [vmem:[#allocation8_spill] sm:$0xff] %v6462_v38  ;;  %v6472_v6 = vld [vmem:[%s5822_s25 + $0x34] sm:$0xf] }
  0x83   : > { %5394 = vmatmul.mubr.msk.bf16.gmra.mxu0 %vm498_vm2, %v4837_v37  ;;  %v6402_v37 = vld [vmem:[%s5822_s25 + $0x10] sm:$0xf]  ;;  %v2431_v63 = vshll.u32 %v6394_v43, 16  ;;  %v2452_v18 = vshrl.u32 %v6405_v57, 16  ;;  %v2455_v46 = vshll.u32 %v6405_v57, 16  ;;  %v2670_v13 = vsel %vm523_vm1, %v6275_v23, 0 }
  0x84   : > { %5397 = vmatprep.mubr.msk.bf16.mxu0 %vm498_vm2, %v4838_v17  ;;  %v2441_v41 = vshrl.u32 %v6402_v37, 16  ;;  %v2437_v3 = vshll.u32 %v6402_v37, 16  ;;  %v2004_v17 = vrot.slane %v2002_v50, 4  ;;  %v2005_v55 = vrot.slane %v6150_v5, 5  ;;  %8100 = vst [vmem:[#allocation2_spill] sm:$0xff] %v6472_v6  ;;  %v8101_v59 = vld [vmem:[#allocation4_spill] sm:$0xff] }
  0x85   : > { %v6445_v19 = vsel %vm523_vm1, %v6293_v36, 0  ;;  %v4884_v14 = vcombine.low %v6411_v7, %v6415_v61  ;;  %v2465_v4 = vshrl.u32 %v6422_v47, 16  ;;  %v2461_v56 = vshll.u32 %v6422_v47, 16  ;;  %v6481_v40 = vld [vmem:[%s5822_s25 + $0x20] sm:$0x1] }
  0x86   : > { %5412 = vmatmul.mubr.msk.bf16.gmra.mxu1 %vm498_vm2, %v8094_v52  ;;  %v4886_v5 = vcombine.low %v6419_v10, %v6426_v27  ;;  %v6459_v23 = vsel %vm6192_vm8, %v4879_v35, %v2002_v50  ;;  %v2430_v36 = vrot.slane %v2428_v25, 4  ;;  %v2433_v28 = vrot.slane %v2431_v63, 5  ;;  %8102 = vst [vmem:[#allocation10_spill] sm:$0xff] %v6481_v40  ;;  %v8104_v63 = vld [vmem:[#allocation7_spill] sm:$0xff] }
  0x87   : > { %5415 = vmatprep.mubr.msk.bf16.mxu1 %vm498_vm2, %v8096_v54  ;;  %v2454_v58 = vrot.slane %v2452_v18, 4  ;;  %v2457_v16 = vrot.slane %v2455_v46, 5  ;;  %v6469_v24 = vrot.slane %v2437_v3, 5  ;;  %v6478_v34 = vsel %vm6192_vm8, %v2004_v17, %v2005_v55  ;;  %v6502_v17 = vld [vmem:[%s5822_s25 + $0x3c] sm:$0xf] }
  0x88   : > { %v2476_v49 = vshrl.u32 %v6435_v39, 16  ;;  %v2479_v52 = vshll.u32 %v6435_v39, 16  ;;  %v2489_v0 = vshrl.u32 %v6438_v45, 16  ;;  %v6490_v50 = vrot.slane %v2461_v56, 5  ;;  %v4990_v55 = vld [vmem:[%s8018_s1 + $0x14] sm:$0x3] }
  0x89   : > { %v2467_v54 = vrot.slane %v2465_v4, 4  ;;  %v2500_v35 = vshrl.u32 %v6465_v32, 16  ;;  %v2503_v25 = vshll.u32 %v6465_v32, 16  ;;  %v2447_v18 = vshll.u32 %v6462_v38, 16  ;;  %v6693_v38 = vld [vmem:[%s5822_s25 + $0x28] sm:$0xf] }
  0x8a   : > { %v2513_v46 = vshrl.u32 %v6472_v6, 16  ;;  %v2458_v60 = vor.u32 %v2457_v16, %v2454_v58  ;;  %v2485_v3 = vshll.u32 %v6438_v45, 16  ;;  %v2478_v4 = vrot.slane %v2476_v49, 4  ;;  %v6510_v16 = vld [vmem:[%s5822_s25 + $0x2c] sm:$0x1] }
  0x8b   : > { %5398 = vmatmul.mubr.msk.bf16.gmra.mxu0 %vm498_vm2, %v4839_v2  ;;  %v2443_v2 = vrot.slane %v2441_v41, 4  ;;  %v2434_v41 = vor.u32 %v2433_v28, %v2430_v36  ;;  %v2481_v56 = vrot.slane %v2479_v52, 5  ;;  %v2491_v36 = vrot.slane %v2489_v0, 4  ;;  %8103 = vst [vmem:[#allocation3_spill] sm:$0xff] %v6510_v16  ;;  %v8105_v0 = vld [vmem:[#allocation9_spill] sm:$0xff] }
  0x8c   : > { %5421 = vmatprep.mubr.msk.bf16.mxu0 %vm498_vm2, %v8099_v22  ;;  %v2509_v28 = vshll.u32 %v6472_v6, 16  ;;  %v2468_v22 = vor.u32 %v2467_v54, %v6490_v50  ;;  %v2505_v58 = vrot.slane %v2503_v25, 5  ;;  %v2515_v9 = vrot.slane %v2513_v46, 4  ;;  %v6530_v46 = vld [vmem:[%s5822_s25 + $0x38] sm:$0x1] }
  0x8d   : > { %v2444_v30 = vor.u32 %v2443_v2, %v6469_v24  ;;  %v6512_v2 = vrot.slane %v2485_v3, 5  ;;  %v2524_v49 = vshrl.u32 %v6502_v17, 16  ;;  %v2527_v52 = vshll.u32 %v6502_v17, 16  ;;  %8106 = vst [vmem:[#allocation6_spill] sm:$0xff] %v6530_v46 }
  0x8e   : > { %5416 = vmatmul.mubr.msk.bf16.gmra.mxu1 %vm498_vm2, %v8101_v59  ;;  %v2502_v59 = vrot.slane %v2500_v35, 4  ;;  %v6516_v62 = vrot.slane %v2509_v28, 5  ;;  %v4888_v54 = vcombine.low %v6459_v23, %v6478_v34  ;;  %v2435_v25 = vrot.slane %v2434_v41, 4  ;;  %v6685_v23 = vld [vmem:[%s5822_s25 + $0x68] sm:$0x1] }
  0x8f   : > { %5439 = vmatprep.mubr.msk.bf16.mxu1 %vm498_vm2, %v4882_v12  ;;  %v2471_v12 = vshll.u32 %v6481_v40, 16  ;;  %v2449_v3 = vrot.slane %v2447_v18, 5  ;;  %v2482_v28 = vor.u32 %v2481_v56, %v2478_v4  ;;  %v2495_v41 = vshll.u32 %v6510_v16, 16  ;;  %v6690_v16 = vld [vmem:[%s5822_s25 + $0x20] sm:$0x1] }
  0x90   : > { %v2459_v18 = vrot.slane %v2458_v60, 4  ;;  %v2469_v1 = vrot.slane %v2468_v22, 4  ;;  %v2519_v4 = vshll.u32 %v6530_v46, 16  ;;  %v2526_v56 = vrot.slane %v2524_v49, 4  ;;  %v6570_v49 = vld [vmem:[%s5822_s25 + $0x4c] sm:$0xf] }
  0x91   : > { %v2473_v31 = vrot.slane %v2471_v12, 5  ;;  %v2440_v7 = vsel %vm5866_vm5, %v2435_v25, %v6469_v24  ;;  %v6554_v61 = vsel %vm523_vm1, %v4990_v55, 0  ;;  %v2483_v12 = vrot.slane %v2482_v28, 4 }
  0x92   : > { %v2464_v24 = vsel %vm5866_vm5, %v2459_v18, %v6490_v50  ;;  %v2521_v28 = vrot.slane %v2519_v4, 5  ;;  %v6597_v4 = vld [vmem:[%s5822_s25 + $0x44] sm:$0x1]  ;;  %v8115_v27 = vcombine.low %v6364_v11, %v6371_v42  ;;  %v6677_v42 = vld [vmem:[%s5822_s25 + $0x5c] sm:$0x1]  ;;  %vm1372_vm9 = vcmask 64512  }
  0x93   : > { %5422 = vmatmul.mubr.msk.bf16.vlgmr.msra.gmra.mxu0 %vm498_vm2, %v8104_v63  ;;  %v5031_v63 = vld [vmem:[%s8018_s1 + $0x16] sm:$0x3]  ;;  %8110 = vst [vmem:[#allocation7_spill] sm:$0xff] %v6597_v4  ;;  %v5010_v11 = vld [vmem:[%s5822_s25 + $0x24] sm:$0xf]  ;;  %vm2384_vm10 = vcmask 125952  }
  0x94   : > { %5456 = vmatpush3.bf16.msra.mxu0 %v2670_v13  ;;  %5425 = vmatprep.mubr.msk.bf16.mxu0 %vm498_vm2, %v8105_v0  ;;  %v2445_v13 = vrot.slane %v2444_v30, 4  ;;  %v2492_v0 = vor.u32 %v2491_v36, %v6512_v2  ;;  %v2516_v30 = vor.u32 %v2515_v9, %v6516_v62  ;;  %v2529_v36 = vrot.slane %v2527_v52, 5 }
  0x95   : > { %5609 = vmatprep.subr.msk.bf16.mxu0 %vm523_vm1, %v4990_v55  ;;  %vm4544_vm11 = vcmask 57344  }
  0x96   : > { %5440 = vmatmul.mubr.msk.bf16.vlgmr.msra.gmra.mxu1 %vm498_vm2, %v4883_v20  ;;  %v2506_v20 = vor.u32 %v2505_v58, %v2502_v59  ;;  %v2450_v60 = vsel %vm5866_vm5, %v2445_v13, %v2449_v3  ;;  %v2493_v22 = vrot.slane %v2492_v0, 4  ;;  %v2497_v59 = vrot.slane %v2495_v41, 5  ;;  %v6564_v58 = vld [vmem:[%s5822_s25 + $0x40] sm:$0xf]  ;;  %v8108_v41 = vld [vmem:[#allocation12_spill] sm:$0xff] }
  0x97   : > { %5474 = vmatpush3.bf16.msra.mxu1 %v6445_v19  ;;  %5443 = vmatprep.mubr.msk.bf16.mxu1 %vm498_vm2, %v4884_v14  ;;  %v6548_v19 = vld [vmem:[%s5822_s25 + $0x48] sm:$0xf]  ;;  %v6557_v14 = vsel %vm523_vm1, %v5031_v63, 0  ;;  %v2474_v3 = vsel %vm5866_vm5, %v2469_v1, %v2473_v31  ;;  %v2517_v13 = vrot.slane %v2516_v30, 4  ;;  %v2530_v0 = vor.u32 %v2529_v36, %v2526_v56  ;;  %v6610_v36 = vld [vmem:[%s5822_s25 + $0x54] sm:$0xf] }
  0x98   : > { %5610 = vmatprep.subr.msk.bf16.mxu1 %vm523_vm1, %v5031_v63  ;;  %v2507_v55 = vrot.slane %v2506_v20, 4  ;;  %v2548_v52 = vshrl.u32 %v6548_v19, 16  ;;  %v2551_v25 = vshll.u32 %v6548_v19, 16  ;;  %v8107_v63 = vld [vmem:[#allocation11_spill] sm:$0xff]  ;;  %v6580_v50 = vcombine.low %v2440_v7, %v2450_v60  ;;  %v6621_v60 = vld [vmem:[%s5822_s25 + $0x58] sm:$0xf] }
  0x99   : > { %v2537_v20 = vshrl.u32 %v6564_v58, 16  ;;  %v2533_v9 = vshll.u32 %v6564_v58, 16  ;;  %v2488_v1 = vsel %vm5866_vm5, %v2483_v12, %v6512_v2  ;;  %v2498_v31 = vsel %vm5866_vm5, %v2493_v22, %v2497_v59  ;;  %v6624_v12 = vld [vmem:[%s5822_s25 + $0x60] sm:$0xf] }
  0x9a   : > { %8109 = vst [vmem:[#allocation4_spill] sm:$0xff] %v6580_v50  ;;  %v2561_v30 = vshrl.u32 %v6570_v49, 16  ;;  %v2557_v56 = vshll.u32 %v6570_v49, 16  ;;  %v6604_v51 = vcombine.low %v2464_v24, %v2474_v3  ;;  %v2512_v26 = vsel %vm5866_vm5, %v2507_v55, %v6516_v62  ;;  %v6632_v55 = vld [vmem:[%s5822_s25 + $0x64] sm:$0xf] }
  0x9b   : > { %5426 = vmatmul.mubr.msk.bf16.gmra.mxu0 %vm498_vm2, %v8107_v63  ;;  %v2553_v2 = vrot.slane %v2551_v25, 5  ;;  %v2522_v7 = vsel %vm5866_vm5, %v2517_v13, %v2521_v28  ;;  %v6626_v62 = vcombine.low %v2488_v1, %v2498_v31  ;;  %v6628_v22 = vrot.slane %v2533_v9, 5 }
  0x9c   : > { %5429 = vmatprep.mubr.msk.bf16.mxu0 %vm498_vm2, %v8108_v41  ;;  %8111 = vst [vmem:[#allocation9_spill] sm:$0xff] %v6604_v51  ;;  %v2539_v59 = vrot.slane %v2537_v20, 4  ;;  %v2543_v24 = vshll.u32 %v6597_v4, 16  ;;  %v6637_v25 = vrot.slane %v2557_v56, 5  ;;  %v2563_v63 = vrot.slane %v2561_v30, 4 }
  0x9d   : > { %8112 = vst [vmem:[#allocation11_spill] sm:$0xff] %v6626_v62  ;;  %v2572_v3 = vshrl.u32 %v6610_v36, 16  ;;  %v2575_v13 = vshll.u32 %v6610_v36, 16  ;;  %v6641_v28 = vcombine.low %v2512_v26, %v2522_v7  ;;  %v2596_v9 = vshrl.u32 %v6624_v12, 16  ;;  %v5007_v20 = vld [vmem:[%s5822_s25 + $0x18] sm:$0xf] }
  0x9e   : > { %5444 = vmatmul.mubr.msk.bf16.gmra.mxu1 %vm498_vm2, %v4885_v8  ;;  %v2550_v8 = vrot.slane %v2548_v52, 4  ;;  %v6635_v52 = vld [vmem:[%s5822_s25 + $0x50] sm:$0x1]  ;;  %v2599_v41 = vshll.u32 %v6624_v12, 16  ;;  %v2585_v31 = vshrl.u32 %v6621_v60, 16  ;;  %v2581_v30 = vshll.u32 %v6621_v60, 16 }
  0x9f   : > { %5447 = vmatprep.mubr.msk.bf16.mxu1 %vm498_vm2, %v4886_v5  ;;  %v6618_v5 = vrot.slane %v2530_v0, 4  ;;  %8113 = vst [vmem:[#allocation12_spill] sm:$0xff] %v6635_v52  ;;  %8114 = vst [vmem:[#allocation14_spill] sm:$0xff] %v6641_v28  ;;  %v2605_v56 = vshll.u32 %v6632_v55, 16  ;;  %v6656_v26 = vld [vmem:[%s5822_s25 + $0x1c] sm:$0xf]  ;;  %v2564_v10 = vor.u32 %v2563_v63, %v6637_v25 }
  0xa0   : > { %v2554_v0 = vor.u32 %v2553_v2, %v2550_v8  ;;  %v6661_v8 = vrot.slane %v2543_v24, 5  ;;  %v2567_v2 = vshll.u32 %v6635_v52, 16  ;;  %v2609_v7 = vshrl.u32 %v6632_v55, 16 }
  0xa1   : > { %v2574_v18 = vrot.slane %v2572_v3, 4  ;;  %v2577_v35 = vrot.slane %v2575_v13, 5  ;;  %v2601_v24 = vrot.slane %v2599_v41, 5  ;;  %v3163_v1 = vshll.u32 %v5007_v20, 16 }
  0xa2   : > { %v3169_v46 = vshll.u32 %v6656_v26, 16  ;;  %v2587_v63 = vrot.slane %v2585_v31, 4  ;;  %v6681_v3 = vrot.slane %v2605_v56, 5  ;;  %v3173_v13 = vshrl.u32 %v6656_v26, 16 }
  0xa3   : > { %5430 = vmatmul.mubr.msk.bf16.gmra.mxu0 %vm498_vm2, %v6180_v48  ;;  %v2540_v48 = vor.u32 %v2539_v59, %v6628_v22  ;;  %v2598_v59 = vrot.slane %v2596_v9, 4  ;;  %v2611_v34 = vrot.slane %v2609_v7, 4  ;;  %v3165_v9 = vrot.slane %v3163_v1, 5 }
  0xa4   : > { %5433 = vmatprep.mubr.msk.bf16.mxu0 %vm498_vm2, %v6196_v21  ;;  %v3160_v21 = vshrl.u32 %v5007_v20, 16  ;;  %v6687_v41 = vrot.slane %v3169_v46, 5  ;;  %v2555_v20 = vrot.slane %v2554_v0, 4  ;;  %v3175_v40 = vrot.slane %v3173_v13, 4 }
  0xa5   : > { %v3184_v52 = vshrl.u32 %v5010_v11, 16  ;;  %v2541_v53 = vrot.slane %v2540_v48, 4  ;;  %v2565_v31 = vrot.slane %v2564_v10, 4  ;;  %v2569_v56 = vrot.slane %v2567_v2, 5 }
  0xa6   : > { %5448 = vmatmul.mubr.msk.bf16.gmra.mxu1 %vm498_vm2, %v8115_v27  ;;  %v6679_v27 = vrot.slane %v2581_v30, 5  ;;  %v3187_v30 = vshll.u32 %v5010_v11, 16  ;;  %v2578_v4 = vor.u32 %v2577_v35, %v2574_v18  ;;  %v2591_v46 = vshll.u32 %v6677_v42, 16 }
  0xa7   : > { %5451 = vmatprep.mubr.msk.bf16.mxu1 %vm498_vm2, %v4888_v54  ;;  %v3162_v54 = vrot.slane %v3160_v21, 4  ;;  %v2602_v1 = vor.u32 %v2601_v24, %v2598_v59  ;;  %v2615_v0 = vshll.u32 %v6685_v23, 16  ;;  %v2612_v48 = vor.u32 %v2611_v34, %v6681_v3 }
  0xa8   : > { %v2588_v7 = vor.u32 %v2587_v63, %v6679_v27  ;;  %v3176_v35 = vor.u32 %v3175_v40, %v6687_v41  ;;  %v3179_v18 = vshll.u32 %v6690_v16, 16  ;;  %v3186_v2 = vrot.slane %v3184_v52, 4 }
  0xa9   : > { %v3166_v10 = vor.u32 %v3165_v9, %v3162_v54  ;;  %v3189_v21 = vrot.slane %v3187_v30, 5  ;;  %v3193_v59 = vshll.u32 %v6693_v38, 16  ;;  %v3197_v24 = vshrl.u32 %v6693_v38, 16  ;;  %v5013_v54 = vld [vmem:[%s5822_s25 + $0x30] sm:$0xf] }
  0xaa   : > { %v8117_v11 = vcombine.low %v6394_v43, %v6402_v37  ;;  %v2546_v40 = vsel %vm5866_vm5, %v2541_v53, %v6661_v8  ;;  %v2579_v63 = vrot.slane %v2578_v4, 4  ;;  %v2589_v13 = vrot.slane %v2588_v7, 4  ;;  %v6727_v8 = vld [vmem:[%s5822_s25 + $0x2c] sm:$0x1] }
  0xab   : > { %5434 = vmatmul.mubr.msk.bf16.gmra.mxu0 %vm498_vm2, %v6228_v15  ;;  %v8116_v15 = vcombine.low %v6380_v29, %v6391_v44  ;;  %v2560_v29 = vsel %vm5866_vm5, %v2555_v20, %v6637_v25  ;;  %v2570_v44 = vsel %vm5866_vm5, %v2565_v31, %v2569_v56  ;;  %v2593_v43 = vrot.slane %v2591_v46, 5  ;;  %v5065_v46 = vld [vmem:[%s8018_s1 + $0x1a] sm:$0x3] }
  0xac   : > { %5457 = vmatprep.mubr.msk.bf16.mxu0 %vm498_vm2, %v6580_v50  ;;  %v2603_v34 = vrot.slane %v2602_v1, 4  ;;  %v2613_v9 = vrot.slane %v2612_v48, 4  ;;  %v2617_v30 = vrot.slane %v2615_v0, 5  ;;  %v3181_v53 = vrot.slane %v3179_v18, 5  ;;  %v6744_v1 = vld [vmem:[%s5822_s25 + $0x34] sm:$0xf] }
  0xad   : > { %v3190_v25 = vor.u32 %v3189_v21, %v3186_v2  ;;  %v6729_v20 = vrot.slane %v3193_v59, 5  ;;  %v3199_v31 = vrot.slane %v3197_v24, 4  ;;  %v8118_v4 = vsel %vm5866_vm5, %v6618_v5, %v6628_v22  ;;  %v5048_v21 = vld [vmem:[%s8018_s1 + $0x18] sm:$0x3]  ;;  %v6867_v50 = vld [vmem:[%s5822_s25 + $0x50] sm:$0x1] }
  0xae   : > { %5452 = vmatmul.mubr.msk.bf16.gmra.mxu1 %vm498_vm2, %v8116_v15  ;;  %v3167_v15 = vrot.slane %v3166_v10, 4  ;;  %v6736_v56 = vcombine.low %v8118_v4, %v2546_v40  ;;  %v3208_v0 = vshrl.u32 %v5013_v54, 16  ;;  %v3211_v48 = vshll.u32 %v5013_v54, 16  ;;  %8130 = vst [vmem:[#allocation22_spill] sm:$0xff] %v6867_v50 }
  0xaf   : > { %5475 = vmatprep.mubr.msk.bf16.mxu1 %vm498_vm2, %v8117_v11  ;;  %v3177_v11 = vrot.slane %v3176_v35, 4  ;;  %v6748_v10 = vcombine.low %v2560_v29, %v2570_v44  ;;  %v2584_v5 = vsel %vm5866_vm5, %v2579_v63, %v6679_v27  ;;  %v2594_v22 = vsel %vm5866_vm5, %v2589_v13, %v2593_v43  ;;  %v5016_v29 = vld [vmem:[%s5822_s25 + $0x3c] sm:$0xf] }
  0xb0   : > { %8119 = vst [vmem:[#allocation15_spill] sm:$0xff] %v6736_v56  ;;  %v3203_v35 = vshll.u32 %v6727_v8, 16  ;;  %v2608_v18 = vsel %vm5866_vm5, %v2603_v34, %v6681_v3  ;;  %v2618_v2 = vsel %vm5866_vm5, %v2613_v9, %v2617_v30  ;;  %v3172_v27 = vsel %vm5866_vm5, %v3167_v15, %v6687_v41  ;;  %v6781_v41 = vld [vmem:[%s5822_s25 + $0x38] sm:$0x1]  ;;  %v6794_v34 = vld [vmem:[%s5822_s25 + $0x40] sm:$0xf] }
  0xb1   : > { %8120 = vst [vmem:[#allocation16_spill] sm:$0xff] %v6748_v10  ;;  %v3182_v3 = vsel %vm5866_vm5, %v3177_v11, %v3181_v53  ;;  %v6776_v59 = vrot.slane %v3190_v25, 4  ;;  %v3200_v24 = vor.u32 %v3199_v31, %v6729_v20  ;;  %v3217_v40 = vshll.u32 %v6744_v1, 16  ;;  %8124 = vst [vmem:[#allocation18_spill] sm:$0xff] %v6794_v34  ;;  %v5019_v30 = vld [vmem:[%s5822_s25 + $0x48] sm:$0xf] }
  0xb2   : > { %v6790_v44 = vcombine.low %v2584_v5, %v2594_v22  ;;  %v3210_v63 = vrot.slane %v3208_v0, 4  ;;  %v3213_v13 = vrot.slane %v3211_v48, 5  ;;  %v3221_v43 = vshrl.u32 %v6744_v1, 16  ;;  %v6814_v31 = vld [vmem:[%s5822_s25 + $0x4c] sm:$0xf] }
  0xb3   : > { %5458 = vmatmul.mubr.msk.bf16.vlgmr.msra.gmra.mxu0 %vm498_vm2, %v6604_v51  ;;  %v6796_v54 = vcombine.low %v2608_v18, %v2618_v2  ;;  %v6798_v9 = vrot.slane %v3203_v35, 5  ;;  %v6804_v15 = vcombine.low %v3172_v27, %v3182_v3  ;;  %v6807_v53 = vsel %vm523_vm1, %v5065_v46, 0  ;;  %8125 = vst [vmem:[#allocation19_spill] sm:$0xff] %v6814_v31  ;;  %v5022_v22 = vld [vmem:[%s5822_s25 + $0x54] sm:$0xf] }
  0xb4   : > { %5492 = vmatpush3.bf16.msra.mxu0 %v6554_v61  ;;  %5461 = vmatprep.mubr.msk.bf16.mxu0 %vm498_vm2, %v6626_v62  ;;  %v8121_v61 = vcombine.low %v6405_v57, %v6422_v47  ;;  %v8122_v57 = vcombine.low %v6435_v39, %v6438_v45  ;;  %8123 = vst [vmem:[#allocation17_spill] sm:$0xff] %v6790_v44  ;;  %v6810_v11 = vsel %vm523_vm1, %v5048_v21, 0  ;;  %v3227_v25 = vshll.u32 %v6781_v41, 16  ;;  %v6827_v27 = vld [vmem:[%s5822_s25 + $0x58] sm:$0xf] }
  0xb5   : > { %5611 = vmatprep.subr.msk.bf16.mxu0 %vm523_vm1, %v5065_v46  ;;  %v6820_v0 = vrot.slane %v3200_v24, 4  ;;  %v6822_v48 = vrot.slane %v3217_v40, 5  ;;  %v3232_v5 = vshrl.u32 %v5016_v29, 16  ;;  %v3214_v46 = vor.u32 %v3213_v13, %v3210_v63  ;;  %8126 = vst [vmem:[#allocation20_spill] sm:$0xff] %v6827_v27 }
  0xb6   : > { %5476 = vmatmul.mubr.msk.bf16.vlgmr.msra.gmra.mxu1 %vm498_vm2, %v8121_v61  ;;  %v3223_v35 = vrot.slane %v3221_v43, 4  ;;  %v3235_v18 = vshll.u32 %v5016_v29, 16  ;;  %v3241_v2 = vshll.u32 %v6794_v34, 16  ;;  %v3256_v61 = vshrl.u32 %v5019_v30, 16  ;;  %v6859_v43 = vld [vmem:[%s5822_s25 + $0x64] sm:$0xf] }
  0xb7   : > { %5510 = vmatpush3.bf16.msra.mxu1 %v6557_v14  ;;  %5479 = vmatprep.mubr.msk.bf16.mxu1 %vm498_vm2, %v8122_v57  ;;  %v3259_v3 = vshll.u32 %v5019_v30, 16  ;;  %v3265_v24 = vshll.u32 %v6814_v31, 16  ;;  %v6835_v40 = vrot.slane %v3227_v25, 5  ;;  %v3269_v29 = vshrl.u32 %v6814_v31, 16  ;;  %v5025_v14 = vld [vmem:[%s5822_s25 + $0x60] sm:$0xf] }
  0xb8   : > { %5612 = vmatprep.subr.msk.bf16.mxu1 %vm523_vm1, %v5048_v21  ;;  %v3245_v21 = vshrl.u32 %v6794_v34, 16  ;;  %v3280_v57 = vshrl.u32 %v5022_v22, 16  ;;  %v3283_v63 = vshll.u32 %v5022_v22, 16  ;;  %v8127_v13 = vcombine.low %v6465_v32, %v6472_v6  ;;  %8129 = vst [vmem:[#allocation21_spill] sm:$0xff] %v6859_v43  ;;  %v6915_v34 = vld [vmem:[%s5822_s25 + $0x74] sm:$0x1] }
  0xb9   : > { %v3234_v30 = vrot.slane %v3232_v5, 4  ;;  %v3289_v39 = vshll.u32 %v6827_v27, 16  ;;  %v3293_v25 = vshrl.u32 %v6827_v27, 16  ;;  %v8128_v7 = vcombine.low %v6502_v17, %v6564_v58  ;;  %v6862_v5 = vld [vmem:[%s5822_s25 + $0x44] sm:$0x1] }
  0xba   : > { %v6853_v32 = vrot.slane %v3214_v46, 4  ;;  %v3224_v22 = vor.u32 %v3223_v35, %v6822_v48  ;;  %v6856_v4 = vrot.slane %v3241_v2, 5  ;;  %v3247_v52 = vrot.slane %v3245_v21, 4  ;;  %v5028_v27 = vld [vmem:[%s5822_s25 + $0x6c] sm:$0xf] }
  0xbb   : > { %5462 = vmatmul.mubr.msk.bf16.gmra.mxu0 %vm498_vm2, %v6641_v28  ;;  %v3261_v28 = vrot.slane %v3259_v3, 5  ;;  %v6864_v62 = vrot.slane %v3265_v24, 5  ;;  %v3271_v17 = vrot.slane %v3269_v29, 4  ;;  %v3282_v51 = vrot.slane %v3280_v57, 4  ;;  %v6881_v57 = vld [vmem:[%s5822_s25 + $0x68] sm:$0x1] }
  0xbc   : > { %5465 = vmatprep.mubr.msk.bf16.mxu0 %vm498_vm2, %v6736_v56  ;;  %v3258_v56 = vrot.slane %v3256_v61, 4  ;;  %v3304_v46 = vshrl.u32 %v5025_v14, 16  ;;  %v6869_v35 = vrot.slane %v3289_v39, 5  ;;  %v3307_v2 = vshll.u32 %v5025_v14, 16  ;;  %v6874_v61 = vld [vmem:[%s5822_s25 + $0x5c] sm:$0x1] }
  0xbd   : > { %v3313_v6 = vshll.u32 %v6859_v43, 16  ;;  %v3225_v45 = vrot.slane %v3224_v22, 4  ;;  %v3251_v21 = vshll.u32 %v6862_v5, 16  ;;  %v3317_v24 = vshrl.u32 %v6859_v43, 16  ;;  %8131 = vst [vmem:[#allocation23_spill] sm:$0xff] %v6881_v57 }
  0xbe   : > { %5480 = vmatmul.mubr.msk.bf16.gmra.mxu1 %vm498_vm2, %v8127_v13  ;;  %v3237_v13 = vrot.slane %v3235_v18, 5  ;;  %v3295_v18 = vrot.slane %v3293_v25, 4  ;;  %v3306_v3 = vrot.slane %v3304_v46, 4  ;;  %v3248_v39 = vor.u32 %v3247_v52, %v6856_v4 }
  0xbf   : > { %5483 = vmatprep.mubr.msk.bf16.mxu1 %vm498_vm2, %v8128_v7  ;;  %v3285_v7 = vrot.slane %v3283_v63, 5  ;;  %v3309_v14 = vrot.slane %v3307_v2, 5  ;;  %v6883_v63 = vrot.slane %v3313_v6, 5  ;;  %v3262_v25 = vor.u32 %v3261_v28, %v3258_v56 }
  0xc0   : > { %v3238_v29 = vor.u32 %v3237_v13, %v3234_v30  ;;  %v3272_v22 = vor.u32 %v3271_v17, %v6864_v62  ;;  %v3275_v46 = vshll.u32 %v6867_v50, 16  ;;  %v3319_v43 = vrot.slane %v3317_v24, 4 }
  0xc1   : > { %v8132_v30 = vcombine.low %v6548_v19, %v6570_v49  ;;  %v3220_v6 = vsel %vm5866_vm5, %v6853_v32, %v6822_v48  ;;  %v3286_v52 = vor.u32 %v3285_v7, %v3282_v51  ;;  %v3296_v28 = vor.u32 %v3295_v18, %v6869_v35  ;;  %v5682_v18 = vld [vmem:[%s5822_s25 + $0x18] sm:$0xff]  }
  0xc2   : > { %v3299_v56 = vshll.u32 %v6874_v61, 16  ;;  %v8133_v13 = vcombine.low %v6610_v36, %v6621_v60  ;;  %v3253_v17 = vrot.slane %v3251_v21, 5  ;;  %v3310_v19 = vor.u32 %v3309_v14, %v3306_v3 }
  0xc3   : > { %5466 = vmatmul.mubr.msk.bf16.gmra.mxu0 %vm498_vm2, %v6748_v10  ;;  %v3320_v2 = vor.u32 %v3319_v43, %v6883_v63  ;;  %v3323_v24 = vshll.u32 %v6881_v57, 16  ;;  %v3230_v51 = vsel %vm5866_vm5, %v3225_v45, %v6835_v40  ;;  %v3239_v48 = vrot.slane %v3238_v29, 4 }
  0xc4   : > { %5469 = vmatprep.mubr.msk.bf16.mxu0 %vm498_vm2, %v6790_v44  ;;  %v3328_v32 = vshrl.u32 %v5028_v27, 16  ;;  %v3331_v7 = vshll.u32 %v5028_v27, 16  ;;  %v3249_v36 = vrot.slane %v3248_v39, 4  ;;  %v3263_v44 = vrot.slane %v3262_v25, 4 }
  0xc5   : > { %v3277_v21 = vrot.slane %v3275_v46, 5  ;;  %v3287_v3 = vrot.slane %v3286_v52, 4  ;;  %v3297_v14 = vrot.slane %v3296_v28, 4  ;;  %v3301_v43 = vrot.slane %v3299_v56, 5 }
  0xc6   : > { %5484 = vmatmul.mubr.msk.bf16.gmra.mxu1 %vm498_vm2, %v8132_v30  ;;  %v6907_v30 = vld [vmem:[%s5822_s25 + $0x70] sm:$0xf]  ;;  %v3311_v57 = vrot.slane %v3310_v19, 4  ;;  %v3321_v50 = vrot.slane %v3320_v2, 4  ;;  %v3325_v31 = vrot.slane %v3323_v24, 5  ;;  %v8134_v27 = vsel %vm5866_vm5, %v6820_v0, %v6798_v9 }
  0xc7   : > { %5487 = vmatprep.mubr.msk.bf16.mxu1 %vm498_vm2, %v8133_v13  ;;  %v3273_v13 = vrot.slane %v3272_v22, 4  ;;  %v3337_v10 = vshll.u32 %v6907_v30, 16  ;;  %v3341_v45 = vshrl.u32 %v6907_v30, 16  ;;  %v8135_v40 = vsel %vm5866_vm5, %v6776_v59, %v6729_v20  ;;  %v5049_v59 = vld [vmem:[%s5822_s25 + $0xc] sm:$0xe] }
  0xc8   : > { %v6930_v29 = vcombine.low %v8135_v40, %v8134_v27  ;;  %v4125_v39 = vrot.slane %v6862_v5, 5  ;;  %v3330_v25 = vrot.slane %v3328_v32, 4  ;;  %v3333_v22 = vrot.slane %v3331_v7, 5  ;;  %v5053_v19 = vld [vmem:[%s5822_s25 + $0x3c] sm:$0xe]  ;;  %v5684_v7 = vld [vmem:[%s5822_s25 + $0x30] sm:$0xff]  }
  0xc9   : > { %v6934_v46 = vcombine.low %v3220_v6, %v3230_v51  ;;  %v3244_v9 = vsel %vm5866_vm5, %v3239_v48, %v6856_v4  ;;  %v3254_v0 = vsel %vm5866_vm5, %v3249_v36, %v3253_v17  ;;  %v3268_v20 = vsel %vm5866_vm5, %v3263_v44, %v6864_v62  ;;  %v5054_v32 = vld [vmem:[%s5822_s25 + $0x48] sm:$0xe]  ;;  %v8137_v36 = vld [vmem:[#allocation8_spill] sm:$0xff] }
  0xca   : > { %v8136_v52 = vcombine.low %v6624_v12, %v6632_v55  ;;  %v3278_v6 = vsel %vm5866_vm5, %v3273_v13, %v3277_v21  ;;  %v3292_v4 = vsel %vm5866_vm5, %v3287_v3, %v6869_v35  ;;  %v3302_v28 = vsel %vm5866_vm5, %v3297_v14, %v3301_v43  ;;  %v5683_v35 = vld [vmem:[%s5822_s25 + $0x24] sm:$0xff]   ;;  %v5055_v3 = vld [vmem:[%s5822_s25 + $0x54] sm:$0xe]  ;;  %v6989_v14 = vld [vmem:[%s8018_s1 + $0x1c] sm:$0x3] }
  0xcb   : > { %5470 = vmatmul.mubr.msk.bf16.gmra.mxu0 %vm498_vm2, %v6796_v54  ;;  %v3347_v62 = vshll.u32 %v6915_v34, 16  ;;  %v3316_v12 = vsel %vm5866_vm5, %v3311_v57, %v6883_v63  ;;  %v3326_v44 = vsel %vm5866_vm5, %v3321_v50, %v3325_v31  ;;  %v6964_v56 = vrot.slane %v3337_v10, 5 }
  0xcc   : > { %5493 = vmatprep.mubr.msk.bf16.mxu0 %vm498_vm2, %v5682_v18  ;;  %v3343_v17 = vrot.slane %v3341_v45, 4  ;;  %v6968_v2 = vcombine.low %v3244_v9, %v3254_v0  ;;  %v3334_v24 = vor.u32 %v3333_v22, %v3330_v25  ;;  %v5057_v51 = vrot.slane %v5049_v59, 9  ;;  %v8138_v45 = vld [vmem:[#allocation7_spill] sm:$0xff]  ;;  %v5056_v59 = vld [vmem:[%s5822_s25 + $0x60] sm:$0xe] }
  0xcd   : > { %v3645_v48 = vrot.slane %v6402_v37, 5  ;;  %v6973_v18 = vcombine.low %v3268_v20, %v3278_v6  ;;  %v6975_v57 = vcombine.low %v3292_v4, %v3302_v28  ;;  %v4139_v50 = vrot.slane %v6874_v61, 5  ;;  %v8140_v4 = vld [vmem:[#allocation12_spill] sm:$0xff] }
  0xce   : > { %5488 = vmatmul.mubr.msk.bf16.gmra.mxu1 %vm498_vm2, %v8136_v52  ;;  %v4153_v10 = vrot.slane %v6915_v34, 5  ;;  %v6979_v31 = vcombine.low %v3316_v12, %v3326_v44  ;;  %v6981_v63 = vrot.slane %v3347_v62, 5  ;;  %v3648_v13 = vrot.slane %v8137_v36, 5 }
  0xcf   : > { %5511 = vmatprep.mubr.msk.bf16.mxu1 %vm498_vm2, %v6804_v15  ;;  %v5061_v21 = vrot.slane %v5053_v19, 9  ;;  %v3344_v37 = vor.u32 %v3343_v17, %v6964_v56  ;;  %v3673_v43 = vrot.slane %v6564_v58, 5  ;;  %v3676_v27 = vrot.slane %v8138_v45, 5  ;;  %v7007_v58 = vld [vmem:[%s8018_s1 + $0x1e] sm:$0x3] }
  0xd0   : > { %v5062_v40 = vrot.slane %v5054_v32, 9  ;;  %v6994_v25 = vrot.slane %v3334_v24, 4  ;;  %v6998_v9 = vsel %vm6192_vm8, %v5057_v51, %v3645_v48  ;;  %v3647_v0 = vrot.slane %v3645_v48, 4  ;;  %v5099_v17 = vld [vmem:[%s5822_s25 + $0x18] sm:$0xe]  ;;  %v5685_v32 = vld [vmem:[%s5822_s25 + $0x3c] sm:$0xff]  }
  0xd1   : > { %v3680_v20 = vrot.slane %v6570_v49, 5  ;;  %v7011_v52 = vsel %vm6192_vm8, %v5061_v21, %v3673_v43  ;;  %v3675_v6 = vrot.slane %v3673_v43, 4  ;;  %v3683_v28 = vrot.slane %v8140_v4, 5  ;;  %v5100_v48 = vld [vmem:[%s5822_s25 + $0x24] sm:$0xe] }
  0xd2   : > { %v5063_v49 = vrot.slane %v5055_v3, 9  ;;  %v3687_v44 = vrot.slane %v6621_v60, 5  ;;  %v7028_v19 = vrot.slane %v3344_v37, 4  ;;  %v3690_v24 = vrot.slane %v6677_v42, 5  ;;  %v5686_v42 = vld [vmem:[%s5822_s25 + $0x48] sm:$0xff]  }
  0xd3   : > { %5494 = vmatmul.mubr.msk.bf16.vlgmr.msra.gmra.mxu0 %vm498_vm2, %v5683_v35  ;;  %v7021_v62 = vsel %vm6192_vm8, %v5062_v40, %v3680_v20  ;;  %v3682_v12 = vrot.slane %v3680_v20, 4  ;;  %v7032_v35 = vsel %vm6192_vm8, %v3675_v6, %v3676_v27  ;;  %v5064_v51 = vrot.slane %v5056_v59, 9  ;;  %v5101_v59 = vld [vmem:[%s5822_s25 + $0x30] sm:$0xe]  ;;  %v5106_v21 = vld [vmem:[%s5822_s25 + $0x6c] sm:$0xe] }
  0xd4   : > { %5528 = vmatpush3.bf16.msra.mxu0 %v6807_v53  ;;  %5497 = vmatprep.mubr.msk.bf16.mxu0 %vm498_vm2, %v5684_v7  ;;  %v3652_v53 = vrot.slane %v6422_v47, 5  ;;  %v5070_v60 = vcombine.low %v7011_v52, %v7032_v35  ;;  %v7047_v7 = vsel %vm6192_vm8, %v5063_v49, %v3687_v44  ;;  %v3689_v36 = vrot.slane %v3687_v44, 4 }
  0xd5   : > { %5613 = vmatprep.subr.msk.bf16.mxu0 %vm523_vm1, %v6989_v14  ;;  %v3694_v3 = vrot.slane %v6632_v55, 5  ;;  %v3697_v37 = vrot.slane %v6685_v23, 5  ;;  %v5107_v43 = vrot.slane %v5099_v17, 9  ;;  %v4101_v27 = vrot.slane %v6656_v26, 5  ;;  %v5102_v17 = vld [vmem:[%s5822_s25 + $0x3c] sm:$0xe] }
  0xd6   : > { %5512 = vmatmul.mubr.msk.bf16.vlgmr.msra.gmra.mxu1 %vm498_vm2, %v6930_v29  ;;  %v7056_v45 = vsel %vm6192_vm8, %v3689_v36, %v3690_v24  ;;  %v4104_v40 = vrot.slane %v6690_v16, 5  ;;  %v5108_v20 = vrot.slane %v5100_v48, 9  ;;  %v8141_v4 = vrot.slane %v6693_v38, 5  ;;  %v5103_v48 = vld [vmem:[%s5822_s25 + $0x48] sm:$0xe] }
  0xd7   : > { %5546 = vmatpush3.bf16.msra.mxu1 %v6810_v11  ;;  %5515 = vmatprep.mubr.msk.bf16.mxu1 %vm498_vm2, %v6934_v46  ;;  %v7043_v11 = vsel %vm6192_vm8, %v3682_v12, %v3683_v28  ;;  %v7065_v55 = vsel %vm6192_vm8, %v5064_v51, %v3694_v3  ;;  %v3696_v23 = vrot.slane %v3694_v3, 4  ;;  %v7072_v26 = vsel %vm6192_vm8, %v3647_v0, %v3648_v13  ;;  %v5104_v3 = vld [vmem:[%s5822_s25 + $0x54] sm:$0xe] }
  0xd8   : > { %5614 = vmatprep.subr.msk.bf16.mxu1 %vm523_vm1, %v7007_v58  ;;  %v4110_v28 = vrot.slane %v8141_v4, 4  ;;  %v7076_v16 = vsel %vm6192_vm8, %v5107_v43, %v4101_v27  ;;  %v4103_v49 = vrot.slane %v4101_v27, 4  ;;  %v8142_v12 = vmov %v8141_v4 }
  0xd9   : > { %v7082_v44 = vsel %vm6192_vm8, %v5108_v20, %v8142_v12  ;;  %v7088_v13 = vsel %vm6192_vm8, %v3696_v23, %v3697_v37  ;;  %v8143_v0 = vrot.slane %v6727_v8, 5  ;;  %v5109_v51 = vrot.slane %v5101_v59, 9  ;;  %v5105_v37 = vld [vmem:[%s5822_s25 + $0x60] sm:$0xe]  ;;  %v5687_v20 = vld [vmem:[%s5822_s25 + $0x54] sm:$0xff]  }
  0xda   : > { %v4115_v38 = vrot.slane %v6744_v1, 5  ;;  %v7104_v36 = vsel %vm6192_vm8, %v4103_v49, %v4104_v40  ;;  %v5110_v40 = vrot.slane %v5102_v17, 9  ;;  %v8144_v59 = vld [vmem:[#allocation18_spill] sm:$0xff]  ;;  %v5111_v4 = vrot.slane %v5103_v48, 9  ;;  %v8150_v17 = vld [vmem:[#allocation5_spill] sm:$0xff] }
  0xdb   : > { %5498 = vmatmul.mubr.msk.bf16.gmra.mxu0 %vm498_vm2, %v5685_v32  ;;  %v7094_v24 = vsel %vm6192_vm8, %v4110_v28, %v8143_v0  ;;  %v4122_v23 = vrot.slane %v8144_v59, 5  ;;  %v8146_v49 = vld [vmem:[#allocation22_spill] sm:$0xff]  ;;  %v5112_v1 = vrot.slane %v5104_v3, 9  ;;  %v8147_v32 = vld [vmem:[#allocation20_spill] sm:$0xff]  ;;  %v3340_v61 = vsel %vm5866_vm5, %v6994_v25, %v6964_v56 }
  0xdc   : > { %5501 = vmatprep.mubr.msk.bf16.mxu0 %vm498_vm2, %v5686_v42  ;;  %v4118_v42 = vrot.slane %v6781_v41, 5  ;;  %v7117_v43 = vsel %vm6192_vm8, %v5109_v51, %v4115_v38  ;;  %v4117_v27 = vrot.slane %v4115_v38, 4  ;;  %v8145_v41 = vld [vmem:[#allocation19_spill] sm:$0xff]  ;;  %v4132_v12 = vrot.slane %v8146_v49, 5  ;;  %v5688_v0 = vld [vmem:[%s5822_s25 + $0x60] sm:$0xff]  }
  0xdd   : > { %v4129_v28 = vrot.slane %v8145_v41, 5  ;;  %v4136_v6 = vrot.slane %v8147_v32, 5  ;;  %v5113_v51 = vrot.slane %v5105_v37, 9  ;;  %v7134_v38 = vsel %vm6192_vm8, %v5110_v40, %v4122_v23  ;;  %v8148_v37 = vld [vmem:[#allocation21_spill] sm:$0xff] }
  0xde   : > { %5516 = vmatmul.mubr.msk.bf16.gmra.mxu1 %vm498_vm2, %v6968_v2  ;;  %v7126_v8 = vsel %vm6192_vm8, %v4117_v27, %v4118_v42  ;;  %v4124_v48 = vrot.slane %v4122_v23, 4  ;;  %v4143_v27 = vrot.slane %v8148_v37, 5  ;;  %v8149_v23 = vld [vmem:[#allocation23_spill] sm:$0xff]  ;;  %v5114_v49 = vrot.slane %v5106_v21, 9 }
  0xdf   : > { %5519 = vmatprep.mubr.msk.bf16.mxu1 %vm498_vm2, %v6973_v18  ;;  %v7138_v59 = vsel %vm6192_vm8, %v5111_v4, %v4129_v28  ;;  %v4131_v42 = vrot.slane %v4129_v28, 4  ;;  %v7142_v32 = vsel %vm6192_vm8, %v5112_v1, %v4136_v6  ;;  %v4138_v3 = vrot.slane %v4136_v6, 4  ;;  %v5050_v1 = vld [vmem:[%s5822_s25 + $0x18] sm:$0xe]  ;;  %v5051_v6 = vld [vmem:[%s5822_s25 + $0x24] sm:$0xe] }
  0xe0   : > { %v7150_v40 = vsel %vm6192_vm8, %v4124_v48, %v4125_v39  ;;  %v4146_v4 = vrot.slane %v8149_v23, 5  ;;  %v4150_v28 = vrot.slane %v6907_v30, 5  ;;  %v3659_v37 = vrot.slane %v8150_v17, 5  ;;  %v8151_v23 = vld [vmem:[#allocation10_spill] sm:$0xff] }
  0xe1   : > { %v7162_v5 = vsel %vm6192_vm8, %v4131_v42, %v4132_v12  ;;  %v7168_v39 = vsel %vm6192_vm8, %v4138_v3, %v4139_v50  ;;  %v7178_v12 = vsel %vm6192_vm8, %v5113_v51, %v4143_v27  ;;  %v4145_v17 = vrot.slane %v4143_v27, 4  ;;  %v5689_v42 = vld [vmem:[%s5822_s25 + $0x6c] sm:$0xff]  }
  0xe2   : > { %v3350_v50 = vsel %vm5866_vm5, %v7028_v19, %v6981_v63  ;;  %v7192_v48 = vsel %vm6192_vm8, %v5114_v49, %v4150_v28  ;;  %v4152_v51 = vrot.slane %v4150_v28, 4  ;;  %v5058_v27 = vrot.slane %v5050_v1, 9 }
  0xe3   : > { %5502 = vmatmul.mubr.msk.bf16.gmra.mxu0 %vm498_vm2, %v5687_v20  ;;  %v5119_v20 = vcombine.low %v7134_v38, %v7150_v40  ;;  %v5059_v21 = vrot.slane %v5051_v6, 9  ;;  %v7198_v56 = vsel %vm6192_vm8, %v4145_v17, %v4146_v4  ;;  %v5066_v33 = vcombine.low %v6998_v9, %v7072_v26  ;;  %v8152_v4 = vld [vmem:[#allocation3_spill] sm:$0xff]  ;;  %v5052_v6 = vld [vmem:[%s5822_s25 + $0x30] sm:$0xe]  ;;  %v8153_v17 = vld [vmem:[#allocation2_spill] sm:$0xff]  ;;  %s5731_s25 = smov 8  }
  0xe4   : > { %v5333_v41 = vpop.f32.mrf.mxu1  ;;  %5505 = vmatprep.mubr.msk.bf16.mxu0 %vm498_vm2, %v5688_v0  ;;  %v3655_v0 = vrot.slane %v8151_v23, 5  ;;  %v3654_v63 = vrot.slane %v3652_v53, 4  ;;  %v7210_v19 = vsel %vm6192_vm8, %v4152_v51, %v4153_v10  ;;  %v7212_v49 = vcombine.low %v3340_v61, %v3350_v50 }
  0xe5   : > { %v3661_v28 = vrot.slane %v3659_v37, 4  ;;  %v3662_v1 = vrot.slane %v8152_v4, 5  ;;  %v3653_v34 = vsel %vm6192_vm8, %v5058_v27, %v3652_v53  ;;  %v3666_v61 = vrot.slane %v8153_v17, 5  ;;  %v8155_v17 = vld [vmem:[#allocation6_spill] sm:$0xff] }
  0xe6   : > { %5520 = vmatmul.mubr.msk.bf16.gmra.mxu1 %vm498_vm2, %v6975_v57  ;;  %v725_v30 = vpop.f32.mrf.mxu1  ;;  %v3656_v10 = vsel %vm6192_vm8, %v3654_v63, %v3655_v0  ;;  %v3660_v50 = vsel %vm6192_vm8, %v5059_v21, %v3659_v37  ;;  %v5060_v23 = vrot.slane %v5052_v6, 9  ;;  %v3669_v9 = vrot.slane %v8155_v17, 5  ;;  %v8156_v6 = vld [vmem:[#allocation9_spill] sm:$0xff] }
  0xe7   : > { %5523 = vmatprep.mubr.msk.bf16.mxu1 %vm498_vm2, %v6979_v31  ;;  %v3663_v51 = vsel %vm6192_vm8, %v3661_v28, %v3662_v1  ;;  %v5067_v27 = vcombine.low %v3653_v34, %v3656_v10  ;;  %v3668_v4 = vrot.slane %v3666_v61, 4  ;;  %v3952_v37 = vsel %vm523_vm1, %v6989_v14, 0 }
  0xe8   : > { %v5334_v3 = vpop.f32.mrf.mxu1  ;;  %v5068_v63 = vcombine.low %v3660_v50, %v3663_v51  ;;  %v4206_v1 = vsel %vm523_vm1, %v7007_v58, 0  ;;  %v3667_v10 = vsel %vm6192_vm8, %v5060_v23, %v3666_v61  ;;  %v8157_v51 = vld [vmem:[#allocation11_spill] sm:$0xff]  ;;  %v8158_v23 = vld [vmem:[#allocation14_spill] sm:$0xff]  ;;  %v8160_v52 = vcombine.low %v7021_v62, %v7043_v11 }
  0xe9   : > { %v3670_v14 = vsel %vm6192_vm8, %v3668_v4, %v3669_v9  ;;  %v8159_v4 = vld [vmem:[#allocation15_spill] sm:$0xff] }
  0xea   : > { %v728_v26 = vpop.f32.mrf.mxu1 }
  0xeb   : > { %5506 = vmatmul.mubr.msk.bf16.gmra.mxu0 %vm498_vm2, %v5689_v42  ;;  %v8154_v42 = vld [vmem:[#allocation4_spill] sm:$0xff] }
  0xec   : > { %5529 = vmatprep.mubr.msk.bf16.mxu0 %vm498_vm2, %v5066_v33 }
  0xee   : > { %5524 = vmatmul.mubr.msk.bf16.gmra.mxu1 %vm498_vm2, %v7212_v49  ;;  %v5337_v47 = vpop.f32.mrf.mxu1 }
  0xef   : > { %5547 = vmatprep.mubr.msk.bf16.mxu1 %vm498_vm2, %v8154_v42  ;;  %v5069_v42 = vcombine.low %v3667_v10, %v3670_v14  ;;  %v8163_v14 = vld [vmem:[#allocation17_spill] sm:$0xff] }
  0xf0   : > { %v5315_v53 = vpop.f32.mrf.mxu0  ;;  %v741_v33 = vpop.f32.mrf.mxu1 }
  0xf1   : > { %v7235_v0 = vadd.f32 %v5333_v41, %v5315_v53 }
  0xf2   : > { %v561_v21 = vpop.f32.mrf.mxu0  ;;  %v5338_v28 = vpop.f32.mrf.mxu1 }
  0xf3   : > { %v7240_v25 = vadd.f32 %v725_v30, %v561_v21  ;;  %5530 = vmatmul.mubr.msk.bf16.vlgmr.msra.gmra.mxu0 %vm498_vm2, %v5067_v27 }
  0xf4   : > { %v5316_v34 = vpop.f32.mrf.mxu0  ;;  %5564 = vmatpush3.bf16.msra.mxu0 %v3952_v37  ;;  %5533 = vmatprep.mubr.msk.bf16.mxu0 %vm498_vm2, %v5068_v63  ;;  %v744_v30 = vpop.f32.mrf.mxu1 }
  0xf5   : > { %v7245_v41 = vadd.f32 %v5334_v3, %v5316_v34  ;;  %v8161_v34 = vcombine.low %v7047_v7, %v7056_v45  ;;  %v8164_v7 = vcombine.low %v7065_v55, %v7088_v13 }
  0xf6   : > { %5548 = vmatmul.mubr.msk.bf16.vlgmr.msra.gmra.mxu1 %vm498_vm2, %v8156_v6  ;;  %v564_v50 = vpop.f32.mrf.mxu0  ;;  %v5341_v3 = vpop.f32.mrf.mxu1 }
  0xf7   : > { %5582 = vmatpush3.bf16.msra.mxu1 %v4206_v1  ;;  %5551 = vmatprep.mubr.msk.bf16.mxu1 %vm498_vm2, %v8157_v51  ;;  %v7256_v58 = vadd.f32 %v728_v26, %v564_v50 }
  0xf8   : > { %v757_v53 = vpop.f32.mrf.mxu1 }
  0xf9   : > { %v5319_v27 = vpop.f32.mrf.mxu0 }
  0xfa   : > { %v750_v63 = vadd.f32 %v5337_v47, %v5319_v27  ;;  %v5342_v9 = vpop.f32.mrf.mxu1  ;;  %v8165_v27 = vcombine.low %v7076_v16, %v7104_v36  ;;  %v8166_v16 = vcombine.low %v7082_v44, %v7094_v24 }
  0xfb   : > { %5534 = vmatmul.mubr.msk.bf16.gmra.mxu0 %vm498_vm2, %v5069_v42  ;;  %v577_v22 = vpop.f32.mrf.mxu0 }
  0xfc   : > { %v7259_v61 = vadd.f32 %v741_v33, %v577_v22  ;;  %5537 = vmatprep.mubr.msk.bf16.mxu0 %vm498_vm2, %v5070_v60  ;;  %v760_v37 = vpop.f32.mrf.mxu1 }
  0xfd   : > { %v5320_v26 = vpop.f32.mrf.mxu0 }
  0xfe   : > { %5552 = vmatmul.mubr.msk.bf16.gmra.mxu1 %vm498_vm2, %v8158_v23  ;;  %v7269_v17 = vadd.f32 %v5338_v28, %v5320_v26  ;;  %v8162_v28 = vld [vmem:[#allocation16_spill] sm:$0xff] }
  0xff   : > { %5555 = vmatprep.mubr.msk.bf16.mxu1 %vm498_vm2, %v8159_v4  ;;  %v580_v47 = vpop.f32.mrf.mxu0  ;;  %v5345_v35 = vpop.f32.mrf.mxu1 }
 0x100   : > { %v7271_v21 = vadd.f32 %v744_v30, %v580_v47 }
 0x101   : > { %v773_v62 = vpop.f32.mrf.mxu1 }
 0x103   : > { %v5323_v33 = vpop.f32.mrf.mxu0  ;;  %5538 = vmatmul.mubr.msk.bf16.gmra.mxu0 %vm498_vm2, %v8160_v52 }
 0x104   : > { %v7273_v1 = vadd.f32 %v5341_v3, %v5323_v33  ;;  %5541 = vmatprep.mubr.msk.bf16.mxu0 %vm498_vm2, %v8161_v34  ;;  %v5346_v3 = vpop.f32.mrf.mxu1  ;;  %v8167_v33 = vcombine.low %v7117_v43, %v7126_v8 }
 0x105   : > { %v593_v60 = vpop.f32.mrf.mxu0 }
 0x106   : > { %5556 = vmatmul.mubr.msk.bf16.gmra.mxu1 %vm498_vm2, %v8162_v28  ;;  %v7285_v10 = vadd.f32 %v757_v53, %v593_v60  ;;  %v776_v22 = vpop.f32.mrf.mxu1 }
 0x107   : > { %5559 = vmatprep.mubr.msk.bf16.mxu1 %vm498_vm2, %v8163_v14  ;;  %v5324_v30 = vpop.f32.mrf.mxu0  ;;  %v8168_v14 = vcombine.low %v7138_v59, %v7162_v5 }
 0x108   : > { %v7289_v6 = vadd.f32 %v5342_v9, %v5324_v30 }
 0x109   : > { %v596_v11 = vpop.f32.mrf.mxu0 }
 0x10a   : > { %v7291_v50 = vadd.f32 %v760_v37, %v596_v11 }
 0x10b   : > { %v5327_v51 = vpop.f32.mrf.mxu0  ;;  %5542 = vmatmul.mubr.msk.bf16.gmra.mxu0 %vm498_vm2, %v8164_v7 }
 0x10c   : > { %v7297_v45 = vadd.f32 %v5345_v35, %v5327_v51  ;;  %5565 = vmatprep.mubr.msk.bf16.mxu0 %vm498_vm2, %v6804_v15 }
 0x10d   : > { %v609_v42 = vpop.f32.mrf.mxu0 }
 0x10e   : > { %5560 = vmatmul.mubr.msk.bf16.gmra.mxu1 %vm498_vm2, %v6796_v54  ;;  %v7303_v53 = vadd.f32 %v773_v62, %v609_v42 }
 0x10f   : > { %5583 = vmatprep.mubr.msk.bf16.mxu1 %vm498_vm2, %v8165_v27  ;;  %v5328_v55 = vpop.f32.mrf.mxu0 }
 0x110   : > { %v7309_v13 = vadd.f32 %v5346_v3, %v5328_v55 }
 0x111   : > { %v612_v9 = vpop.f32.mrf.mxu0 }
 0x112   : > { %v7311_v23 = vadd.f32 %v776_v22, %v612_v9 }
 0x113   : > { %v5351_v15 = vpop.f32.mrf.mxu0  ;;  %5566 = vmatmul.mubr.msk.bf16.vlgmr.msra.gmra.mxu0 %vm498_vm2, %v6930_v29 }
 0x114   : > { %v5369_v26 = vpop.f32.mrf.mxu1  ;;  %v976_v54 = vadd.f32 %v5351_v15, %v7235_v0  ;;  %5569 = vmatprep.mubr.msk.bf16.mxu0 %vm498_vm2, %v6934_v46 }
 0x115   : > { %v911_v4 = vpop.f32.mrf.mxu0 }
 0x116   : > { %5584 = vmatmul.mubr.msk.bf16.vlgmr.msra.gmra.mxu1 %vm498_vm2, %v8166_v16  ;;  %v1293_v36 = vpop.f32.mrf.mxu1  ;;  %v7322_v47 = vadd.f32 %v5369_v26, %v976_v54  ;;  %v974_v37 = vadd.f32 %v911_v4, %v7240_v25 }
 0x117   : > { %5587 = vmatprep.mubr.msk.bf16.mxu1 %vm498_vm2, %v8167_v33  ;;  %v5352_v0 = vpop.f32.mrf.mxu0 }
 0x118   : > { %v5370_v29 = vpop.f32.mrf.mxu1  ;;  %v7329_v52 = vadd.f32 %v1293_v36, %v974_v37  ;;  %v977_v46 = vadd.f32 %v5352_v0, %v7245_v41 }
 0x119   : > { %v914_v24 = vpop.f32.mrf.mxu0 }
 0x11a   : > { %v1296_v44 = vpop.f32.mrf.mxu1  ;;  %v7332_v35 = vadd.f32 %v5370_v29, %v977_v46  ;;  %v975_v60 = vadd.f32 %v914_v24, %v7256_v58  ;;  %v1411_v8 = vmul.f32 %v7329_v52, %v7329_v52  ;;  %v1373_v38 = vsel %vm1372_vm9, %v7329_v52, 0.0 }
 0x11b   : > { %v5355_v34 = vpop.f32.mrf.mxu0  ;;  %5570 = vmatmul.mubr.msk.bf16.gmra.mxu0 %vm498_vm2, %v6968_v2  ;;  %v8169_v24 = vcombine.low %v7142_v32, %v7168_v39 }
 0x11c   : > { %v980_v25 = vadd.f32 %v5355_v34, %v750_v63  ;;  %5573 = vmatprep.mubr.msk.bf16.mxu0 %vm498_vm2, %v6973_v18  ;;  %v7345_v41 = vadd.f32 %v1296_v44, %v975_v60  ;;  %v1413_v63 = vmul.f32 %v7322_v47, %v7322_v47  ;;  %v1427_v51 = vsel %vm1372_vm9, %v1411_v8, 0.0 }
 0x11d   : > { %v927_v58 = vpop.f32.mrf.mxu0  ;;  %v1414_v3 = vmul.f32 %v7332_v35, %v7332_v35  ;;  %v1378_v15 = vsel %vm1372_vm9, %v7332_v35, 0.0  ;;  %v8171_v8 = vcombine.low %v7178_v12, %v7198_v56 }
 0x11e   : > { %v5373_v43 = vpop.f32.mrf.mxu1  ;;  %5588 = vmatmul.mubr.msk.bf16.gmra.mxu1 %vm498_vm2, %v5119_v20  ;;  %v978_v28 = vadd.f32 %v927_v58, %v7259_v61  ;;  %v1374_v40 = vsel %vm1372_vm9, %v7345_v41, 0.0  ;;  %v1412_v20 = vmul.f32 %v7345_v41, %v7345_v41  ;;  %v1376_v61 = vsel %vm1372_vm9, %v7322_v47, 0.0 }
 0x11f   : > { %v7351_v18 = vadd.f32 %v5373_v43, %v980_v25  ;;  %5591 = vmatprep.mubr.msk.bf16.mxu1 %vm498_vm2, %v8168_v14  ;;  %v5356_v62 = vpop.f32.mrf.mxu0  ;;  %v1375_v59 = vadd.f32 %v1374_v40, %v1373_v38  ;;  %v1430_v55 = vsel %vm1372_vm9, %v1413_v63, 0.0  ;;  %v1432_v0 = vsel %vm1372_vm9, %v1414_v3, 0.0 }
 0x120   : > { %v1309_v30 = vpop.f32.mrf.mxu1  ;;  %v1428_v7 = vsel %vm1372_vm9, %v1412_v20, 0.0  ;;  %v981_v27 = vadd.f32 %v5356_v62, %v7269_v17 }
 0x121   : > { %v7368_v5 = vadd.f32 %v1309_v30, %v978_v28  ;;  %v930_v22 = vpop.f32.mrf.mxu0  ;;  %v1377_v9 = vadd.f32 %v1376_v61, %v1375_v59  ;;  %v1429_v26 = vadd.f32 %v1428_v7, %v1427_v51  ;;  %v1417_v46 = vmul.f32 %v7351_v18, %v7351_v18 }
 0x122   : > { %v5374_v42 = vpop.f32.mrf.mxu1  ;;  %v979_v4 = vadd.f32 %v930_v22, %v7271_v21 }
 0x123   : > { %v1415_v54 = vmul.f32 %v7368_v5, %v7368_v5  ;;  %v7380_v36 = vadd.f32 %v5374_v42, %v981_v27  ;;  %v5359_v37 = vpop.f32.mrf.mxu0  ;;  %5574 = vmatmul.mubr.msk.bf16.gmra.mxu0 %vm498_vm2, %v6975_v57  ;;  %v1431_v17 = vadd.f32 %v1430_v55, %v1429_v26  ;;  %v1379_v33 = vadd.f32 %v1378_v15, %v1377_v9 }
 0x124   : > { %v1312_v16 = vpop.f32.mrf.mxu1  ;;  %v984_v29 = vadd.f32 %v5359_v37, %v7273_v1  ;;  %5577 = vmatprep.mubr.msk.bf16.mxu0 %vm498_vm2, %v6979_v31  ;;  %v1380_v44 = vsel %vm1372_vm9, %v7368_v5, 0.0  ;;  %v1438_v7 = vsel %vm1372_vm9, %v1417_v46, 0.0 }
 0x125   : > { %v7397_v57 = vadd.f32 %v1312_v16, %v979_v4  ;;  %v943_v1 = vpop.f32.mrf.mxu0  ;;  %v1381_v60 = vadd.f32 %v1380_v44, %v1379_v33  ;;  %v1433_v34 = vadd.f32 %v1432_v0, %v1431_v17  ;;  %v1434_v43 = vsel %vm1372_vm9, %v1415_v54, 0.0 }
 0x126   : > { %v5377_v21 = vpop.f32.mrf.mxu1  ;;  %5592 = vmatmul.mubr.msk.bf16.gmra.mxu1 %vm498_vm2, %v8169_v24  ;;  %v982_v25 = vadd.f32 %v943_v1, %v7285_v10  ;;  %v1384_v10 = vsel %vm1372_vm9, %v7351_v18, 0.0  ;;  %v1418_v12 = vmul.f32 %v7380_v36, %v7380_v36  ;;  %v1386_v42 = vsel %vm1372_vm9, %v7380_v36, 0.0 }
 0x127   : > { %v7399_v31 = vadd.f32 %v5377_v21, %v984_v29  ;;  %5595 = vmatprep.mubr.msk.bf16.mxu1 %vm498_vm2, %v8171_v8  ;;  %v1382_v32 = vsel %vm1372_vm9, %v7397_v57, 0.0  ;;  %v1416_v39 = vmul.f32 %v7397_v57, %v7397_v57  ;;  %v5360_v63 = vpop.f32.mrf.mxu0  ;;  %v1435_v14 = vadd.f32 %v1434_v43, %v1433_v34 }
 0x128   : > { %v1325_v58 = vpop.f32.mrf.mxu1  ;;  %v1383_v56 = vadd.f32 %v1382_v32, %v1381_v60  ;;  %v985_v30 = vadd.f32 %v5360_v63, %v7289_v6  ;;  %v1440_v54 = vsel %vm1372_vm9, %v1418_v12, 0.0  ;;  %v8174_v17 = vcombine.low %v7192_v48, %v7210_v19 }
 0x129   : > { %8170 = vst [vmem:[#allocation8_spill] sm:$0xff] %v7399_v31  ;;  %v1436_v38 = vsel %vm1372_vm9, %v1416_v39, 0.0  ;;  %v7418_v20 = vadd.f32 %v1325_v58, %v982_v25  ;;  %v946_v62 = vpop.f32.mrf.mxu0  ;;  %v1421_v16 = vmul.f32 %v7399_v31, %v7399_v31  ;;  %v1392_v43 = vsel %vm1372_vm9, %v7399_v31, 0.0 }
 0x12a   : > { %v5378_v40 = vpop.f32.mrf.mxu1  ;;  %v1385_v59 = vadd.f32 %v1384_v10, %v1383_v56  ;;  %v1437_v51 = vadd.f32 %v1436_v38, %v1435_v14  ;;  %v983_v3 = vadd.f32 %v946_v62, %v7291_v50 }
 0x12b   : > { %8172 = vst [vmem:[#allocation7_spill] sm:$0xff] %v7418_v20  ;;  %v1419_v27 = vmul.f32 %v7418_v20, %v7418_v20  ;;  %v7429_v55 = vadd.f32 %v5378_v40, %v985_v30  ;;  %v5363_v6 = vpop.f32.mrf.mxu0  ;;  %5578 = vmatmul.mubr.msk.bf16.gmra.mxu0 %vm498_vm2, %v7212_v49  ;;  %v1388_v4 = vsel %vm1372_vm9, %v7418_v20, 0.0  ;;  %v1446_v56 = vsel %vm1372_vm9, %v1421_v16, 0.0 }
 0x12c   : > { %v1328_v22 = vpop.f32.mrf.mxu1  ;;  %v1439_v9 = vadd.f32 %v1438_v7, %v1437_v51  ;;  %v1387_v26 = vadd.f32 %v1386_v42, %v1385_v59  ;;  %v988_v50 = vadd.f32 %v5363_v6, %v7297_v45 }
 0x12d   : > { %v7433_v15 = vadd.f32 %v1328_v22, %v983_v3  ;;  %v959_v49 = vpop.f32.mrf.mxu0  ;;  %v1442_v44 = vsel %vm1372_vm9, %v1419_v27, 0.0  ;;  %v1422_v32 = vmul.f32 %v7429_v55, %v7429_v55 }
 0x12e   : > { %v5381_v37 = vpop.f32.mrf.mxu1  ;;  %5596 = vmatmul.mubr.msk.bf16.gmra.mxu1 %vm498_vm2, %v8174_v17  ;;  %v1389_v29 = vadd.f32 %v1388_v4, %v1387_v26  ;;  %v1441_v45 = vadd.f32 %v1440_v54, %v1439_v9  ;;  %v986_v48 = vadd.f32 %v959_v49, %v7303_v53 }
 0x12f   : > { %8173 = vst [vmem:[#allocation13_spill] sm:$0xff] %v7433_v15  ;;  %v1390_v0 = vsel %vm1372_vm9, %v7433_v15, 0.0  ;;  %v1420_v46 = vmul.f32 %v7433_v15, %v7433_v15  ;;  %v7452_v24 = vadd.f32 %v5381_v37, %v988_v50  ;;  %v5364_v19 = vpop.f32.mrf.mxu0  ;;  %v1448_v51 = vsel %vm1372_vm9, %v1422_v32, 0.0 }
 0x130   : > { %v1341_v21 = vpop.f32.mrf.mxu1  ;;  %v1443_v60 = vadd.f32 %v1442_v44, %v1441_v45  ;;  %v1391_v34 = vadd.f32 %v1390_v0, %v1389_v29  ;;  %v989_v8 = vadd.f32 %v5364_v19, %v7309_v13  ;;  %v1394_v13 = vsel %vm1372_vm9, %v7429_v55, 0.0 }
 0x131   : > { %8175 = vst [vmem:[#allocation12_spill] sm:$0xff] %v7452_v24  ;;  %v1444_v25 = vsel %vm1372_vm9, %v1420_v46, 0.0  ;;  %v7463_v58 = vadd.f32 %v1341_v21, %v986_v48  ;;  %v962_v53 = vpop.f32.mrf.mxu0  ;;  %v1425_v22 = vmul.f32 %v7452_v24, %v7452_v24  ;;  %v1400_v29 = vsel %vm1372_vm9, %v7452_v24, 0.0 }
 0x132   : > { %v5382_v39 = vpop.f32.mrf.mxu1  ;;  %v1393_v63 = vadd.f32 %v1392_v43, %v1391_v34  ;;  %v1445_v10 = vadd.f32 %v1444_v25, %v1443_v60  ;;  %v987_v12 = vadd.f32 %v962_v53, %v7311_v23 }
 0x133   : > { %8176 = vst [vmem:[#allocation18_spill] sm:$0xff] %v7463_v58  ;;  %v7465_v14 = vadd.f32 %v5382_v39, %v989_v8  ;;  %v1423_v38 = vmul.f32 %v7463_v58, %v7463_v58  ;;  %v5387_v30 = vpop.f32.mrf.mxu0  ;;  %v1396_v3 = vsel %vm1372_vm9, %v7463_v58, 0.0  ;;  %v1454_v19 = vsel %vm1372_vm9, %v1425_v22, 0.0 }
 0x134   : > { %v1344_v40 = vpop.f32.mrf.mxu1  ;;  %v1447_v62 = vadd.f32 %v1446_v56, %v1445_v10  ;;  %v1395_v59 = vadd.f32 %v1394_v13, %v1393_v63 }
 0x135   : > { %8177 = vst [vmem:[#allocation19_spill] sm:$0xff] %v7465_v14  ;;  %v7476_v42 = vadd.f32 %v1344_v40, %v987_v12  ;;  %v1645_v23 = vpop.f32.mrf.mxu0  ;;  %v1450_v26 = vsel %vm1372_vm9, %v1423_v38, 0.0  ;;  %v1426_v45 = vmul.f32 %v7465_v14, %v7465_v14  ;;  %v1402_v60 = vsel %vm1372_vm9, %v7465_v14, 0.0 }
 0x136   : > { %v5405_v7 = vpop.f32.mrf.mxu1  ;;  %v1397_v6 = vadd.f32 %v1396_v3, %v1395_v59  ;;  %v1449_v9 = vadd.f32 %v1448_v51, %v1447_v62 }
 0x137   : > { %8178 = vst [vmem:[#allocation22_spill] sm:$0xff] %v7476_v42  ;;  %v1398_v50 = vsel %vm1372_vm9, %v7476_v42, 0.0  ;;  %v1424_v54 = vmul.f32 %v7476_v42, %v7476_v42  ;;  %v5388_v4 = vpop.f32.mrf.mxu0  ;;  %v1456_v32 = vsel %vm1372_vm9, %v1426_v45, 0.0 }
 0x138   : > { %v1745_v16 = vpop.f32.mrf.mxu1  ;;  %v1451_v17 = vadd.f32 %v1450_v26, %v1449_v9  ;;  %v1399_v49 = vadd.f32 %v1398_v50, %v1397_v6 }
 0x139   : > { %v1452_v0 = vsel %vm1372_vm9, %v1424_v54, 0.0  ;;  %v1648_v44 = vpop.f32.mrf.mxu0 }
 0x13a   : > { %v5406_v46 = vpop.f32.mrf.mxu1  ;;  %v1401_v21 = vadd.f32 %v1400_v29, %v1399_v49  ;;  %v1453_v48 = vadd.f32 %v1452_v0, %v1451_v17 }
 0x13b   : > { %v5391_v25 = vpop.f32.mrf.mxu0 }
 0x13c   : > { %v1748_v34 = vpop.f32.mrf.mxu1  ;;  %v7497_v8 = vadd.f32 %v1402_v60, %v1401_v21  ;;  %v1455_v43 = vadd.f32 %v1454_v19, %v1453_v48  ;;  %v1754_v48 = vadd.f32 %v5405_v7, %v5387_v30  ;;  %v1746_v19 = vadd.f32 %v1745_v16, %v1645_v23 }
 0x13d   : > { %v1661_v53 = vpop.f32.mrf.mxu0  ;;  %v1749_v11 = vadd.f32 %v1748_v34, %v1648_v44 }
 0x13e   : > { %v5409_v39 = vpop.f32.mrf.mxu1  ;;  %v7500_v63 = vadd.f32 %v1456_v32, %v1455_v43  ;;  %v1757_v32 = vadd.f32 %v5406_v46, %v5388_v4 }
 0x13f   : > { %v5392_v12 = vpop.f32.mrf.mxu0  ;;  %v1770_v42 = vadd.f32 %v5409_v39, %v5391_v25 }
 0x140   : > { %v1761_v10 = vpop.f32.mrf.mxu1 }
 0x141   : > { %v1664_v13 = vpop.f32.mrf.mxu0  ;;  %v1762_v20 = vadd.f32 %v1761_v10, %v1661_v53 }
 0x142   : > { %v5410_v56 = vpop.f32.mrf.mxu1 }
 0x143   : > { %v5395_v40 = vpop.f32.mrf.mxu0  ;;  %v1773_v7 = vadd.f32 %v5410_v56, %v5392_v12 }
 0x144   : > { %v1764_v38 = vpop.f32.mrf.mxu1 }
 0x145   : > { %v1677_v59 = vpop.f32.mrf.mxu0  ;;  %v1765_v23 = vadd.f32 %v1764_v38, %v1664_v13 }
 0x146   : > { %v5413_v62 = vpop.f32.mrf.mxu1 }
 0x147   : > { %v5396_v3 = vpop.f32.mrf.mxu0  ;;  %v1786_v46 = vadd.f32 %v5413_v62, %v5395_v40 }
 0x148   : > { %v1777_v51 = vpop.f32.mrf.mxu1 }
 0x149   : > { %v1680_v6 = vpop.f32.mrf.mxu0 }
 0x14a   : > { %v5414_v22 = vpop.f32.mrf.mxu1 }
 0x14b   : > { %v5399_v26 = vpop.f32.mrf.mxu0 }
 0x14c   : > { %v1780_v9 = vpop.f32.mrf.mxu1 }
 0x14d   : > { %v7502_v54 = vpop.f32.mrf.mxu0  ;;  %v7514_v44 = vadd.f32 %v1780_v9, %v1680_v6 }
 0x14e   : > { %v5417_v50 = vpop.f32.mrf.mxu1 }
 0x14f   : > { %v7506_v49 = vpop.f32.mrf.mxu0  ;;  %v1802_v38 = vadd.f32 %v5417_v50, %v5399_v26 }
 0x150   : > { %v7504_v17 = vpop.f32.mrf.mxu1 }
 0x151   : > { %v7510_v45 = vpop.f32.mrf.mxu0 }
 0x152   : > { %v7508_v29 = vpop.f32.mrf.mxu1 }
 0x153   : > { %v5423_v21 = vpop.f32.mrf.mxu0 }
 0x154   : > { %v7512_v0 = vpop.f32.mrf.mxu1  ;;  %v1912_v37 = vadd.f32 %v5423_v21, %v1754_v48  ;;  %v1778_v21 = vadd.f32 %v1777_v51, %v1677_v59 }
 0x155   : > { %v1847_v43 = vpop.f32.mrf.mxu0 }
 0x156   : > { %v5441_v60 = vpop.f32.mrf.mxu1  ;;  %v1910_v27 = vadd.f32 %v1847_v43, %v1746_v19  ;;  %v1794_v43 = vadd.f32 %v7504_v17, %v7502_v54 }
 0x157   : > { %v5424_v33 = vpop.f32.mrf.mxu0  ;;  %v2166_v24 = vadd.f32 %v5441_v60, %v1912_v37 }
 0x158   : > { %v2101_v1 = vpop.f32.mrf.mxu1  ;;  %v1913_v28 = vadd.f32 %v5424_v33, %v1757_v32  ;;  %v1805_v32 = vadd.f32 %v7508_v29, %v7506_v49 }
 0x159   : > { %v2164_v61 = vadd.f32 %v2101_v1, %v1910_v27  ;;  %v1850_v58 = vpop.f32.mrf.mxu0  ;;  %v1789_v27 = vadd.f32 %v5414_v22, %v5396_v3  ;;  %v2220_v34 = vmul.f32 %v2166_v24, %v2166_v24 }
 0x15a   : > { %v5442_v2 = vpop.f32.mrf.mxu1  ;;  %v1911_v31 = vadd.f32 %v1850_v58, %v1749_v11 }
 0x15b   : > { %v2167_v14 = vadd.f32 %v5442_v2, %v1913_v28  ;;  %v5427_v30 = vpop.f32.mrf.mxu0  ;;  %v2218_v16 = vmul.f32 %v2164_v61, %v2164_v61  ;;  %v2183_v2 = vsel %vm1372_vm9, %v2166_v24, 0.0  ;;  %v2180_v11 = vsel %vm1372_vm9, %v2164_v61, 0.0 }
 0x15c   : > { %v2104_v15 = vpop.f32.mrf.mxu1  ;;  %v1916_v4 = vadd.f32 %v5427_v30, %v1770_v42  ;;  %v2237_v40 = vsel %vm1372_vm9, %v2220_v34, 0.0 }
 0x15d   : > { %v2165_v19 = vadd.f32 %v2104_v15, %v1911_v31  ;;  %v1863_v1 = vpop.f32.mrf.mxu0  ;;  %v2273_v33 = vpack.c.bf16 %v2167_v14, %v2166_v24  ;;  %v2234_v31 = vsel %vm1372_vm9, %v2218_v16, 0.0  ;;  %v2221_v10 = vmul.f32 %v2167_v14, %v2167_v14 }
 0x15e   : > { %v5445_v48 = vpop.f32.mrf.mxu1  ;;  %v1914_v37 = vadd.f32 %v1863_v1, %v1762_v20  ;;  %v2185_v51 = vsel %vm1372_vm9, %v2167_v14, 0.0 }
 0x15f   : > { %v2181_v28 = vsel %vm1372_vm9, %v2165_v19, 0.0  ;;  %v2219_v58 = vmul.f32 %v2165_v19, %v2165_v19  ;;  %2290 = vrot.lane.b32.xlu0 %v2273_v33, %s5731_s25  ;;  %v5428_v42 = vpop.f32.mrf.mxu0  ;;  %v2170_v39 = vadd.f32 %v5445_v48, %v1916_v4  ;;  %v2272_v13 = vpack.c.bf16 %v2165_v19, %v2164_v61 }
 0x160   : > { %v2117_v25 = vpop.f32.mrf.mxu1  ;;  %v2182_v15 = vadd.f32 %v2181_v28, %v2180_v11  ;;  %v1917_v12 = vadd.f32 %v5428_v42, %v1773_v7  ;;  %v2239_v14 = vsel %vm1372_vm9, %v2221_v10, 0.0 }
 0x161   : > { %v7521_v53 = vadd.f32 %v2117_v25, %v1914_v37  ;;  %v2235_v20 = vsel %vm1372_vm9, %v2219_v58, 0.0  ;;  %v1866_v56 = vpop.f32.mrf.mxu0  ;;  %v2224_v26 = vmul.f32 %v2170_v39, %v2170_v39  ;;  %v2191_v29 = vsel %vm1372_vm9, %v2170_v39, 0.0 }
 0x162   : > { %v5446_v24 = vpop.f32.mrf.mxu1  ;;  %v2184_v62 = vadd.f32 %v2183_v2, %v2182_v15  ;;  %v2236_v59 = vadd.f32 %v2235_v20, %v2234_v31  ;;  %v1915_v9 = vadd.f32 %v1866_v56, %v1765_v23 }
 0x163   : > { %v2222_v3 = vmul.f32 %v7521_v53, %v7521_v53  ;;  %v2171_v6 = vadd.f32 %v5446_v24, %v1917_v12  ;;  %2288 = vrot.lane.b32.xlu0 %v2272_v13, %s5731_s25  ;;  %v5431_v60 = vpop.f32.mrf.mxu0  ;;  %v2187_v30 = vsel %vm1372_vm9, %v7521_v53, 0.0  ;;  %v2245_v2 = vsel %vm1372_vm9, %v2224_v26, 0.0 }
 0x164   : > { %v2120_v22 = vpop.f32.mrf.mxu1  ;;  %v2238_v61 = vadd.f32 %v2237_v40, %v2236_v59  ;;  %v2186_v50 = vadd.f32 %v2185_v51, %v2184_v62  ;;  %v1920_v19 = vadd.f32 %v5431_v60, %v1786_v46  ;;  %v1797_v59 = vadd.f32 %v7512_v0, %v7510_v45 }
 0x165   : > { %v2169_v16 = vadd.f32 %v2120_v22, %v1915_v9  ;;  %v1879_v23 = vpop.f32.mrf.mxu0  ;;  %v2241_v54 = vsel %vm1372_vm9, %v2222_v3, 0.0  ;;  %v2275_v37 = vpack.c.bf16 %v2171_v6, %v2170_v39  ;;  %v2225_v58 = vmul.f32 %v2171_v6, %v2171_v6 }
 0x166   : > { %v5449_v7 = vpop.f32.mrf.mxu1  ;;  %v2188_v4 = vadd.f32 %v2187_v30, %v2186_v50  ;;  %v2240_v48 = vadd.f32 %v2239_v14, %v2238_v61  ;;  %v1918_v1 = vadd.f32 %v1879_v23, %v1778_v21  ;;  %v2193_v15 = vsel %vm1372_vm9, %v2171_v6, 0.0 }
 0x167   : > { %v2189_v17 = vsel %vm1372_vm9, %v2169_v16, 0.0  ;;  %v2223_v33 = vmul.f32 %v2169_v16, %v2169_v16  ;;  %v5432_v49 = vpop.f32.mrf.mxu0  ;;  %2294 = vrot.lane.b32.xlu1 %v2275_v37, %s5731_s25  ;;  %v2174_v39 = vadd.f32 %v5449_v7, %v1920_v19  ;;  %v2274_v40 = vpack.c.bf16 %v2169_v16, %v7521_v53 }
 0x168   : > { %v2133_v34 = vpop.f32.mrf.mxu1  ;;  %v2242_v11 = vadd.f32 %v2241_v54, %v2240_v48  ;;  %v2190_v28 = vadd.f32 %v2189_v17, %v2188_v4  ;;  %v1921_v21 = vadd.f32 %v5432_v49, %v1789_v27  ;;  %v2247_v22 = vsel %vm1372_vm9, %v2225_v58, 0.0 }
 0x169   : > { %v2243_v25 = vsel %vm1372_vm9, %v2223_v33, 0.0  ;;  %v2172_v46 = vadd.f32 %v2133_v34, %v1918_v1  ;;  %v1882_v31 = vpop.f32.mrf.mxu0  ;;  %v2228_v30 = vmul.f32 %v2174_v39, %v2174_v39 }
 0x16a   : > { %v5450_v42 = vpop.f32.mrf.mxu1  ;;  %v2192_v10 = vadd.f32 %v2191_v29, %v2190_v28  ;;  %v2244_v20 = vadd.f32 %v2243_v25, %v2242_v11  ;;  %v1919_v24 = vadd.f32 %v1882_v31, %v7514_v44 }
 0x16b   : > { %v2226_v12 = vmul.f32 %v2172_v46, %v2172_v46  ;;  %v2175_v13 = vadd.f32 %v5450_v42, %v1921_v21  ;;  %v5435_v62 = vpop.f32.mrf.mxu0  ;;  %v2195_v6 = vsel %vm1372_vm9, %v2172_v46, 0.0  ;;  %2292 = vrot.lane.b32.xlu1 %v2274_v40, %s5731_s25  ;;  %v2253_v11 = vsel %vm1372_vm9, %v2228_v30, 0.0 }
 0x16c   : > { %v2136_v56 = vpop.f32.mrf.mxu1  ;;  %v2246_v51 = vadd.f32 %v2245_v2, %v2244_v20  ;;  %v2194_v3 = vadd.f32 %v2193_v15, %v2192_v10  ;;  %v1924_v44 = vadd.f32 %v5435_v62, %v1802_v38  ;;  %v2199_v38 = vsel %vm1372_vm9, %v2174_v39, 0.0 }
 0x16d   : > { %v2173_v27 = vadd.f32 %v2136_v56, %v1919_v24  ;;  %v1895_v60 = vpop.f32.mrf.mxu0  ;;  %v2277_v61 = vpack.c.bf16 %v2175_v13, %v2174_v39  ;;  %v2249_v45 = vsel %vm1372_vm9, %v2226_v12, 0.0  ;;  %v2229_v54 = vmul.f32 %v2175_v13, %v2175_v13 }
 0x16e   : > { %v5453_v9 = vpop.f32.mrf.mxu1  ;;  %v2196_v26 = vadd.f32 %v2195_v6, %v2194_v3  ;;  %v2248_v50 = vadd.f32 %v2247_v22, %v2246_v51  ;;  %v1922_v7 = vadd.f32 %v1895_v60, %v1794_v43  ;;  %v2201_v28 = vsel %vm1372_vm9, %v2175_v13, 0.0 }
 0x16f   : > { %v2197_v53 = vsel %vm1372_vm9, %v2173_v27, 0.0  ;;  %v2227_v14 = vmul.f32 %v2173_v27, %v2173_v27  ;;  %v5436_v16 = vpop.f32.mrf.mxu0  ;;  %v2276_v23 = vpack.c.bf16 %v2173_v27, %v2172_v46  ;;  %v2178_v17 = vadd.f32 %v5453_v9, %v1924_v44  ;;  %2298 = vrot.lane.b32.xlu1 %v2277_v61, %s5731_s25 }
 0x170   : > { %v2149_v0 = vpop.f32.mrf.mxu1  ;;  %v2250_v4 = vadd.f32 %v2249_v45, %v2248_v50  ;;  %v2198_v48 = vadd.f32 %v2197_v53, %v2196_v26  ;;  %v1925_v1 = vadd.f32 %v5436_v16, %v1805_v32  ;;  %v1404_v42 = vrot.slane %v7497_v8, 4 }
 0x171   : > { %v2251_v19 = vsel %vm1372_vm9, %v2227_v14, 0.0  ;;  %v2176_v34 = vadd.f32 %v2149_v0, %v1922_v7  ;;  %2296 = vrot.lane.b32.xlu0 %v2276_v23, %s5731_s25  ;;  %v1898_v37 = vpop.f32.mrf.mxu0  ;;  %v1458_v46 = vrot.slane %v7500_v63, 4  ;;  %v2255_v15 = vsel %vm1372_vm9, %v2229_v54, 0.0 }
 0x172   : > { %v5454_v33 = vpop.f32.mrf.mxu1  ;;  %v2200_v49 = vadd.f32 %v2199_v38, %v2198_v48  ;;  %v2252_v43 = vadd.f32 %v2251_v19, %v2250_v4  ;;  %v1923_v2 = vadd.f32 %v1898_v37, %v1797_v59  ;;  %v2232_v56 = vmul.f32 %v2178_v17, %v2178_v17 }
 0x173   : > { %v2179_v29 = vadd.f32 %v5454_v33, %v1925_v1  ;;  %v2230_v32 = vmul.f32 %v2176_v34, %v2176_v34  ;;  %v5459_v25 = vpop.f32.mrf.mxu0  ;;  %v2203_v10 = vsel %vm1372_vm9, %v2176_v34, 0.0  ;;  %v1405_v9 = vadd.f32 %v1404_v42, %v7497_v8 }
 0x174   : > { %v2152_v58 = vpop.f32.mrf.mxu1  ;;  %v2254_v21 = vadd.f32 %v2253_v11, %v2252_v43  ;;  %v2202_v31 = vadd.f32 %v2201_v28, %v2200_v49  ;;  %v2207_v26 = vsel %vm1372_vm9, %v2178_v17, 0.0  ;;  %v1459_v45 = vadd.f32 %v1458_v46, %v7500_v63 }
 0x175   : > { %v2177_v24 = vadd.f32 %v2152_v58, %v1923_v2  ;;  %v2706_v39 = vpop.f32.mrf.mxu0  ;;  %v2279_v12 = vpack.c.bf16 %v2179_v29, %v2178_v17  ;;  %v2257_v59 = vsel %vm1372_vm9, %v2230_v32, 0.0  ;;  %v2233_v50 = vmul.f32 %v2179_v29, %v2179_v29 }
 0x176   : > { %v5477_v20 = vpop.f32.mrf.mxu1  ;;  %v2204_v40 = vadd.f32 %v2203_v10, %v2202_v31  ;;  %v2256_v13 = vadd.f32 %v2255_v15, %v2254_v21  ;;  %v2261_v8 = vsel %vm1372_vm9, %v2232_v56, 0.0  ;;  %v2209_v23 = vsel %vm1372_vm9, %v2179_v29, 0.0 }
 0x177   : > { %v7562_v62 = vadd.f32 %v5477_v20, %v5459_v25  ;;  %v2205_v51 = vsel %vm1372_vm9, %v2177_v24, 0.0  ;;  %v2231_v3 = vmul.f32 %v2177_v24, %v2177_v24  ;;  %2302 = vrot.lane.b32.xlu1 %v2279_v12, %s5731_s25  ;;  %v5460_v22 = vpop.f32.mrf.mxu0  ;;  %v2278_v6 = vpack.c.bf16 %v2177_v24, %v2176_v34 }
 0x178   : > { %v2870_v27 = vpop.f32.mrf.mxu1  ;;  %v2258_v44 = vadd.f32 %v2257_v59, %v2256_v13  ;;  %v2206_v60 = vadd.f32 %v2205_v51, %v2204_v40  ;;  %v1406_v19 = vrot.slane %v1405_v9, 2  ;;  %v2263_v17 = vsel %vm1372_vm9, %v2233_v50, 0.0 }
 0x179   : > { %v7568_v61 = vadd.f32 %v2870_v27, %v2706_v39  ;;  %v2259_v53 = vsel %vm1372_vm9, %v2231_v3, 0.0  ;;  %2300 = vrot.lane.b32.xlu0 %v2278_v6, %s5731_s25  ;;  %v2709_v30 = vpop.f32.mrf.mxu0  ;;  %v1460_v63 = vrot.slane %v1459_v45, 2 }
 0x17a   : > { %v5478_v14 = vpop.f32.mrf.mxu1  ;;  %v2208_v0 = vadd.f32 %v2207_v26, %v2206_v60  ;;  %v2260_v7 = vadd.f32 %v2259_v53, %v2258_v44  ;;  %v1407_v28 = vadd.f32 %v1406_v19, %v1405_v9 }
 0x17b   : > { %v7574_v16 = vadd.f32 %v5478_v14, %v5460_v22  ;;  %v5463_v48 = vpop.f32.mrf.mxu0  ;;  %v1461_v46 = vadd.f32 %v1460_v63, %v1459_v45 }
 0x17c   : > { %v2873_v4 = vpop.f32.mrf.mxu1  ;;  %v2210_v1 = vadd.f32 %v2209_v23, %v2208_v0  ;;  %v2262_v38 = vadd.f32 %v2261_v8, %v2260_v7  ;;  %v1408_v24 = vrot.slane %v1407_v28, 1 }
 0x17d   : > { %v7578_v54 = vadd.f32 %v2873_v4, %v2709_v30  ;;  %v2722_v34 = vpop.f32.mrf.mxu0  ;;  %v1462_v59 = vrot.slane %v1461_v46, 1 }
 0x17e   : > { %v5481_v33 = vpop.f32.mrf.mxu1  ;;  %v2211_v37 = vrot.slane %v2210_v1, 4  ;;  %v2264_v49 = vadd.f32 %v2263_v17, %v2262_v38  ;;  %v1409_v9 = vadd.f32 %v1408_v24, %v1407_v28 }
 0x17f   : > { %v7581_v43 = vadd.f32 %v5481_v33, %v5463_v48  ;;  %v5464_v11 = vpop.f32.mrf.mxu0  ;;  %v1463_v14 = vadd.f32 %v1462_v59, %v1461_v46 }
 0x180   : > { %v2886_v2 = vpop.f32.mrf.mxu1  ;;  %v2212_v29 = vadd.f32 %v2211_v37, %v2210_v1  ;;  %v2265_v32 = vrot.slane %v2264_v49, 4 }
 0x181   : > { %v7583_v58 = vadd.f32 %v2886_v2, %v2722_v34  ;;  %v2725_v42 = vpop.f32.mrf.mxu0 }
 0x182   : > { %v5482_v25 = vpop.f32.mrf.mxu1  ;;  %v2213_v21 = vrot.slane %v2212_v29, 2  ;;  %v2266_v31 = vadd.f32 %v2265_v32, %v2264_v49 }
 0x183   : > { %v7585_v15 = vadd.f32 %v5482_v25, %v5464_v11  ;;  %v5467_v20 = vpop.f32.mrf.mxu0 }
 0x184   : > { %v2889_v10 = vpop.f32.mrf.mxu1  ;;  %v2214_v39 = vadd.f32 %v2213_v21, %v2212_v29  ;;  %v2267_v12 = vrot.slane %v2266_v31, 2 }
 0x185   : > { %v7587_v56 = vadd.f32 %v2889_v10, %v2725_v42  ;;  %v2738_v13 = vpop.f32.mrf.mxu0 }
 0x186   : > { %v5485_v40 = vpop.f32.mrf.mxu1  ;;  %v2215_v51 = vrot.slane %v2214_v39, 1  ;;  %v2268_v3 = vadd.f32 %v2267_v12, %v2266_v31 }
 0x187   : > { %v7589_v27 = vadd.f32 %v5485_v40, %v5467_v20  ;;  %v5468_v6 = vpop.f32.mrf.mxu0 }
 0x188   : > { %v2902_v22 = vpop.f32.mrf.mxu1  ;;  %v2216_v44 = vadd.f32 %v2215_v51, %v2214_v39  ;;  %v2269_v60 = vrot.slane %v2268_v3, 1 }
 0x189   : > { %v7591_v26 = vadd.f32 %v2902_v22, %v2738_v13  ;;  %v2741_v53 = vpop.f32.mrf.mxu0 }
 0x18a   : > { %v5486_v50 = vpop.f32.mrf.mxu1  ;;  %v7593_v30 = vadd.f32 %v2216_v44, %v1409_v9  ;;  %v2270_v45 = vadd.f32 %v2269_v60, %v2268_v3 }
 0x18b   : > { %v7595_v0 = vadd.f32 %v5486_v50, %v5468_v6  ;;  %v5471_v8 = vpop.f32.mrf.mxu0 }
 0x18c   : > { %v2905_v7 = vpop.f32.mrf.mxu1  ;;  %v7597_v23 = vadd.f32 %v2270_v45, %v1463_v14 }
 0x18d   : > { %v7599_v4 = vadd.f32 %v2905_v7, %v2741_v53  ;;  %v2754_v19 = vpop.f32.mrf.mxu0 }
 0x18e   : > { %v5489_v48 = vpop.f32.mrf.mxu1 }
 0x18f   : > { %v7601_v1 = vadd.f32 %v5489_v48, %v5471_v8  ;;  %v5472_v17 = vpop.f32.mrf.mxu0 }
 0x190   : > { %v2918_v38 = vpop.f32.mrf.mxu1 }
 0x191   : > { %v7603_v33 = vadd.f32 %v2918_v38, %v2754_v19  ;;  %v2757_v63 = vpop.f32.mrf.mxu0 }
 0x192   : > { %v5490_v34 = vpop.f32.mrf.mxu1 }
 0x193   : > { %v7605_v37 = vadd.f32 %v5490_v34, %v5472_v17  ;;  %v5495_v2 = vpop.f32.mrf.mxu0 }
 0x194   : > { %v2921_v49 = vpop.f32.mrf.mxu1  ;;  %v3121_v28 = vadd.f32 %v5495_v2, %v7562_v62 }
 0x195   : > { %v7607_v11 = vadd.f32 %v2921_v49, %v2757_v63  ;;  %v3056_v32 = vpop.f32.mrf.mxu0 }
 0x196   : > { %v5513_v29 = vpop.f32.mrf.mxu1  ;;  %v3119_v42 = vadd.f32 %v3056_v32, %v7568_v61 }
 0x197   : > { %v7610_v25 = vadd.f32 %v5513_v29, %v3121_v28  ;;  %v5496_v21 = vpop.f32.mrf.mxu0 }
 0x198   : > { %v3438_v46 = vpop.f32.mrf.mxu1  ;;  %v3122_v10 = vadd.f32 %v5496_v21, %v7574_v16 }
 0x199   : > { %v7613_v31 = vadd.f32 %v3438_v46, %v3119_v42  ;;  %v3059_v24 = vpop.f32.mrf.mxu0  ;;  %v3557_v22 = vmul.f32 %v7610_v25, %v7610_v25  ;;  %v3520_v14 = vsel %vm1372_vm9, %v7610_v25, 0.0 }
 0x19a   : > { %v5514_v20 = vpop.f32.mrf.mxu1  ;;  %v3120_v40 = vadd.f32 %v3059_v24, %v7578_v54 }
 0x19b   : > { %v7616_v39 = vadd.f32 %v5514_v20, %v3122_v10  ;;  %v5499_v62 = vpop.f32.mrf.mxu0  ;;  %v3555_v59 = vmul.f32 %v7613_v31, %v7613_v31  ;;  %v3574_v34 = vsel %vm1372_vm9, %v3557_v22, 0.0 }
 0x19c   : > { %v3441_v12 = vpop.f32.mrf.mxu1  ;;  %v3125_v13 = vadd.f32 %v5499_v62, %v7581_v43  ;;  %v3517_v43 = vsel %vm1372_vm9, %v7613_v31, 0.0 }
 0x19d   : > { %v7622_v51 = vadd.f32 %v3441_v12, %v3120_v40  ;;  %v3072_v3 = vpop.f32.mrf.mxu0  ;;  %v3558_v8 = vmul.f32 %v7616_v39, %v7616_v39  ;;  %v3522_v2 = vsel %vm1372_vm9, %v7616_v39, 0.0 }
 0x19e   : > { %v5517_v61 = vpop.f32.mrf.mxu1  ;;  %v3123_v54 = vadd.f32 %v3072_v3, %v7583_v58  ;;  %v3571_v58 = vsel %vm1372_vm9, %v3555_v59, 0.0 }
 0x19f   : > { %v7628_v6 = vadd.f32 %v5517_v61, %v3125_v13  ;;  %v3518_v9 = vsel %vm1372_vm9, %v7622_v51, 0.0  ;;  %v3556_v44 = vmul.f32 %v7622_v51, %v7622_v51  ;;  %v5500_v50 = vpop.f32.mrf.mxu0  ;;  %v3576_v20 = vsel %vm1372_vm9, %v3558_v8, 0.0 }
 0x1a0   : > { %v3454_v60 = vpop.f32.mrf.mxu1  ;;  %v3519_v45 = vadd.f32 %v3518_v9, %v3517_v43  ;;  %v3126_v38 = vadd.f32 %v5500_v50, %v7585_v15 }
 0x1a1   : > { %v7641_v7 = vadd.f32 %v3454_v60, %v3123_v54  ;;  %v3572_v48 = vsel %vm1372_vm9, %v3556_v44, 0.0  ;;  %v3075_v17 = vpop.f32.mrf.mxu0  ;;  %v3561_v24 = vmul.f32 %v7628_v6, %v7628_v6  ;;  %v3528_v60 = vsel %vm1372_vm9, %v7628_v6, 0.0 }
 0x1a2   : > { %v5518_v19 = vpop.f32.mrf.mxu1  ;;  %v3521_v63 = vadd.f32 %v3520_v14, %v3519_v45  ;;  %v3573_v49 = vadd.f32 %v3572_v48, %v3571_v58  ;;  %v3124_v42 = vadd.f32 %v3075_v17, %v7587_v56 }
 0x1a3   : > { %v3559_v28 = vmul.f32 %v7641_v7, %v7641_v7  ;;  %v7653_v32 = vadd.f32 %v5518_v19, %v3126_v38  ;;  %v5503_v46 = vpop.f32.mrf.mxu0  ;;  %v3524_v12 = vsel %vm1372_vm9, %v7641_v7, 0.0 }
 0x1a4   : > { %v3457_v29 = vpop.f32.mrf.mxu1  ;;  %v3575_v21 = vadd.f32 %v3574_v34, %v3573_v49  ;;  %v3523_v10 = vadd.f32 %v3522_v2, %v3521_v63  ;;  %v3129_v15 = vadd.f32 %v5503_v46, %v7589_v27  ;;  %v3582_v49 = vsel %vm1372_vm9, %v3561_v24, 0.0 }
 0x1a5   : > { %v7662_v62 = vadd.f32 %v3457_v29, %v3124_v42  ;;  %v3088_v13 = vpop.f32.mrf.mxu0  ;;  %v3578_v27 = vsel %vm1372_vm9, %v3559_v28, 0.0  ;;  %v3530_v2 = vsel %vm1372_vm9, %v7653_v32, 0.0 }
 0x1a6   : > { %v5521_v40 = vpop.f32.mrf.mxu1  ;;  %v3525_v59 = vadd.f32 %v3524_v12, %v3523_v10  ;;  %v3577_v61 = vadd.f32 %v3576_v20, %v3575_v21  ;;  %v3127_v3 = vadd.f32 %v3088_v13, %v7591_v26  ;;  %v3562_v26 = vmul.f32 %v7653_v32, %v7653_v32 }
 0x1a7   : > { %v7664_v56 = vadd.f32 %v5521_v40, %v3129_v15  ;;  %v3526_v22 = vsel %vm1372_vm9, %v7662_v62, 0.0  ;;  %v3560_v54 = vmul.f32 %v7662_v62, %v7662_v62  ;;  %v5504_v9 = vpop.f32.mrf.mxu0 }
 0x1a8   : > { %v3470_v43 = vpop.f32.mrf.mxu1  ;;  %v3579_v50 = vadd.f32 %v3578_v27, %v3577_v61  ;;  %v3527_v14 = vadd.f32 %v3526_v22, %v3525_v59  ;;  %v3130_v48 = vadd.f32 %v5504_v9, %v7595_v0 }
 0x1a9   : > { %8179 = vst [vmem:[#allocation20_spill] sm:$0xff] %v7664_v56  ;;  %v3580_v45 = vsel %vm1372_vm9, %v3560_v54, 0.0  ;;  %v7679_v8 = vadd.f32 %v3470_v43, %v3127_v3  ;;  %v3091_v19 = vpop.f32.mrf.mxu0  ;;  %v3565_v20 = vmul.f32 %v7664_v56, %v7664_v56 }
 0x1aa   : > { %v5522_v58 = vpop.f32.mrf.mxu1  ;;  %v3529_v17 = vadd.f32 %v3528_v60, %v3527_v14  ;;  %v3581_v34 = vadd.f32 %v3580_v45, %v3579_v50  ;;  %v3128_v63 = vadd.f32 %v3091_v19, %v7599_v4  ;;  %v3584_v4 = vsel %vm1372_vm9, %v3562_v26, 0.0 }
 0x1ab   : > { %8180 = vst [vmem:[#allocation21_spill] sm:$0xff] %v7679_v8  ;;  %v3563_v28 = vmul.f32 %v7679_v8, %v7679_v8  ;;  %v7690_v42 = vadd.f32 %v5522_v58, %v3130_v48  ;;  %v5507_v0 = vpop.f32.mrf.mxu0  ;;  %v3532_v24 = vsel %vm1372_vm9, %v7679_v8, 0.0  ;;  %v3536_v58 = vsel %vm1372_vm9, %v7664_v56, 0.0 }
 0x1ac   : > { %v3473_v29 = vpop.f32.mrf.mxu1  ;;  %v3583_v46 = vadd.f32 %v3582_v49, %v3581_v34  ;;  %v3531_v21 = vadd.f32 %v3530_v2, %v3529_v17  ;;  %v3133_v15 = vadd.f32 %v5507_v0, %v7601_v1 }
 0x1ad   : > { %v7692_v10 = vadd.f32 %v3473_v29, %v3128_v63  ;;  %v3104_v40 = vpop.f32.mrf.mxu0  ;;  %v3586_v27 = vsel %vm1372_vm9, %v3563_v28, 0.0  ;;  %v3566_v48 = vmul.f32 %v7690_v42, %v7690_v42  ;;  %v3590_v28 = vsel %vm1372_vm9, %v3565_v20, 0.0 }
 0x1ae   : > { %v5525_v12 = vpop.f32.mrf.mxu1  ;;  %v3533_v59 = vadd.f32 %v3532_v24, %v3531_v21  ;;  %v3585_v61 = vadd.f32 %v3584_v4, %v3583_v46  ;;  %v3131_v43 = vadd.f32 %v3104_v40, %v7603_v33 }
 0x1af   : > { %8181 = vst [vmem:[#allocation23_spill] sm:$0xff] %v7692_v10  ;;  %v3534_v3 = vsel %vm1372_vm9, %v7692_v10, 0.0  ;;  %v3564_v1 = vmul.f32 %v7692_v10, %v7692_v10  ;;  %v7707_v54 = vadd.f32 %v5525_v12, %v3133_v15  ;;  %v5508_v9 = vpop.f32.mrf.mxu0  ;;  %v3592_v4 = vsel %vm1372_vm9, %v3566_v48, 0.0 }
 0x1b0   : > { %v3486_v22 = vpop.f32.mrf.mxu1  ;;  %v3587_v50 = vadd.f32 %v3586_v27, %v3585_v61  ;;  %v3535_v26 = vadd.f32 %v3534_v3, %v3533_v59  ;;  %v3134_v45 = vadd.f32 %v5508_v9, %v7605_v37  ;;  %v3538_v37 = vsel %vm1372_vm9, %v7690_v42, 0.0 }
 0x1b1   : > { %8182 = vst [vmem:[#allocation5_spill] sm:$0xff] %v7707_v54  ;;  %v3588_v14 = vsel %vm1372_vm9, %v3564_v1, 0.0  ;;  %v7718_v17 = vadd.f32 %v3486_v22, %v3131_v43  ;;  %v3107_v33 = vpop.f32.mrf.mxu0  ;;  %v3569_v59 = vmul.f32 %v7707_v54, %v7707_v54 }
 0x1b2   : > { %v5526_v19 = vpop.f32.mrf.mxu1  ;;  %v3537_v34 = vadd.f32 %v3536_v58, %v3535_v26  ;;  %v3589_v63 = vadd.f32 %v3588_v14, %v3587_v50  ;;  %v3132_v2 = vadd.f32 %v3107_v33, %v7607_v11 }
 0x1b3   : > { %8183 = vst [vmem:[#allocation10_spill] sm:$0xff] %v7718_v17  ;;  %v7720_v49 = vadd.f32 %v5526_v19, %v3134_v45  ;;  %v3567_v29 = vmul.f32 %v7718_v17, %v7718_v17  ;;  %v7728_v46 = vpop.f32.mrf.mxu0  ;;  %v3540_v24 = vsel %vm1372_vm9, %v7718_v17, 0.0  ;;  %v3544_v45 = vsel %vm1372_vm9, %v7707_v54, 0.0 }
 0x1b4   : > { %v3489_v0 = vpop.f32.mrf.mxu1  ;;  %v3591_v21 = vadd.f32 %v3590_v28, %v3589_v63  ;;  %v3539_v15 = vadd.f32 %v3538_v37, %v3537_v34 }
 0x1b5   : > { %8184 = vst [vmem:[#allocation3_spill] sm:$0xff] %v7720_v49  ;;  %v7735_v11 = vadd.f32 %v3489_v0, %v3132_v2  ;;  %v7737_v20 = vpop.f32.mrf.mxu0  ;;  %v3594_v1 = vsel %vm1372_vm9, %v3567_v29, 0.0  ;;  %v3570_v58 = vmul.f32 %v7720_v49, %v7720_v49  ;;  %v3598_v2 = vsel %vm1372_vm9, %v3569_v59, 0.0 }
 0x1b6   : > { %v7733_v12 = vpop.f32.mrf.mxu1  ;;  %v3541_v61 = vadd.f32 %v3540_v24, %v3539_v15  ;;  %v3593_v3 = vadd.f32 %v3592_v4, %v3591_v21  ;;  %v3546_v28 = vsel %vm1372_vm9, %v7720_v49, 0.0 }
 0x1b7   : > { %8185 = vst [vmem:[#allocation2_spill] sm:$0xff] %v7735_v11  ;;  %v3542_v27 = vsel %vm1372_vm9, %v7735_v11, 0.0  ;;  %v3568_v22 = vmul.f32 %v7735_v11, %v7735_v11  ;;  %v7750_v9 = vpop.f32.mrf.mxu0  ;;  %v3600_v15 = vsel %vm1372_vm9, %v3570_v58, 0.0  ;;  %v3895_v11 = vadd.f32 %v7733_v12, %v7728_v46 }
 0x1b8   : > { %v7748_v43 = vpop.f32.mrf.mxu1  ;;  %v3595_v26 = vadd.f32 %v3594_v1, %v3593_v3  ;;  %v3543_v14 = vadd.f32 %v3542_v27, %v3541_v61 }
 0x1b9   : > { %v3596_v48 = vsel %vm1372_vm9, %v3568_v22, 0.0  ;;  %v7759_v33 = vpop.f32.mrf.mxu0  ;;  %v3887_v54 = vadd.f32 %v7748_v43, %v7737_v20 }
 0x1ba   : > { %v5550_v19 = vpop.f32.mrf.mxu1  ;;  %v3545_v34 = vadd.f32 %v3544_v45, %v3543_v14  ;;  %v3597_v63 = vadd.f32 %v3596_v48, %v3595_v26 }
 0x1bb   : > { %v7766_v29 = vpop.f32.mrf.mxu0 }
 0x1bc   : > { %v7764_v37 = vpop.f32.mrf.mxu1  ;;  %v3547_v0 = vadd.f32 %v3546_v28, %v3545_v34  ;;  %v3599_v21 = vadd.f32 %v3598_v2, %v3597_v63 }
 0x1bd   : > { %v7769_v24 = vpop.f32.mrf.mxu0 }
 0x1be   : > { %v5553_v4 = vpop.f32.mrf.mxu1  ;;  %v3548_v61 = vrot.slane %v3547_v0, 4  ;;  %v3601_v3 = vadd.f32 %v3600_v15, %v3599_v21 }
 0x1bf   : > { %v5536_v27 = vpop.f32.mrf.mxu0 }
 0x1c0   : > { %v3902_v1 = vpop.f32.mrf.mxu1  ;;  %v3549_v22 = vadd.f32 %v3548_v61, %v3547_v0  ;;  %v3602_v59 = vrot.slane %v3601_v3, 4 }
 0x1c1   : > { %v3805_v14 = vpop.f32.mrf.mxu0 }
 0x1c2   : > { %v5554_v26 = vpop.f32.mrf.mxu1  ;;  %v3550_v45 = vrot.slane %v3549_v22, 2  ;;  %v3603_v48 = vadd.f32 %v3602_v59, %v3601_v3 }
 0x1c3   : > { %v5539_v40 = vpop.f32.mrf.mxu0 }
 0x1c4   : > { %v3905_v50 = vpop.f32.mrf.mxu1  ;;  %v3551_v60 = vadd.f32 %v3550_v45, %v3549_v22  ;;  %v3604_v34 = vrot.slane %v3603_v48, 2 }
 0x1c5   : > { %v3818_v2 = vpop.f32.mrf.mxu0 }
 0x1c6   : > { %v5557_v63 = vpop.f32.mrf.mxu1  ;;  %v3552_v58 = vrot.slane %v3551_v60, 1  ;;  %v3605_v28 = vadd.f32 %v3604_v34, %v3603_v48 }
 0x1c7   : > { %v5540_v38 = vpop.f32.mrf.mxu0 }
 0x1c8   : > { %v3918_v13 = vpop.f32.mrf.mxu1  ;;  %v3553_v44 = vadd.f32 %v3552_v58, %v3551_v60  ;;  %v3606_v21 = vrot.slane %v3605_v28, 1  ;;  %v8186_v58 = vpack.c.bf16 %v7332_v35, %v7322_v47  ;;  %v3898_v35 = vadd.f32 %v5550_v19, %v7750_v9 }
 0x1c9   : > { %v3821_v53 = vpop.f32.mrf.mxu0  ;;  %v3903_v9 = vadd.f32 %v3902_v1, %v7769_v24  ;;  %v7808_v19 = vadd.f32 %v3905_v50, %v3805_v14 }
 0x1ca   : > { %v5558_v15 = vpop.f32.mrf.mxu1  ;;  %v7772_v0 = vadd.f32 %v3553_v44, %v7593_v30  ;;  %v3607_v61 = vadd.f32 %v3606_v21, %v3605_v28 }
 0x1cb   : > { %v5543_v3 = vpop.f32.mrf.mxu0 }
 0x1cc   : > { %v3921_v16 = vpop.f32.mrf.mxu1  ;;  %v7775_v59 = vadd.f32 %v3607_v61, %v7597_v23 }
 0x1cd   : > { %v3834_v45 = vpop.f32.mrf.mxu0 }
 0x1ce   : > { %v5561_v22 = vpop.f32.mrf.mxu1 }
 0x1cf   : > { %v5544_v34 = vpop.f32.mrf.mxu0 }
 0x1d0   : > { %v3934_v48 = vpop.f32.mrf.mxu1 }
 0x1d1   : > { %v2291_v60 = vpop.permute.xlu0 %2290  ;;  %v7781_v44 = vpop.f32.mrf.mxu0 }
 0x1d2   : > { %v5562_v17 = vpop.f32.mrf.mxu1  ;;  %v2309_v30 = vsel %vm1372_vm9, %v8186_v58, %v2291_v60  ;;  %v8187_v60 = vpack.c.bf16 %v7345_v41, %v7329_v52 }
 0x1d3   : > { %v4900_v23 = vcombine.low %v2309_v30, %v2309_v30  ;;  %v4901_v21 = vcombine.high %v2309_v30, %v2309_v30  ;;  %v5567_v61 = vpop.f32.mrf.mxu0 }
 0x1d4   : > { %v7783_v28 = vpop.f32.mrf.mxu1  ;;  %v4053_v12 = vadd.f32 %v5567_v61, %v3895_v11  ;;  %v3914_v11 = vadd.f32 %v5554_v26, %v5536_v27 }
 0x1d5   : > { %2387 = vst.msk [vmem:[%s5806_s13 + $0x10] sm:$0xf] %vm2384_vm10, %v4900_v23  ;;  %2388 = vst.msk [vmem:[%s5806_s13 + $0x14] sm:$0xf] %vm2384_vm10, %v4901_v21  ;;  %v2289_v47 = vpop.permute.xlu0 %2288  ;;  %v3988_v30 = vpop.f32.mrf.mxu0  ;;  %v3890_v23 = vadd.f32 %v7764_v37, %v7759_v33  ;;  %v3911_v21 = vadd.f32 %v5553_v4, %v7766_v29  ;;  %v7814_v33 = vadd.f32 %v5558_v15, %v5540_v38 }
 0x1d6   : > { %v5585_v49 = vpop.f32.mrf.mxu1  ;;  %v2306_v58 = vsel %vm1372_vm9, %v8187_v60, %v2289_v47  ;;  %v4051_v43 = vadd.f32 %v3988_v30, %v3887_v54  ;;  %v7810_v54 = vadd.f32 %v5557_v63, %v5539_v40  ;;  %v7812_v47 = vadd.f32 %v3918_v13, %v3818_v2 }
 0x1d7   : > { %v4898_v8 = vcombine.low %v2306_v58, %v2306_v58  ;;  %v4899_v20 = vcombine.high %v2306_v58, %v2306_v58  ;;  %v5568_v10 = vpop.f32.mrf.mxu0  ;;  %v4307_v37 = vadd.f32 %v5585_v49, %v4053_v12  ;;  %v7816_v60 = vadd.f32 %v3921_v16, %v3821_v53 }
 0x1d8   : > { %v4242_v46 = vpop.f32.mrf.mxu1  ;;  %v4054_v41 = vadd.f32 %v5568_v10, %v3898_v35  ;;  %v7818_v58 = vadd.f32 %v5561_v22, %v5543_v3  ;;  %v8188_v10 = vpack.c.bf16 %v7380_v36, %v7351_v18  ;;  %v7824_v13 = vadd.f32 %v3934_v48, %v3834_v45 }
 0x1d9   : > { %2385 = vst.msk [vmem:[%s5806_s13] sm:$0xf] %vm2384_vm10, %v4898_v8  ;;  %2386 = vst.msk [vmem:[%s5806_s13 + $0x4] sm:$0xf] %vm2384_vm10, %v4899_v20  ;;  %v7805_v52 = vadd.f32 %v4242_v46, %v4051_v43  ;;  %v3991_v61 = vpop.f32.mrf.mxu0  ;;  %v2295_v4 = vpop.permute.xlu1 %2294  ;;  %v7826_v38 = vadd.f32 %v5562_v17, %v5544_v34  ;;  %v4324_v36 = vsel %vm1372_vm9, %v4307_v37, 0.0  ;;  %v4361_v14 = vmul.f32 %v4307_v37, %v4307_v37 }
 0x1da   : > { %v5586_v56 = vpop.f32.mrf.mxu1  ;;  %v2315_v50 = vsel %vm1372_vm9, %v8188_v10, %v2295_v4  ;;  %v4052_v40 = vadd.f32 %v3991_v61, %v3890_v23  ;;  %v8189_v48 = vpack.c.bf16 %v7397_v57, %v7368_v5 }
 0x1db   : > { %v4308_v8 = vadd.f32 %v5586_v56, %v4054_v41  ;;  %v5571_v24 = vpop.f32.mrf.mxu0  ;;  %v4359_v56 = vmul.f32 %v7805_v52, %v7805_v52  ;;  %v4904_v53 = vcombine.low %v2315_v50, %v2315_v50  ;;  %v4905_v49 = vcombine.high %v2315_v50, %v2315_v50 }
 0x1dc   : > { %v4245_v29 = vpop.f32.mrf.mxu1  ;;  %v4057_v27 = vadd.f32 %v5571_v24, %v3911_v21  ;;  %v4321_v63 = vsel %vm1372_vm9, %v7805_v52, 0.0  ;;  %v4378_v57 = vsel %vm1372_vm9, %v4361_v14, 0.0 }
 0x1dd   : > { %v4306_v1 = vadd.f32 %v4245_v29, %v4052_v40  ;;  %v4004_v26 = vpop.f32.mrf.mxu0  ;;  %v4414_v18 = vpack.c.bf16 %v4308_v8, %v4307_v37  ;;  %2391 = vst.msk [vmem:[%s5806_s13 + $0x30] sm:$0xf] %vm2384_vm10, %v4904_v53  ;;  %v2293_v2 = vpop.permute.xlu1 %2292  ;;  %v4362_v3 = vmul.f32 %v4308_v8, %v4308_v8  ;;  %2392 = vst.msk [vmem:[%s5806_s13 + $0x34] sm:$0xf] %vm2384_vm10, %v4905_v49  ;;  %v4375_v23 = vsel %vm1372_vm9, %v4359_v56, 0.0 }
 0x1de   : > { %v5589_v16 = vpop.f32.mrf.mxu1  ;;  %v4055_v15 = vadd.f32 %v4004_v26, %v3903_v9  ;;  %v2312_v34 = vsel %vm1372_vm9, %v8189_v48, %v2293_v2  ;;  %v4326_v50 = vsel %vm1372_vm9, %v4308_v8, 0.0 }
 0x1df   : > { %v4322_v22 = vsel %vm1372_vm9, %v4306_v1, 0.0  ;;  %v4360_v45 = vmul.f32 %v4306_v1, %v4306_v1  ;;  %4431 = vrot.lane.b32.xlu1 %v4414_v18, %s5731_s25  ;;  %v5572_v35 = vpop.f32.mrf.mxu0  ;;  %v4902_v12 = vcombine.low %v2312_v34, %v2312_v34  ;;  %v4903_v20 = vcombine.high %v2312_v34, %v2312_v34 }
 0x1e0   : > { %v4258_v17 = vpop.f32.mrf.mxu1  ;;  %v4323_v30 = vadd.f32 %v4322_v22, %v4321_v63  ;;  %v4311_v41 = vadd.f32 %v5589_v16, %v4057_v27  ;;  %v4058_v9 = vadd.f32 %v5572_v35, %v3914_v11  ;;  %v4380_v40 = vsel %vm1372_vm9, %v4362_v3, 0.0  ;;  %v8190_v11 = vld [vmem:[#allocation8_spill] sm:$0xff]  ;;  %v8192_v22 = vld [vmem:[#allocation13_spill] sm:$0xff] }
 0x1e1   : > { %v7843_v43 = vadd.f32 %v4258_v17, %v4055_v15  ;;  %v4376_v21 = vsel %vm1372_vm9, %v4360_v45, 0.0  ;;  %v4007_v5 = vpop.f32.mrf.mxu0  ;;  %2389 = vst.msk [vmem:[%s5806_s13 + $0x20] sm:$0xf] %vm2384_vm10, %v4902_v12  ;;  %2390 = vst.msk [vmem:[%s5806_s13 + $0x24] sm:$0xf] %vm2384_vm10, %v4903_v20  ;;  %v2299_v10 = vpop.permute.xlu1 %2298  ;;  %v8191_v24 = vpack.c.bf16 %v7429_v55, %v8190_v11  ;;  %v4413_v16 = vpack.c.bf16 %v4306_v1, %v7805_v52  ;;  %v8193_v45 = vld [vmem:[#allocation7_spill] sm:$0xff] }
 0x1e2   : > { %v5590_v46 = vpop.f32.mrf.mxu1  ;;  %v4325_v61 = vadd.f32 %v4324_v36, %v4323_v30  ;;  %v4377_v37 = vadd.f32 %v4376_v21, %v4375_v23  ;;  %v4365_v63 = vmul.f32 %v4311_v41, %v4311_v41  ;;  %v4056_v55 = vadd.f32 %v4007_v5, %v7808_v19 }
 0x1e3   : > { %v4363_v29 = vmul.f32 %v7843_v43, %v7843_v43  ;;  %v2321_v56 = vsel %vm1372_vm9, %v8191_v24, %v2299_v10  ;;  %v2297_v53 = vpop.permute.xlu0 %2296  ;;  %v5575_v49 = vpop.f32.mrf.mxu0  ;;  %v4312_v18 = vadd.f32 %v5590_v46, %v4058_v9  ;;  %v4328_v8 = vsel %vm1372_vm9, %v7843_v43, 0.0  ;;  %4429 = vrot.lane.b32.xlu0 %v4413_v16, %s5731_s25  ;;  %v8196_v10 = vld [vmem:[#allocation12_spill] sm:$0xff] }
 0x1e4   : > { %v4261_v4 = vpop.f32.mrf.mxu1  ;;  %v4379_v27 = vadd.f32 %v4378_v57, %v4377_v37  ;;  %v4327_v26 = vadd.f32 %v4326_v50, %v4325_v61  ;;  %v4908_v14 = vcombine.low %v2321_v56, %v2321_v56  ;;  %v4909_v17 = vcombine.high %v2321_v56, %v2321_v56 }
 0x1e5   : > { %v4020_v2 = vpop.f32.mrf.mxu0  ;;  %v4382_v15 = vsel %vm1372_vm9, %v4363_v29, 0.0  ;;  %v8194_v48 = vpack.c.bf16 %v8192_v22, %v8193_v45  ;;  %v4310_v35 = vadd.f32 %v4261_v4, %v4056_v55  ;;  %v4061_v46 = vadd.f32 %v5575_v49, %v7810_v54  ;;  %v8195_v4 = vld [vmem:[#allocation19_spill] sm:$0xff]  ;;  %v8198_v22 = vld [vmem:[#allocation22_spill] sm:$0xff] }
 0x1e6   : > { %v5593_v36 = vpop.f32.mrf.mxu1  ;;  %v4329_v52 = vadd.f32 %v4328_v8, %v4327_v26  ;;  %v4381_v1 = vadd.f32 %v4380_v40, %v4379_v27  ;;  %2395 = vst.msk [vmem:[%s5806_s13 + $0x50] sm:$0xf] %vm2384_vm10, %v4908_v14  ;;  %2396 = vst.msk [vmem:[%s5806_s13 + $0x54] sm:$0xf] %vm2384_vm10, %v4909_v17  ;;  %v4366_v23 = vmul.f32 %v4312_v18, %v4312_v18  ;;  %v4332_v11 = vsel %vm1372_vm9, %v4311_v41, 0.0  ;;  %v8199_v45 = vld [vmem:[#allocation18_spill] sm:$0xff] }
 0x1e7   : > { %v2318_v34 = vsel %vm1372_vm9, %v8194_v48, %v2297_v53  ;;  %v5576_v12 = vpop.f32.mrf.mxu0  ;;  %v4059_v9 = vadd.f32 %v4020_v2, %v7812_v47  ;;  %v4416_v5 = vpack.c.bf16 %v4312_v18, %v4311_v41  ;;  %v4330_v61 = vsel %vm1372_vm9, %v4310_v35, 0.0 }
 0x1e8   : > { %v4274_v3 = vpop.f32.mrf.mxu1  ;;  %v4906_v30 = vcombine.low %v2318_v34, %v2318_v34  ;;  %v4907_v19 = vcombine.high %v2318_v34, %v2318_v34  ;;  %v4383_v20 = vadd.f32 %v4382_v15, %v4381_v1  ;;  %v4364_v37 = vmul.f32 %v4310_v35, %v4310_v35 }
 0x1e9   : > { %v2303_v57 = vpop.permute.xlu1 %2302  ;;  %v4062_v29 = vadd.f32 %v5576_v12, %v7814_v33  ;;  %v8197_v54 = vpack.c.bf16 %v8195_v4, %v8196_v10  ;;  %v4023_v40 = vpop.f32.mrf.mxu0  ;;  %v3938_v47 = vadd.f32 %v7783_v28, %v7781_v44  ;;  %v4331_v24 = vadd.f32 %v4330_v61, %v4329_v52  ;;  %4435 = vrot.lane.b32.xlu1 %v4416_v5, %s5731_s25 }
 0x1ea   : > { %v5594_v21 = vpop.f32.mrf.mxu1  ;;  %2393 = vst.msk [vmem:[%s5806_s13 + $0x40] sm:$0xf] %vm2384_vm10, %v4906_v30  ;;  %2394 = vst.msk [vmem:[%s5806_s13 + $0x44] sm:$0xf] %vm2384_vm10, %v4907_v19  ;;  %v4313_v56 = vadd.f32 %v4274_v3, %v4059_v9  ;;  %v4384_v33 = vsel %vm1372_vm9, %v4364_v37, 0.0  ;;  %v4315_v53 = vadd.f32 %v5593_v36, %v4061_v46  ;;  %v4386_v8 = vsel %vm1372_vm9, %v4365_v63, 0.0 }
 0x1eb   : > { %v2327_v50 = vsel %vm1372_vm9, %v8197_v54, %v2303_v57  ;;  %v2301_v26 = vpop.permute.xlu0 %2300  ;;  %v5579_v14 = vpop.f32.mrf.mxu0  ;;  %v4334_v44 = vsel %vm1372_vm9, %v4312_v18, 0.0  ;;  %v4333_v28 = vadd.f32 %v4332_v11, %v4331_v24  ;;  %v4385_v41 = vadd.f32 %v4384_v33, %v4383_v20 }
 0x1ec   : > { %v4277_v16 = vpop.f32.mrf.mxu1  ;;  %v4912_v49 = vcombine.low %v2327_v50, %v2327_v50  ;;  %v4913_v27 = vcombine.high %v2327_v50, %v2327_v50  ;;  %v4388_v55 = vsel %vm1372_vm9, %v4366_v23, 0.0  ;;  %v4367_v2 = vmul.f32 %v4313_v56, %v4313_v56 }
 0x1ed   : > { %v4316_v52 = vadd.f32 %v5594_v21, %v4062_v29  ;;  %v4415_v36 = vpack.c.bf16 %v4310_v35, %v7843_v43  ;;  %v4036_v1 = vpop.f32.mrf.mxu0  ;;  %v4387_v15 = vadd.f32 %v4386_v8, %v4385_v41  ;;  %v4335_v63 = vadd.f32 %v4334_v44, %v4333_v28 }
 0x1ee   : > { %v5597_v17 = vpop.f32.mrf.mxu1  ;;  %2399 = vst.msk [vmem:[%s5806_s13 + $0x70] sm:$0xf] %vm2384_vm10, %v4912_v49  ;;  %2400 = vst.msk [vmem:[%s5806_s13 + $0x74] sm:$0xf] %vm2384_vm10, %v4913_v27  ;;  %v4060_v18 = vadd.f32 %v4023_v40, %v7816_v60  ;;  %v8200_v48 = vpack.c.bf16 %v8198_v22, %v8199_v45  ;;  %v4369_v30 = vmul.f32 %v4315_v53, %v4315_v53  ;;  %v4336_v19 = vsel %vm1372_vm9, %v4313_v56, 0.0 }
 0x1ef   : > { %4433 = vrot.lane.b32.xlu0 %v4415_v36, %s5731_s25  ;;  %v5580_v35 = vpop.f32.mrf.mxu0  ;;  %v4337_v12 = vadd.f32 %v4336_v19, %v4335_v63  ;;  %v4389_v20 = vadd.f32 %v4388_v55, %v4387_v15  ;;  %v4390_v23 = vsel %vm1372_vm9, %v4367_v2, 0.0  ;;  %v4065_v60 = vadd.f32 %v5579_v14, %v7818_v58 }
 0x1f0   : > { %v4290_v3 = vpop.f32.mrf.mxu1  ;;  %v2324_v34 = vsel %vm1372_vm9, %v8200_v48, %v2301_v26  ;;  %v4314_v21 = vadd.f32 %v4277_v16, %v4060_v18  ;;  %v4063_v5 = vadd.f32 %v4036_v1, %v7824_v13  ;;  %v4418_v57 = vpack.c.bf16 %v4316_v52, %v4315_v53 }
 0x1f1   : > { %v4910_v46 = vcombine.low %v2324_v34, %v2324_v34  ;;  %v4911_v43 = vcombine.high %v2324_v34, %v2324_v34  ;;  %v4066_v61 = vadd.f32 %v5580_v35, %v7826_v38  ;;  %v4039_v37 = vpop.f32.mrf.mxu0  ;;  %v4391_v29 = vadd.f32 %v4390_v23, %v4389_v20 }
 0x1f2   : > { %v5598_v9 = vpop.f32.mrf.mxu1  ;;  %v4370_v4 = vmul.f32 %v4316_v52, %v4316_v52  ;;  %v4338_v10 = vsel %vm1372_vm9, %v4314_v21, 0.0  ;;  %v4368_v54 = vmul.f32 %v4314_v21, %v4314_v21  ;;  %v4317_v40 = vadd.f32 %v4290_v3, %v4063_v5  ;;  %4439 = vrot.lane.b32.xlu1 %v4418_v57, %s5731_s25 }
 0x1f3   : > { %2397 = vst.msk [vmem:[%s5806_s13 + $0x60] sm:$0xf] %vm2384_vm10, %v4910_v46  ;;  %2398 = vst.msk [vmem:[%s5806_s13 + $0x64] sm:$0xf] %vm2384_vm10, %v4911_v43  ;;  %v4339_v50 = vadd.f32 %v4338_v10, %v4337_v12  ;;  %v4320_v11 = vadd.f32 %v5598_v9, %v4066_v61  ;;  %v4417_v24 = vpack.c.bf16 %v4314_v21, %v4313_v56  ;;  %v4340_v58 = vsel %vm1372_vm9, %v4315_v53, 0.0 }
 0x1f4   : > { %v4392_v16 = vsel %vm1372_vm9, %v4368_v54, 0.0  ;;  %v4064_v13 = vadd.f32 %v4039_v37, %v3938_v47  ;;  %v4319_v38 = vadd.f32 %v5597_v17, %v4065_v60  ;;  %v4293_v27 = vpop.f32.mrf.mxu1  ;;  %v4394_v26 = vsel %vm1372_vm9, %v4369_v30, 0.0  ;;  %v4542_v10 = vld [vmem:[%s5793_s28] sm:$0x1] }
 0x1f5   : > { %v4341_v33 = vadd.f32 %v4340_v58, %v4339_v50  ;;  %v4393_v49 = vadd.f32 %v4392_v16, %v4391_v29  ;;  %4437 = vrot.lane.b32.xlu0 %v4417_v24, %s5731_s25  ;;  %v4342_v14 = vsel %vm1372_vm9, %v4316_v52, 0.0  ;;  %v4371_v8 = vmul.f32 %v4317_v40, %v4317_v40 }
 0x1f6   : > { %v4318_v44 = vadd.f32 %v4293_v27, %v4064_v13  ;;  %v4396_v28 = vsel %vm1372_vm9, %v4370_v4, 0.0  ;;  %v4420_v53 = vpack.c.bf16 %v4320_v11, %v4319_v38  ;;  %v4344_v55 = vsel %vm1372_vm9, %v4317_v40, 0.0 }
 0x1f7   : > { %v4395_v56 = vadd.f32 %v4394_v26, %v4393_v49  ;;  %v4343_v41 = vadd.f32 %v4342_v14, %v4341_v33  ;;  %v4373_v15 = vmul.f32 %v4319_v38, %v4319_v38  ;;  %v4398_v52 = vsel %vm1372_vm9, %v4371_v8, 0.0 }
 0x1f8   : > { %v4346_v47 = vsel %vm1372_vm9, %v4318_v44, 0.0  ;;  %v4372_v2 = vmul.f32 %v4318_v44, %v4318_v44  ;;  %v4419_v17 = vpack.c.bf16 %v4318_v44, %v4317_v40  ;;  %4443 = vrot.lane.b32.xlu1 %v4420_v53, %s5731_s25  ;;  %v4348_v22 = vsel %vm1372_vm9, %v4319_v38, 0.0  ;;  %v4546_v40 = vld [vmem:[%s5801_s10] sm:$0x1]  ;;  %v8205_v53 = vld [vmem:[#allocation20_spill] sm:$0xff] }
 0x1f9   : > { %v4345_v36 = vadd.f32 %v4344_v55, %v4343_v41  ;;  %v4397_v1 = vadd.f32 %v4396_v28, %v4395_v56  ;;  %v4374_v45 = vmul.f32 %v4320_v11, %v4320_v11  ;;  %v4402_v30 = vsel %vm1372_vm9, %v4373_v15, 0.0 }
 0x1fa   : > { %v4400_v63 = vsel %vm1372_vm9, %v4372_v2, 0.0  ;;  %4441 = vrot.lane.b32.xlu0 %v4419_v17, %s5731_s25  ;;  %v4350_v19 = vsel %vm1372_vm9, %v4320_v11, 0.0  ;;  %v8201_v13 = vpack.c.bf16 %v7616_v39, %v7610_v25  ;;  %v8202_v38 = vpack.c.bf16 %v7622_v51, %v7613_v31 }
 0x1fb   : > { %v4399_v18 = vadd.f32 %v4398_v52, %v4397_v1  ;;  %v4347_v3 = vadd.f32 %v4346_v47, %v4345_v36  ;;  %v4404_v35 = vsel %vm1372_vm9, %v4374_v45, 0.0  ;;  %v8203_v14 = vpack.c.bf16 %v7653_v32, %v7628_v6 }
 0x1fc   : > { %v8204_v51 = vpack.c.bf16 %v7662_v62, %v7641_v7  ;;  %v8206_v55 = vpack.c.bf16 %v7690_v42, %v8205_v53  ;;  %v8207_v7 = vld [vmem:[#allocation23_spill] sm:$0xff]  ;;  %v8208_v62 = vld [vmem:[#allocation21_spill] sm:$0xff] }
 0x1fd   : > { %v4349_v48 = vadd.f32 %v4348_v22, %v4347_v3  ;;  %v4401_v34 = vadd.f32 %v4400_v63, %v4399_v18  ;;  %v8209_v1 = vpack.c.bf16 %v8207_v7, %v8208_v62  ;;  %v8210_v18 = vld [vmem:[#allocation3_spill] sm:$0xff]  ;;  %v8211_v3 = vld [vmem:[#allocation5_spill] sm:$0xff] }
 0x1fe   : > { %v8212_v22 = vpack.c.bf16 %v8210_v18, %v8211_v3 }
 0x1ff   : > { %v4351_v46 = vadd.f32 %v4350_v19, %v4349_v48  ;;  %v4403_v43 = vadd.f32 %v4402_v30, %v4401_v34  ;;  %v8213_v19 = vld [vmem:[#allocation2_spill] sm:$0xff] }
 0x201   : > { %v4352_v12 = vrot.slane %v4351_v46, 4  ;;  %v4405_v20 = vadd.f32 %v4404_v35, %v4403_v43 }
 0x203   : > { %v4353_v23 = vadd.f32 %v4352_v12, %v4351_v46  ;;  %v4406_v21 = vrot.slane %v4405_v20, 4  ;;  %v8214_v46 = vld [vmem:[#allocation10_spill] sm:$0xff] }
 0x204   : > { %v8215_v43 = vpack.c.bf16 %v8213_v19, %v8214_v46 }
 0x205   : > { %v4354_v60 = vrot.slane %v4353_v23, 2  ;;  %v4407_v9 = vadd.f32 %v4406_v21, %v4405_v20 }
 0x207   : > { %v4355_v5 = vadd.f32 %v4354_v60, %v4353_v23  ;;  %v4408_v57 = vrot.slane %v4407_v9, 2 }
 0x209   : > { %v4356_v61 = vrot.slane %v4355_v5, 1  ;;  %v4409_v37 = vadd.f32 %v4408_v57, %v4407_v9 }
 0x20b   : > { %v4357_v29 = vadd.f32 %v4356_v61, %v4355_v5  ;;  %v4410_v4 = vrot.slane %v4409_v37, 1 }
 0x20d   : > { %v4358_v54 = vadd.f32 %v4357_v29, %v7772_v0  ;;  %v4411_v50 = vadd.f32 %v4410_v4, %v4409_v37 }
 0x20f   : > { %v4412_v11 = vadd.f32 %v4411_v50, %v7775_v59  ;;  %v4543_v24 = vadd.f32 %v4542_v10, %v4358_v54 }
 0x211   : > { %4545 = vst.msk [vmem:[%s5793_s28] sm:$0x1] %vm4544_vm11, %v4543_v24  ;;  %v4547_v58 = vadd.f32 %v4546_v40, %v4412_v11 }
 0x213   : > { %4548 = vst.msk [vmem:[%s5801_s10] sm:$0x1] %vm4544_vm11, %v4547_v58 }
 0x251   : > { %v4432_v16 = vpop.permute.xlu1 %4431 }
 0x252   : > { %v4450_v33 = vsel %vm1372_vm9, %v8201_v13, %v4432_v16 }
 0x253   : > { %v5134_v0 = vcombine.low %v4450_v33, %v4450_v33  ;;  %v5135_v49 = vcombine.high %v4450_v33, %v4450_v33 }
 0x255   : > { %5150 = vst.msk [vmem:[%s5806_s13 + $0x18] sm:$0xf] %vm2384_vm10, %v5134_v0  ;;  %5151 = vst.msk [vmem:[%s5806_s13 + $0x1c] sm:$0xf] %vm2384_vm10, %v5135_v49  ;;  %v4430_v59 = vpop.permute.xlu0 %4429 }
 0x256   : > { %v4447_v27 = vsel %vm1372_vm9, %v8202_v38, %v4430_v59 }
 0x257   : > { %v5132_v26 = vcombine.low %v4447_v27, %v4447_v27  ;;  %v5133_v25 = vcombine.high %v4447_v27, %v4447_v27 }
 0x259   : > { %5148 = vst.msk [vmem:[%s5806_s13 + $0x8] sm:$0xf] %vm2384_vm10, %v5132_v26  ;;  %5149 = vst.msk [vmem:[%s5806_s13 + $0xc] sm:$0xf] %vm2384_vm10, %v5133_v25 }
 0x25b   : > { %v4436_v39 = vpop.permute.xlu1 %4435 }
 0x25c   : > { %v4456_v8 = vsel %vm1372_vm9, %v8203_v14, %v4436_v39 }
 0x25d   : > { %v5138_v44 = vcombine.low %v4456_v8, %v4456_v8  ;;  %v5139_v28 = vcombine.high %v4456_v8, %v4456_v8 }
 0x25f   : > { %5154 = vst.msk [vmem:[%s5806_s13 + $0x38] sm:$0xf] %vm2384_vm10, %v5138_v44  ;;  %5155 = vst.msk [vmem:[%s5806_s13 + $0x3c] sm:$0xf] %vm2384_vm10, %v5139_v28 }
 0x261   : > { %v4434_v31 = vpop.permute.xlu0 %4433 }
 0x262   : > { %v4453_v56 = vsel %vm1372_vm9, %v8204_v51, %v4434_v31 }
 0x263   : > { %v5136_v41 = vcombine.low %v4453_v56, %v4453_v56  ;;  %v5137_v6 = vcombine.high %v4453_v56, %v4453_v56 }
 0x264   : > { %v4440_v32 = vpop.permute.xlu1 %4439 }
 0x265   : > { %5152 = vst.msk [vmem:[%s5806_s13 + $0x28] sm:$0xf] %vm2384_vm10, %v5136_v41  ;;  %5153 = vst.msk [vmem:[%s5806_s13 + $0x2c] sm:$0xf] %vm2384_vm10, %v5137_v6  ;;  %v4462_v47 = vsel %vm1372_vm9, %v8206_v55, %v4440_v32 }
 0x266   : > { %v5142_v2 = vcombine.low %v4462_v47, %v4462_v47  ;;  %v5143_v17 = vcombine.high %v4462_v47, %v4462_v47 }
 0x267   : > { %v4438_v36 = vpop.permute.xlu0 %4437 }
 0x268   : > { %v4459_v15 = vsel %vm1372_vm9, %v8209_v1, %v4438_v36  ;;  %5158 = vst.msk [vmem:[%s5806_s13 + $0x58] sm:$0xf] %vm2384_vm10, %v5142_v2  ;;  %5159 = vst.msk [vmem:[%s5806_s13 + $0x5c] sm:$0xf] %vm2384_vm10, %v5143_v17 }
 0x269   : > { %v5140_v52 = vcombine.low %v4459_v15, %v4459_v15  ;;  %v5141_v42 = vcombine.high %v4459_v15, %v4459_v15 }
 0x26a   : > { %v4444_v63 = vpop.permute.xlu1 %4443 }
 0x26b   : > { %5156 = vst.msk [vmem:[%s5806_s13 + $0x48] sm:$0xf] %vm2384_vm10, %v5140_v52  ;;  %5157 = vst.msk [vmem:[%s5806_s13 + $0x4c] sm:$0xf] %vm2384_vm10, %v5141_v42  ;;  %v4468_v45 = vsel %vm1372_vm9, %v8212_v22, %v4444_v63 }
 0x26c   : > { %v4442_v48 = vpop.permute.xlu0 %4441  ;;  %v5146_v34 = vcombine.low %v4468_v45, %v4468_v45  ;;  %v5147_v30 = vcombine.high %v4468_v45, %v4468_v45 }
 0x26d   : > { %v4465_v35 = vsel %vm1372_vm9, %v8215_v43, %v4442_v48 }
 0x26e   : > { %v5144_v12 = vcombine.low %v4465_v35, %v4465_v35  ;;  %v5145_v20 = vcombine.high %v4465_v35, %v4465_v35  ;;  %5162 = vst.msk [vmem:[%s5806_s13 + $0x78] sm:$0xf] %vm2384_vm10, %v5146_v34  ;;  %5163 = vst.msk [vmem:[%s5806_s13 + $0x7c] sm:$0xf] %vm2384_vm10, %v5147_v30 }
 0x270   : > { %5160 = vst.msk [vmem:[%s5806_s13 + $0x68] sm:$0xf] %vm2384_vm10, %v5144_v12  ;;  %5161 = vst.msk [vmem:[%s5806_s13 + $0x6c] sm:$0xf] %vm2384_vm10, %v5145_v20 }
 0x271 PF: > { %s15_s19 = sadd.s32 1, %s5728_s19   ;;  %s8216_s15 = smov %s5720_s17 }
 0x272   : > { %p12_p8 = scmp.ge.s32.totalorder %s15_s19, 6   ;;  %s8217_s16 = smov %s5724_s18 }
 0x273   : > { %s8218_s17 = smov %s8221_s20  ;;  %s8219_s18 = smov %s8225_s21 }
 0x274   :  { %14 = sbr.rel (!%p12_p8) target bundleno = 3 (0x3), region = 105 }

</bundles_post_ra>
